<compile_context>
chip_gen: v7x
topology: tpu7x:2x2x1
jax: 0.10.0
libtpu: 0.0.40
codegen_flags: <defaults>
</compile_context>

<pallas_src>
import jax
import jax.numpy as jnp
from jax.experimental import pallas as pl
from jax.experimental.pallas import tpu as pltpu

NUM_FILTERS = 100                      # real conv channels (PyTorch out_channels)
CPAD = 128                             # lane-padded channels per conv
KS = (3, 4, 5)                         # conv kernel heights
NGROUPS = len(KS)                      # 3 convs
SEQ_LEN = 10                           # MaxPool1d(8/7/6) in the module => S == 10
WINDOWS = tuple(SEQ_LEN - k + 1 for k in KS)   # (8, 7, 6) valid conv windows
NWIN = sum(WINDOWS)                             # 21 banded weight slabs


def _round_up(x, m):
    return (x + m - 1) // m * m


def _textcnn_kernel(x_ref, wband_ref, bconv_ref, wfc_ref, bfc_ref, o_ref):
    # x_ref:     (TB, KPAD)               bf16  flattened seq*embed rows, zero padded
    # wband_ref: (NWIN, KPAD, CPAD)       bf16  banded per-window conv weights
    # bconv_ref: (1, NGROUPS*CPAD)        f32   packed conv biases
    # wfc_ref:   (NGROUPS, CPAD, OUT_PAD) bf16  per-group fc weight
    # bfc_ref:   (1, OUT_PAD)             f32   padded fc bias
    # o_ref:     (TB, OUT_PAD)            f32
    x = x_ref[...]

    out_acc = None
    win = 0
    for gi, k in enumerate(KS):
        length = SEQ_LEN - k + 1
        mx = None
        for l in range(length):
            # Banded weight folds the k shifted taps into the MXU: one
            # (TB, KPAD) @ (KPAD, CPAD) matmul per window, consumed on the spot
            # (only (TB, 128) tiles are ever live -> no spill).
            y = jnp.dot(x, wband_ref[win + l],
                        preferred_element_type=jnp.float32)
            mx = y if mx is None else jnp.maximum(mx, y)
        win += length
        # Conv bias is constant over the sequence window, so add after the max.
        feat = (mx + bconv_ref[:, gi * CPAD:(gi + 1) * CPAD]).astype(jnp.bfloat16)
        # FC split per group: accumulated (TB,128)@(128,OUT_PAD) bf16 matmuls,
        # f32 accumulation; avoids materializing the (TB, 384) concat.
        contrib = jnp.dot(feat, wfc_ref[gi], preferred_element_type=jnp.float32)
        out_acc = contrib if out_acc is None else out_acc + contrib

    o_ref[...] = (out_acc + bfc_ref[...]).astype(o_ref.dtype)


def _pack_params(params, kpad, output_size, out_pad):
    """Pack/pad conv + fc weights into lane-aligned, banded kernel operands."""
    embed_size = params["embed"].shape[1]
    w_band = jnp.zeros((NWIN, kpad, CPAD), jnp.float32)
    b_conv = jnp.zeros((1, NGROUPS * CPAD), jnp.float32)
    w_fc = jnp.zeros((NGROUPS, CPAD, out_pad), jnp.float32)
    win = 0
    for gi, k in enumerate(KS):
        w = params[f"w{gi + 1}"]               # (k, E, 100)
        b = params[f"b{gi + 1}"]               # (100,)
        length = SEQ_LEN - k + 1
        for l in range(length):                # one banded slab per valid window
            for r in range(k):
                r0 = (l + r) * embed_size
                w_band = w_band.at[win + l, r0:r0 + embed_size,
                                   :NUM_FILTERS].set(w[r])
        win += length
        b_conv = b_conv.at[0, gi * CPAD:gi * CPAD + NUM_FILTERS].set(b)
        w_fc = w_fc.at[gi, :NUM_FILTERS, :output_size].set(
            params["fc_w"][gi * NUM_FILTERS:(gi + 1) * NUM_FILTERS])
    b_fc = jnp.zeros((1, out_pad), jnp.float32)
    b_fc = b_fc.at[0, :output_size].set(params["fc_b"])
    return (w_band.astype(jnp.bfloat16), b_conv,
            w_fc.astype(jnp.bfloat16), b_fc)


def kbqa_textcnn_forward(text, params, block_b=128):
    embed_tbl = params["embed"]                # (V, E) bf16
    B, S = text.shape
    E = embed_tbl.shape[1]
    assert S == SEQ_LEN, "MaxPool1d kernel sizes 8/7/6 imply seq_len == 10"
    output_size = params["fc_b"].shape[-1]
    out_pad = _round_up(output_size, 128)
    kpad = _round_up(S * E, 128)

    w_band, b_conv, w_fc, b_fc = _pack_params(params, kpad, output_size, out_pad)

    # Embedding gather (glue) stays in plain JAX: emitted in bf16 and already
    # flattened to the (B, S*E) layout the banded matmul consumes, then
    # zero-padded to the lane-aligned KPAD.  nn.Dropout(0.2) is identity at
    # inference time.
    # TODO(synk): an in-kernel gather (scalar-prefetched ids + VMEM table)
    # would save one XLA launch, but B*S per-token dynamic row loads/stores
    # cost more in-kernel than the ~80KB/tile HBM round trip they save here.
    x = embed_tbl[text].reshape(B, S * E)      # (B, 320) bf16

    # Batch tiling: aim for >=2 grid steps whenever possible so the "parallel"
    # grid axis can shard across v7x's two TensorCores; cap the tile at block_b
    # (raise block_b, e.g. 256 on v6e, for very large batches).
    tb = min(_round_up(block_b, 8), max(8, _round_up(-(-B // 2), 8)))
    b_padded = _round_up(B, tb)
    x = jnp.pad(x, ((0, b_padded - B), (0, kpad - S * E)))

    grid = (b_padded // tb,)
    out = pl.pallas_call(
        _textcnn_kernel,
        out_shape=jax.ShapeDtypeStruct((b_padded, out_pad), jnp.float32),
        grid_spec=pltpu.PrefetchScalarGridSpec(
            num_scalar_prefetch=0,
            grid=grid,
            in_specs=[
                pl.BlockSpec((tb, kpad), lambda i: (i, 0)),
                pl.BlockSpec((NWIN, kpad, CPAD), lambda i: (0, 0, 0)),
                pl.BlockSpec((1, NGROUPS * CPAD), lambda i: (0, 0)),
                pl.BlockSpec((NGROUPS, CPAD, out_pad), lambda i: (0, 0, 0)),
                pl.BlockSpec((1, out_pad), lambda i: (0, 0)),
            ],
            out_specs=pl.BlockSpec((tb, out_pad), lambda i: (i, 0)),
        ),
        compiler_params=pltpu.CompilerParams(
            dimension_semantics=("parallel",)),
    )(x, w_band, b_conv, w_fc, b_fc)
    return out[:B, :output_size]


def init_params(key, vocab_size, embed_size, output_size, padding_idx):
    ks = jax.random.split(key, 9)
    embed = 0.1 * jax.random.normal(ks[0], (vocab_size, embed_size),
                                    jnp.float32)
    embed = embed.at[padding_idx].set(0.0)     # padding_idx row is zero
    embed = embed.astype(jnp.bfloat16)         # gather emits bf16 directly

    def conv_w(k_key, k):
        # PyTorch weight is (100, 1, k, E); we store it as (k, E, 100)
        return 0.05 * jax.random.normal(k_key, (k, embed_size, NUM_FILTERS),
                                        jnp.float32)

    return {
        "embed": embed,
        "w1": conv_w(ks[1], KS[0]),
        "w2": conv_w(ks[2], KS[1]),
        "w3": conv_w(ks[3], KS[2]),
        "b1": 0.01 * jax.random.normal(ks[4], (NUM_FILTERS,), jnp.float32),
        "b2": 0.01 * jax.random.normal(ks[5], (NUM_FILTERS,), jnp.float32),
        "b3": 0.01 * jax.random.normal(ks[6], (NUM_FILTERS,), jnp.float32),
        "fc_w": 0.05 * jax.random.normal(
            ks[7], (NGROUPS * NUM_FILTERS, output_size), jnp.float32),
        "fc_b": 0.01 * jax.random.normal(ks[8], (output_size,), jnp.float32),
    }


def _reference_forward(text, params):
    # Plain-JAX reference mimicking the kernel's bf16 operand quantization of
    # the conv path (bf16 embeddings/weights, f32 accumulation), matching the
    # PyTorch forward: conv -> global max pool -> concat -> linear (dropout is
    # identity).  The fc is kept in full f32 here; the kernel's bf16 fc stays
    # within the test tolerance.
    emb = params["embed"][text].astype(jnp.float32)       # table is bf16
    B, S, E = emb.shape

    def conv_feat(w, b, k):
        wq = w.astype(jnp.bfloat16).astype(jnp.float32)
        length = S - k + 1
        acc = jnp.zeros((B, length, NUM_FILTERS), jnp.float32)
        for r in range(k):
            acc = acc + jnp.einsum("ble,ec->blc", emb[:, r:r + length, :],
                                   wq[r],
                                   precision=jax.lax.Precision.HIGHEST)
        acc = acc + b[None, None, :]
        return jnp.max(acc, axis=1)                       # (B, 100)

    f1 = conv_feat(params["w1"], params["b1"], KS[0])
    f2 = conv_feat(params["w2"], params["b2"], KS[1])
    f3 = conv_feat(params["w3"], params["b3"], KS[2])
    feat = jnp.concatenate([f1, f2, f3], axis=1)          # (B, 300)
    return jnp.dot(feat, params["fc_w"],
                   precision=jax.lax.Precision.HIGHEST) + params["fc_b"][None]


if __name__ == "__main__":
    vocab_size, embed_size, output_size, padding_idx = 50, 32, 16, 0
    batch, seq_len = 4, 10   # pool sizes 8/7/6 in the module imply seq_len == 10

    key = jax.random.PRNGKey(0)
    pkey, tkey = jax.random.split(key)
    params = init_params(pkey, vocab_size, embed_size, output_size, padding_idx)
    text = jax.random.randint(tkey, (batch, seq_len), 0, vocab_size, jnp.int32)

    out = kbqa_textcnn_forward(text, params)
    out = jax.block_until_ready(out)

    ref = _reference_forward(text, params)
    assert out.shape == (batch, output_size)
    max_err = jnp.max(jnp.abs(out - ref))
    assert jnp.allclose(out, ref, atol=2e-2, rtol=2e-2), (
        f"mismatch vs reference, max abs err {max_err:.3e}")
    print("KERNEL_OK")
</pallas_src>

<mosaic_0001>
module attributes {stable_mosaic.version = 11 : i64} {
  func.func @_textcnn_kernel(%arg0: i32, %arg1: memref<8x384xbf16, #tpu.memory_space<vmem>>, %arg2: memref<21x384x128xbf16, #tpu.memory_space<vmem>>, %arg3: memref<1x384xf32, #tpu.memory_space<vmem>>, %arg4: memref<3x128x128xbf16, #tpu.memory_space<vmem>>, %arg5: memref<1x128xf32, #tpu.memory_space<vmem>>, %arg6: memref<8x128xf32, #tpu.memory_space<vmem>>) attributes {dimension_semantics = [#tpu.dimension_semantics<parallel>], iteration_bounds = array<i64: 1>, scalar_prefetch = 0 : i64, scratch_operands = 0 : i64, tpu.core_type = #tpu.core_type<tc>, window_params = [{transform_indices = @transform_0, window_bounds = array<i64: 8, 384>}, {pipeline_mode = #tpu.pipeline_mode<synchronous>, transform_indices = @transform_1, window_bounds = array<i64: 21, 384, 128>}, {pipeline_mode = #tpu.pipeline_mode<synchronous>, transform_indices = @transform_2, window_bounds = array<i64: 1, 384>}, {pipeline_mode = #tpu.pipeline_mode<synchronous>, transform_indices = @transform_3, window_bounds = array<i64: 3, 128, 128>}, {pipeline_mode = #tpu.pipeline_mode<synchronous>, transform_indices = @transform_4, window_bounds = array<i64: 1, 128>}, {transform_indices = @transform_5, window_bounds = array<i64: 8, 128>}]} {
    %c0 = arith.constant 0 : index
    %c0_0 = arith.constant 0 : index
    %0 = vector.load %arg1[%c0, %c0_0] : memref<8x384xbf16, #tpu.memory_space<vmem>>, vector<8x384xbf16>
    %c0_1 = arith.constant 0 : index
    %c0_2 = arith.constant 0 : index
    %c0_3 = arith.constant 0 : index
    %1 = vector.load %arg2[%c0_1, %c0_2, %c0_3] : memref<21x384x128xbf16, #tpu.memory_space<vmem>>, vector<1x384x128xbf16>
    %2 = vector.shape_cast %1 : vector<1x384x128xbf16> to vector<384x128xbf16>
    %cst = arith.constant dense<0.000000e+00> : vector<8x128xf32>
    %3 = tpu.matmul %0, %2, %cst {dimension_numbers = #tpu.dot_dimension_numbers<[1], [0], [0], [1], [0, 0, 1, 1], [], []>} : vector<8x384xbf16>, vector<384x128xbf16>, vector<8x128xf32> -> vector<8x128xf32>
    %c1 = arith.constant 1 : index
    %c0_4 = arith.constant 0 : index
    %c0_5 = arith.constant 0 : index
    %4 = vector.load %arg2[%c1, %c0_4, %c0_5] : memref<21x384x128xbf16, #tpu.memory_space<vmem>>, vector<1x384x128xbf16>
    %5 = vector.shape_cast %4 : vector<1x384x128xbf16> to vector<384x128xbf16>
    %cst_6 = arith.constant dense<0.000000e+00> : vector<8x128xf32>
    %6 = tpu.matmul %0, %5, %cst_6 {dimension_numbers = #tpu.dot_dimension_numbers<[1], [0], [0], [1], [0, 0, 1, 1], [], []>} : vector<8x384xbf16>, vector<384x128xbf16>, vector<8x128xf32> -> vector<8x128xf32>
    %7 = arith.maximumf %3, %6 : vector<8x128xf32>
    %c2 = arith.constant 2 : index
    %c0_7 = arith.constant 0 : index
    %c0_8 = arith.constant 0 : index
    %8 = vector.load %arg2[%c2, %c0_7, %c0_8] : memref<21x384x128xbf16, #tpu.memory_space<vmem>>, vector<1x384x128xbf16>
    %9 = vector.shape_cast %8 : vector<1x384x128xbf16> to vector<384x128xbf16>
    %cst_9 = arith.constant dense<0.000000e+00> : vector<8x128xf32>
    %10 = tpu.matmul %0, %9, %cst_9 {dimension_numbers = #tpu.dot_dimension_numbers<[1], [0], [0], [1], [0, 0, 1, 1], [], []>} : vector<8x384xbf16>, vector<384x128xbf16>, vector<8x128xf32> -> vector<8x128xf32>
    %11 = arith.maximumf %7, %10 : vector<8x128xf32>
    %c3 = arith.constant 3 : index
    %c0_10 = arith.constant 0 : index
    %c0_11 = arith.constant 0 : index
    %12 = vector.load %arg2[%c3, %c0_10, %c0_11] : memref<21x384x128xbf16, #tpu.memory_space<vmem>>, vector<1x384x128xbf16>
    %13 = vector.shape_cast %12 : vector<1x384x128xbf16> to vector<384x128xbf16>
    %cst_12 = arith.constant dense<0.000000e+00> : vector<8x128xf32>
    %14 = tpu.matmul %0, %13, %cst_12 {dimension_numbers = #tpu.dot_dimension_numbers<[1], [0], [0], [1], [0, 0, 1, 1], [], []>} : vector<8x384xbf16>, vector<384x128xbf16>, vector<8x128xf32> -> vector<8x128xf32>
    %15 = arith.maximumf %11, %14 : vector<8x128xf32>
    %c4 = arith.constant 4 : index
    %c0_13 = arith.constant 0 : index
    %c0_14 = arith.constant 0 : index
    %16 = vector.load %arg2[%c4, %c0_13, %c0_14] : memref<21x384x128xbf16, #tpu.memory_space<vmem>>, vector<1x384x128xbf16>
    %17 = vector.shape_cast %16 : vector<1x384x128xbf16> to vector<384x128xbf16>
    %cst_15 = arith.constant dense<0.000000e+00> : vector<8x128xf32>
    %18 = tpu.matmul %0, %17, %cst_15 {dimension_numbers = #tpu.dot_dimension_numbers<[1], [0], [0], [1], [0, 0, 1, 1], [], []>} : vector<8x384xbf16>, vector<384x128xbf16>, vector<8x128xf32> -> vector<8x128xf32>
    %19 = arith.maximumf %15, %18 : vector<8x128xf32>
    %c5 = arith.constant 5 : index
    %c0_16 = arith.constant 0 : index
    %c0_17 = arith.constant 0 : index
    %20 = vector.load %arg2[%c5, %c0_16, %c0_17] : memref<21x384x128xbf16, #tpu.memory_space<vmem>>, vector<1x384x128xbf16>
    %21 = vector.shape_cast %20 : vector<1x384x128xbf16> to vector<384x128xbf16>
    %cst_18 = arith.constant dense<0.000000e+00> : vector<8x128xf32>
    %22 = tpu.matmul %0, %21, %cst_18 {dimension_numbers = #tpu.dot_dimension_numbers<[1], [0], [0], [1], [0, 0, 1, 1], [], []>} : vector<8x384xbf16>, vector<384x128xbf16>, vector<8x128xf32> -> vector<8x128xf32>
    %23 = arith.maximumf %19, %22 : vector<8x128xf32>
    %c6 = arith.constant 6 : index
    %c0_19 = arith.constant 0 : index
    %c0_20 = arith.constant 0 : index
    %24 = vector.load %arg2[%c6, %c0_19, %c0_20] : memref<21x384x128xbf16, #tpu.memory_space<vmem>>, vector<1x384x128xbf16>
    %25 = vector.shape_cast %24 : vector<1x384x128xbf16> to vector<384x128xbf16>
    %cst_21 = arith.constant dense<0.000000e+00> : vector<8x128xf32>
    %26 = tpu.matmul %0, %25, %cst_21 {dimension_numbers = #tpu.dot_dimension_numbers<[1], [0], [0], [1], [0, 0, 1, 1], [], []>} : vector<8x384xbf16>, vector<384x128xbf16>, vector<8x128xf32> -> vector<8x128xf32>
    %27 = arith.maximumf %23, %26 : vector<8x128xf32>
    %c7 = arith.constant 7 : index
    %c0_22 = arith.constant 0 : index
    %c0_23 = arith.constant 0 : index
    %28 = vector.load %arg2[%c7, %c0_22, %c0_23] : memref<21x384x128xbf16, #tpu.memory_space<vmem>>, vector<1x384x128xbf16>
    %29 = vector.shape_cast %28 : vector<1x384x128xbf16> to vector<384x128xbf16>
    %cst_24 = arith.constant dense<0.000000e+00> : vector<8x128xf32>
    %30 = tpu.matmul %0, %29, %cst_24 {dimension_numbers = #tpu.dot_dimension_numbers<[1], [0], [0], [1], [0, 0, 1, 1], [], []>} : vector<8x384xbf16>, vector<384x128xbf16>, vector<8x128xf32> -> vector<8x128xf32>
    %31 = arith.maximumf %27, %30 : vector<8x128xf32>
    %c0_25 = arith.constant 0 : index
    %c0_26 = arith.constant 0 : index
    %32 = vector.load %arg3[%c0_25, %c0_26] : memref<1x384xf32, #tpu.memory_space<vmem>>, vector<1x128xf32>
    %33 = vector.broadcast %32 : vector<1x128xf32> to vector<8x128xf32>
    %34 = arith.addf %31, %33 : vector<8x128xf32>
    %35 = arith.truncf %34 : vector<8x128xf32> to vector<8x128xbf16>
    %c0_27 = arith.constant 0 : index
    %c0_28 = arith.constant 0 : index
    %c0_29 = arith.constant 0 : index
    %36 = vector.load %arg4[%c0_27, %c0_28, %c0_29] : memref<3x128x128xbf16, #tpu.memory_space<vmem>>, vector<1x128x128xbf16>
    %37 = vector.shape_cast %36 : vector<1x128x128xbf16> to vector<128x128xbf16>
    %cst_30 = arith.constant dense<0.000000e+00> : vector<8x128xf32>
    %38 = tpu.matmul %35, %37, %cst_30 {dimension_numbers = #tpu.dot_dimension_numbers<[1], [0], [0], [1], [0, 0, 1, 1], [], []>} : vector<8x128xbf16>, vector<128x128xbf16>, vector<8x128xf32> -> vector<8x128xf32>
    %c8 = arith.constant 8 : index
    %c0_31 = arith.constant 0 : index
    %c0_32 = arith.constant 0 : index
    %39 = vector.load %arg2[%c8, %c0_31, %c0_32] : memref<21x384x128xbf16, #tpu.memory_space<vmem>>, vector<1x384x128xbf16>
    %40 = vector.shape_cast %39 : vector<1x384x128xbf16> to vector<384x128xbf16>
    %cst_33 = arith.constant dense<0.000000e+00> : vector<8x128xf32>
    %41 = tpu.matmul %0, %40, %cst_33 {dimension_numbers = #tpu.dot_dimension_numbers<[1], [0], [0], [1], [0, 0, 1, 1], [], []>} : vector<8x384xbf16>, vector<384x128xbf16>, vector<8x128xf32> -> vector<8x128xf32>
    %c9 = arith.constant 9 : index
    %c0_34 = arith.constant 0 : index
    %c0_35 = arith.constant 0 : index
    %42 = vector.load %arg2[%c9, %c0_34, %c0_35] : memref<21x384x128xbf16, #tpu.memory_space<vmem>>, vector<1x384x128xbf16>
    %43 = vector.shape_cast %42 : vector<1x384x128xbf16> to vector<384x128xbf16>
    %cst_36 = arith.constant dense<0.000000e+00> : vector<8x128xf32>
    %44 = tpu.matmul %0, %43, %cst_36 {dimension_numbers = #tpu.dot_dimension_numbers<[1], [0], [0], [1], [0, 0, 1, 1], [], []>} : vector<8x384xbf16>, vector<384x128xbf16>, vector<8x128xf32> -> vector<8x128xf32>
    %45 = arith.maximumf %41, %44 : vector<8x128xf32>
    %c10 = arith.constant 10 : index
    %c0_37 = arith.constant 0 : index
    %c0_38 = arith.constant 0 : index
    %46 = vector.load %arg2[%c10, %c0_37, %c0_38] : memref<21x384x128xbf16, #tpu.memory_space<vmem>>, vector<1x384x128xbf16>
    %47 = vector.shape_cast %46 : vector<1x384x128xbf16> to vector<384x128xbf16>
    %cst_39 = arith.constant dense<0.000000e+00> : vector<8x128xf32>
    %48 = tpu.matmul %0, %47, %cst_39 {dimension_numbers = #tpu.dot_dimension_numbers<[1], [0], [0], [1], [0, 0, 1, 1], [], []>} : vector<8x384xbf16>, vector<384x128xbf16>, vector<8x128xf32> -> vector<8x128xf32>
    %49 = arith.maximumf %45, %48 : vector<8x128xf32>
    %c11 = arith.constant 11 : index
    %c0_40 = arith.constant 0 : index
    %c0_41 = arith.constant 0 : index
    %50 = vector.load %arg2[%c11, %c0_40, %c0_41] : memref<21x384x128xbf16, #tpu.memory_space<vmem>>, vector<1x384x128xbf16>
    %51 = vector.shape_cast %50 : vector<1x384x128xbf16> to vector<384x128xbf16>
    %cst_42 = arith.constant dense<0.000000e+00> : vector<8x128xf32>
    %52 = tpu.matmul %0, %51, %cst_42 {dimension_numbers = #tpu.dot_dimension_numbers<[1], [0], [0], [1], [0, 0, 1, 1], [], []>} : vector<8x384xbf16>, vector<384x128xbf16>, vector<8x128xf32> -> vector<8x128xf32>
    %53 = arith.maximumf %49, %52 : vector<8x128xf32>
    %c12 = arith.constant 12 : index
    %c0_43 = arith.constant 0 : index
    %c0_44 = arith.constant 0 : index
    %54 = vector.load %arg2[%c12, %c0_43, %c0_44] : memref<21x384x128xbf16, #tpu.memory_space<vmem>>, vector<1x384x128xbf16>
    %55 = vector.shape_cast %54 : vector<1x384x128xbf16> to vector<384x128xbf16>
    %cst_45 = arith.constant dense<0.000000e+00> : vector<8x128xf32>
    %56 = tpu.matmul %0, %55, %cst_45 {dimension_numbers = #tpu.dot_dimension_numbers<[1], [0], [0], [1], [0, 0, 1, 1], [], []>} : vector<8x384xbf16>, vector<384x128xbf16>, vector<8x128xf32> -> vector<8x128xf32>
    %57 = arith.maximumf %53, %56 : vector<8x128xf32>
    %c13 = arith.constant 13 : index
    %c0_46 = arith.constant 0 : index
    %c0_47 = arith.constant 0 : index
    %58 = vector.load %arg2[%c13, %c0_46, %c0_47] : memref<21x384x128xbf16, #tpu.memory_space<vmem>>, vector<1x384x128xbf16>
    %59 = vector.shape_cast %58 : vector<1x384x128xbf16> to vector<384x128xbf16>
    %cst_48 = arith.constant dense<0.000000e+00> : vector<8x128xf32>
    %60 = tpu.matmul %0, %59, %cst_48 {dimension_numbers = #tpu.dot_dimension_numbers<[1], [0], [0], [1], [0, 0, 1, 1], [], []>} : vector<8x384xbf16>, vector<384x128xbf16>, vector<8x128xf32> -> vector<8x128xf32>
    %61 = arith.maximumf %57, %60 : vector<8x128xf32>
    %c14 = arith.constant 14 : index
    %c0_49 = arith.constant 0 : index
    %c0_50 = arith.constant 0 : index
    %62 = vector.load %arg2[%c14, %c0_49, %c0_50] : memref<21x384x128xbf16, #tpu.memory_space<vmem>>, vector<1x384x128xbf16>
    %63 = vector.shape_cast %62 : vector<1x384x128xbf16> to vector<384x128xbf16>
    %cst_51 = arith.constant dense<0.000000e+00> : vector<8x128xf32>
    %64 = tpu.matmul %0, %63, %cst_51 {dimension_numbers = #tpu.dot_dimension_numbers<[1], [0], [0], [1], [0, 0, 1, 1], [], []>} : vector<8x384xbf16>, vector<384x128xbf16>, vector<8x128xf32> -> vector<8x128xf32>
    %65 = arith.maximumf %61, %64 : vector<8x128xf32>
    %c0_52 = arith.constant 0 : index
    %c128 = arith.constant 128 : index
    %66 = vector.load %arg3[%c0_52, %c128] : memref<1x384xf32, #tpu.memory_space<vmem>>, vector<1x128xf32>
    %67 = vector.broadcast %66 : vector<1x128xf32> to vector<8x128xf32>
    %68 = arith.addf %65, %67 : vector<8x128xf32>
    %69 = arith.truncf %68 : vector<8x128xf32> to vector<8x128xbf16>
    %c1_53 = arith.constant 1 : index
    %c0_54 = arith.constant 0 : index
    %c0_55 = arith.constant 0 : index
    %70 = vector.load %arg4[%c1_53, %c0_54, %c0_55] : memref<3x128x128xbf16, #tpu.memory_space<vmem>>, vector<1x128x128xbf16>
    %71 = vector.shape_cast %70 : vector<1x128x128xbf16> to vector<128x128xbf16>
    %cst_56 = arith.constant dense<0.000000e+00> : vector<8x128xf32>
    %72 = tpu.matmul %69, %71, %cst_56 {dimension_numbers = #tpu.dot_dimension_numbers<[1], [0], [0], [1], [0, 0, 1, 1], [], []>} : vector<8x128xbf16>, vector<128x128xbf16>, vector<8x128xf32> -> vector<8x128xf32>
    %73 = arith.addf %38, %72 : vector<8x128xf32>
    %c15 = arith.constant 15 : index
    %c0_57 = arith.constant 0 : index
    %c0_58 = arith.constant 0 : index
    %74 = vector.load %arg2[%c15, %c0_57, %c0_58] : memref<21x384x128xbf16, #tpu.memory_space<vmem>>, vector<1x384x128xbf16>
    %75 = vector.shape_cast %74 : vector<1x384x128xbf16> to vector<384x128xbf16>
    %cst_59 = arith.constant dense<0.000000e+00> : vector<8x128xf32>
    %76 = tpu.matmul %0, %75, %cst_59 {dimension_numbers = #tpu.dot_dimension_numbers<[1], [0], [0], [1], [0, 0, 1, 1], [], []>} : vector<8x384xbf16>, vector<384x128xbf16>, vector<8x128xf32> -> vector<8x128xf32>
    %c16 = arith.constant 16 : index
    %c0_60 = arith.constant 0 : index
    %c0_61 = arith.constant 0 : index
    %77 = vector.load %arg2[%c16, %c0_60, %c0_61] : memref<21x384x128xbf16, #tpu.memory_space<vmem>>, vector<1x384x128xbf16>
    %78 = vector.shape_cast %77 : vector<1x384x128xbf16> to vector<384x128xbf16>
    %cst_62 = arith.constant dense<0.000000e+00> : vector<8x128xf32>
    %79 = tpu.matmul %0, %78, %cst_62 {dimension_numbers = #tpu.dot_dimension_numbers<[1], [0], [0], [1], [0, 0, 1, 1], [], []>} : vector<8x384xbf16>, vector<384x128xbf16>, vector<8x128xf32> -> vector<8x128xf32>
    %80 = arith.maximumf %76, %79 : vector<8x128xf32>
    %c17 = arith.constant 17 : index
    %c0_63 = arith.constant 0 : index
    %c0_64 = arith.constant 0 : index
    %81 = vector.load %arg2[%c17, %c0_63, %c0_64] : memref<21x384x128xbf16, #tpu.memory_space<vmem>>, vector<1x384x128xbf16>
    %82 = vector.shape_cast %81 : vector<1x384x128xbf16> to vector<384x128xbf16>
    %cst_65 = arith.constant dense<0.000000e+00> : vector<8x128xf32>
    %83 = tpu.matmul %0, %82, %cst_65 {dimension_numbers = #tpu.dot_dimension_numbers<[1], [0], [0], [1], [0, 0, 1, 1], [], []>} : vector<8x384xbf16>, vector<384x128xbf16>, vector<8x128xf32> -> vector<8x128xf32>
    %84 = arith.maximumf %80, %83 : vector<8x128xf32>
    %c18 = arith.constant 18 : index
    %c0_66 = arith.constant 0 : index
    %c0_67 = arith.constant 0 : index
    %85 = vector.load %arg2[%c18, %c0_66, %c0_67] : memref<21x384x128xbf16, #tpu.memory_space<vmem>>, vector<1x384x128xbf16>
    %86 = vector.shape_cast %85 : vector<1x384x128xbf16> to vector<384x128xbf16>
    %cst_68 = arith.constant dense<0.000000e+00> : vector<8x128xf32>
    %87 = tpu.matmul %0, %86, %cst_68 {dimension_numbers = #tpu.dot_dimension_numbers<[1], [0], [0], [1], [0, 0, 1, 1], [], []>} : vector<8x384xbf16>, vector<384x128xbf16>, vector<8x128xf32> -> vector<8x128xf32>
    %88 = arith.maximumf %84, %87 : vector<8x128xf32>
    %c19 = arith.constant 19 : index
    %c0_69 = arith.constant 0 : index
    %c0_70 = arith.constant 0 : index
    %89 = vector.load %arg2[%c19, %c0_69, %c0_70] : memref<21x384x128xbf16, #tpu.memory_space<vmem>>, vector<1x384x128xbf16>
    %90 = vector.shape_cast %89 : vector<1x384x128xbf16> to vector<384x128xbf16>
    %cst_71 = arith.constant dense<0.000000e+00> : vector<8x128xf32>
    %91 = tpu.matmul %0, %90, %cst_71 {dimension_numbers = #tpu.dot_dimension_numbers<[1], [0], [0], [1], [0, 0, 1, 1], [], []>} : vector<8x384xbf16>, vector<384x128xbf16>, vector<8x128xf32> -> vector<8x128xf32>
    %92 = arith.maximumf %88, %91 : vector<8x128xf32>
    %c20 = arith.constant 20 : index
    %c0_72 = arith.constant 0 : index
    %c0_73 = arith.constant 0 : index
    %93 = vector.load %arg2[%c20, %c0_72, %c0_73] : memref<21x384x128xbf16, #tpu.memory_space<vmem>>, vector<1x384x128xbf16>
    %94 = vector.shape_cast %93 : vector<1x384x128xbf16> to vector<384x128xbf16>
    %cst_74 = arith.constant dense<0.000000e+00> : vector<8x128xf32>
    %95 = tpu.matmul %0, %94, %cst_74 {dimension_numbers = #tpu.dot_dimension_numbers<[1], [0], [0], [1], [0, 0, 1, 1], [], []>} : vector<8x384xbf16>, vector<384x128xbf16>, vector<8x128xf32> -> vector<8x128xf32>
    %96 = arith.maximumf %92, %95 : vector<8x128xf32>
    %c0_75 = arith.constant 0 : index
    %c256 = arith.constant 256 : index
    %97 = vector.load %arg3[%c0_75, %c256] : memref<1x384xf32, #tpu.memory_space<vmem>>, vector<1x128xf32>
    %98 = vector.broadcast %97 : vector<1x128xf32> to vector<8x128xf32>
    %99 = arith.addf %96, %98 : vector<8x128xf32>
    %100 = arith.truncf %99 : vector<8x128xf32> to vector<8x128xbf16>
    %c2_76 = arith.constant 2 : index
    %c0_77 = arith.constant 0 : index
    %c0_78 = arith.constant 0 : index
    %101 = vector.load %arg4[%c2_76, %c0_77, %c0_78] : memref<3x128x128xbf16, #tpu.memory_space<vmem>>, vector<1x128x128xbf16>
    %102 = vector.shape_cast %101 : vector<1x128x128xbf16> to vector<128x128xbf16>
    %cst_79 = arith.constant dense<0.000000e+00> : vector<8x128xf32>
    %103 = tpu.matmul %100, %102, %cst_79 {dimension_numbers = #tpu.dot_dimension_numbers<[1], [0], [0], [1], [0, 0, 1, 1], [], []>} : vector<8x128xbf16>, vector<128x128xbf16>, vector<8x128xf32> -> vector<8x128xf32>
    %104 = arith.addf %73, %103 : vector<8x128xf32>
    %c0_80 = arith.constant 0 : index
    %c0_81 = arith.constant 0 : index
    %105 = vector.load %arg5[%c0_80, %c0_81] : memref<1x128xf32, #tpu.memory_space<vmem>>, vector<1x128xf32>
    %106 = vector.broadcast %105 : vector<1x128xf32> to vector<8x128xf32>
    %107 = arith.addf %104, %106 : vector<8x128xf32>
    %c0_82 = arith.constant 0 : index
    %c0_83 = arith.constant 0 : index
    %108 = vector.load %arg6[%c0_82, %c0_83] : memref<8x128xf32, #tpu.memory_space<vmem>>, vector<8x128xf32>
    tpu.vector_store %arg6[%c0_82, %c0_83], %107 {strides = array<i32>} : memref<8x128xf32, #tpu.memory_space<vmem>>, vector<8x128xf32>,
    return
  }
  func.func @transform_0(%arg0: i32) -> (i32, i32) {
    %c0_i32 = arith.constant 0 : i32
    %c0_i32_0 = arith.constant 0 : i32
    return %arg0, %c0_i32 : i32, i32
  }
  func.func @transform_1(%arg0: i32) -> (i32, i32, i32) {
    %c0_i32 = arith.constant 0 : i32
    %c0_i32_0 = arith.constant 0 : i32
    %c0_i32_1 = arith.constant 0 : i32
    %c0_i32_2 = arith.constant 0 : i32
    return %c0_i32, %c0_i32_0, %c0_i32_1 : i32, i32, i32
  }
  func.func @transform_2(%arg0: i32) -> (i32, i32) {
    %c0_i32 = arith.constant 0 : i32
    %c0_i32_0 = arith.constant 0 : i32
    %c0_i32_1 = arith.constant 0 : i32
    return %c0_i32, %c0_i32_0 : i32, i32
  }
  func.func @transform_3(%arg0: i32) -> (i32, i32, i32) {
    %c0_i32 = arith.constant 0 : i32
    %c0_i32_0 = arith.constant 0 : i32
    %c0_i32_1 = arith.constant 0 : i32
    %c0_i32_2 = arith.constant 0 : i32
    return %c0_i32, %c0_i32_0, %c0_i32_1 : i32, i32, i32
  }
  func.func @transform_4(%arg0: i32) -> (i32, i32) {
    %c0_i32 = arith.constant 0 : i32
    %c0_i32_0 = arith.constant 0 : i32
    %c0_i32_1 = arith.constant 0 : i32
    return %c0_i32, %c0_i32_0 : i32, i32
  }
  func.func @transform_5(%arg0: i32) -> (i32, i32) {
    %c0_i32 = arith.constant 0 : i32
    %c0_i32_0 = arith.constant 0 : i32
    return %arg0, %c0_i32 : i32, i32
  }
}

</mosaic_0001>

<bundles_post_ra>
// kernel: tpu_custom_call.1
= control target key start
LH: loop header
LB: loop body
LE: loop exit
PB: predicated region body
PF: predicated region fallthrough
CT: control target
= control target key end

     0   :  { %10 = vsyncpa [#allocation3], 0  ;;  %s9073_s0 = inlined_call_operand.hbm [shape: bf16[8,384], index: 0, kind: input, shape index: {}]   ;;  %s9074_s1 = inlined_call_operand.hbm [shape: bf16[21,384,128], index: 1, kind: input, shape index: {}]   ;;  %s9075_s2 = inlined_call_operand.hbm [shape: f32[1,384], index: 2, kind: input, shape index: {}]   ;;  %s9076_s3 = inlined_call_operand.hbm [shape: bf16[3,128,128], index: 3, kind: input, shape index: {}]   ;;  %s9077_s4 = inlined_call_operand.hbm [shape: f32[1,128], index: 4, kind: input, shape index: {}]   ;;  %s9078_s5 = inlined_call_operand.hbm [shape: f32[8,128], index: 5, kind: output, shape index: {}]  }
   0x1   :  { %11 = vsyncpa [#allocation6], 0 }
   0x2   :  { %12 = vsyncpa [#allocation9], 0 }
   0x3   :  { %13 = vsyncpa [#allocation4], 0  ;;  %s8593_s18 = smov [#allocation5]   ;;  %s8453_s22 = scalar_lea.hbm %s9074_s1, 64512 }
   0x4   :  { %s29_s19 = sshll.u32 %s8593_s18, 4  ;;  %p8454_p0 = scmp.ne.s32.totalorder %s9074_s1, %s8453_s22  ;;  %s30_s19 = int_to_ptr.vmem [resolvable:$true] %s29_s19 }
   0x5   :  { %p8457_p1 = scmp.lt.u32.totalorder %s8453_s22, %s9074_s1 }
   0x7   :  { %p8459_p2 = pnand %p8457_p1, %p8454_p0 }
   0x9   :  { %8462 = shalt.err (!%p8459_p2)
}
   0xa   :  { %s8463_s27 = scalar_lea.vmem %s30_s19, 64512  ;;  %p8468_p4 = scmp.lt.s32.totalorder %s30_s19, %s30_s19 }
   0xb   :  { %p8464_p3 = scmp.ne.s32.totalorder %s30_s19, %s8463_s27  ;;  %p8469_p5 = scmp.lt.s32.totalorder %s8463_s27, %s8463_s27 }
   0xd   :  { %p8470_p6 = por %p8469_p5, %p8468_p4 }
   0xf   :  { %p8471_p7 = pnand %p8470_p6, %p8464_p3 }
  0x11   :  { %8474 = shalt.err (!%p8471_p7)
}
  0x12   :  { %s8594_s28 = smov 64   ;;  %s8595_s29 = smov 4  }
  0x13   :  { %35 = dma.hbm_to_vmem [thread:$0]  %s9074_s1, 64512, %s30_s19, [#allocation6], %s8594_s28, %s8594_s28, %s8595_s29  }
  0x14   :  { %s8596_s7 = smov [#allocation8]   ;;  %s8597_s9 = smov [#allocation2]  }
  0x15   :  { %s51_s8 = sshll.u32 %s8596_s7, 4  ;;  %s20_s10 = sshll.u32 %s8597_s9, 4  ;;  %s52_s8 = int_to_ptr.vmem [resolvable:$true] %s51_s8  ;;  %s21_s10 = int_to_ptr.vmem [resolvable:$true] %s20_s10 }
  0x16   :  { %s8475_s13 = scalar_lea.hbm %s9076_s3, 3072 }
  0x17   :  { %p8476_p8 = scmp.ne.s32.totalorder %s9076_s3, %s8475_s13  ;;  %p8479_p9 = scmp.lt.u32.totalorder %s8475_s13, %s9076_s3 }
  0x19   :  { %p8481_p10 = pnand %p8479_p9, %p8476_p8 }
  0x1b   :  { %8484 = shalt.err (!%p8481_p10)
}
  0x1c   :  { %s8485_s1 = scalar_lea.vmem %s52_s8, 3072  ;;  %p8490_p12 = scmp.lt.s32.totalorder %s52_s8, %s52_s8 }
  0x1d   :  { %p8486_p11 = scmp.ne.s32.totalorder %s52_s8, %s8485_s1  ;;  %p8491_p13 = scmp.lt.s32.totalorder %s8485_s1, %s8485_s1 }
  0x1f   :  { %p8492_p0 = por %p8491_p13, %p8490_p12 }
  0x21   :  { %p8493_p1 = pnand %p8492_p0, %p8486_p11 }
  0x23   :  { %8496 = shalt.err (!%p8493_p1)
}
  0x24   :  { %57 = dma.hbm_to_vmem [thread:$0]  %s9076_s3, 3072, %s52_s8, [#allocation9], %s8594_s28, %s8594_s28, %s8595_s29  }
  0x25   :  { %s8497_s22 = scalar_lea.hbm %s9073_s0, 192 }
  0x26   :  { %p8498_p2 = scmp.ne.s32.totalorder %s9073_s0, %s8497_s22  ;;  %p8501_p3 = scmp.lt.u32.totalorder %s8497_s22, %s9073_s0 }
  0x28   :  { %p8503_p4 = pnand %p8501_p3, %p8498_p2 }
  0x2a   :  { %8506 = shalt.err (!%p8503_p4)
}
  0x2b   :  { %s8507_s27 = scalar_lea.vmem %s21_s10, 192  ;;  %p8512_p6 = scmp.lt.s32.totalorder %s21_s10, %s21_s10 }
  0x2c   :  { %p8508_p5 = scmp.ne.s32.totalorder %s21_s10, %s8507_s27  ;;  %p8513_p7 = scmp.lt.s32.totalorder %s8507_s27, %s8507_s27 }
  0x2e   :  { %p8514_p8 = por %p8513_p7, %p8512_p6 }
  0x30   :  { %p8515_p9 = pnand %p8514_p8, %p8508_p5 }
  0x32   :  { %8518 = shalt.err (!%p8515_p9)
}
  0x33   :  { %23 = dma.hbm_to_vmem [thread:$0]  %s9073_s0, 192, %s21_s10, [#allocation3]  }
  0x34   :  { %s8598_s29 = smov [#allocation7]   ;;  %s8599_s6 = smov [#allocation10]  }
  0x35   :  { %s42_s30 = sshll.u32 %s8598_s29, 4  ;;  %s64_s7 = sshll.u32 %s8599_s6, 4  ;;  %s43_s30 = int_to_ptr.vmem [resolvable:$true] %s42_s30  ;;  %s65_s7 = int_to_ptr.vmem [resolvable:$true] %s64_s7 }
  0x36   :  { %s8519_s11 = scalar_lea.hbm %s9075_s2, 48 }
  0x37   :  { %p8520_p10 = scmp.ne.s32.totalorder %s9075_s2, %s8519_s11  ;;  %p8523_p11 = scmp.lt.u32.totalorder %s8519_s11, %s9075_s2 }
  0x39   :  { %p8525_p12 = pnand %p8523_p11, %p8520_p10 }
  0x3b   :  { %8528 = shalt.err (!%p8525_p12)
}
  0x3c   :  { %s8529_s0 = scalar_lea.vmem %s43_s30, 48  ;;  %s8533_s10 = scalar_lea.vmem %s43_s30, 64 }
  0x3d   :  { %p8530_p13 = scmp.ne.s32.totalorder %s43_s30, %s8529_s0  ;;  %p8534_p0 = scmp.lt.s32.totalorder %s43_s30, %s43_s30 }
  0x3e   :  { %p8535_p1 = scmp.lt.s32.totalorder %s8533_s10, %s8529_s0 }
  0x40   :  { %p8536_p2 = por %p8535_p1, %p8534_p0 }
  0x42   :  { %p8537_p3 = pnand %p8536_p2, %p8530_p13 }
  0x44   :  { %8540 = shalt.err (!%p8537_p3)
}
  0x45   :  { %45 = dma.hbm_to_vmem [thread:$0]  %s9075_s2, 48, %s43_s30, [#allocation6]  }
  0x46   :  { %s8541_s19 = scalar_lea.hbm %s9077_s4, 16 }
  0x47   :  { %p8542_p4 = scmp.ne.s32.totalorder %s9077_s4, %s8541_s19  ;;  %p8545_p5 = scmp.lt.u32.totalorder %s8541_s19, %s9077_s4 }
  0x49   :  { %p8547_p6 = pnand %p8545_p5, %p8542_p4 }
  0x4b   :  { %8550 = shalt.err (!%p8547_p6)
}
  0x4c   :  { %s8551_s24 = scalar_lea.vmem %s65_s7, 16  ;;  %s8555_s25 = scalar_lea.vmem %s65_s7, 32 }
  0x4d   :  { %p8552_p7 = scmp.ne.s32.totalorder %s65_s7, %s8551_s24  ;;  %p8556_p8 = scmp.lt.s32.totalorder %s65_s7, %s65_s7 }
  0x4e   :  { %p8557_p9 = scmp.lt.s32.totalorder %s8555_s25, %s8551_s24 }
  0x50   :  { %p8558_p10 = por %p8557_p9, %p8556_p8 }
  0x52   :  { %p8559_p11 = pnand %p8558_p10, %p8552_p7 }
  0x54   :  { %8562 = shalt.err (!%p8559_p11)
}
  0x55   :  { %67 = dma.hbm_to_vmem [thread:$0]  %s9077_s4, 16, %s65_s7, [#allocation9]  }
  0x56   :  { %8585 = dma.done.wait [#allocation3], 192  }
  0x57   :  { %8586 = vsyncadd [#allocation3], 4294967104 }
  0x58   :  { %8587 = dma.done.wait [#allocation6], 64560  }
  0x59   :  { %8588 = vsyncadd [#allocation6], 4294902736 }
  0x5a   :  { %8589 = dma.done.wait [#allocation9], 3088  }
  0x5b   :  { %8590 = vsyncadd [#allocation9], 4294964208  ;;  %v8600_v0 = vmov 0.0   ;;  %vm8601_vm0 = vmmov 0   ;;  %v7918_v1 = vld [vmem:[#allocation5 + $0x40] sm:$0xff]   ;;  %v7921_v4 = vld [vmem:[#allocation5 + $0x48] sm:$0xff]  }
  0x5c   :  { %7428 = vmatprep.subr.bf16.mxu1 %v8600_v0  ;;  %7444 = vmatprep.mubr.msk.bf16.mxu1 %vm8601_vm0, %v8600_v0  ;;  %v7919_v2 = vld [vmem:[#allocation5 + $0x80] sm:$0xff]   ;;  %v7922_v5 = vld [vmem:[#allocation5 + $0x88] sm:$0xff]   ;;  %v7924_v7 = vld [vmem:[#allocation5 + $0x50] sm:$0xff]   ;;  %s8602_s4 = smov [#allocation11]  }
  0x5d   :  { %6750 = vmatprep.subr.bf16.mxu0 %v7918_v1  ;;  %v7920_v3 = vld [vmem:[#allocation5] sm:$0xff]   ;;  %7429 = vmatpush3.bf16.msra.mxu1 %v7919_v2  ;;  %v7923_v6 = vld [vmem:[#allocation5 + $0x8] sm:$0xff]   ;;  %v7925_v8 = vld [vmem:[#allocation5 + $0x90] sm:$0xff]   ;;  %s6204_s27 = sshll.u32 %s8602_s4, 4  ;;  %s6205_s27 = int_to_ptr.vmem [resolvable:$true] %s6204_s27 }
  0x5e   :  { %6751 = vmatpush3.bf16.msra.mxu0 %v7920_v3  ;;  %7430 = vmatprep.subr.bf16.mxu1 %v8600_v0  ;;  %v7926_v9 = vld [vmem:[#allocation5 + $0x10] sm:$0xff]   ;;  %v7927_v10 = vld [vmem:[#allocation5 + $0x58] sm:$0xff]   ;;  %v7930_v13 = vld [vmem:[#allocation5 + $0x60] sm:$0xff]   ;;  %s8563_s3 = scalar_lea.vmem %s6205_s27, 128  ;;  %p8568_p13 = scmp.lt.s32.totalorder %s6205_s27, %s6205_s27 }
  0x5f   :  { %6752 = vmatprep.subr.bf16.mxu0 %v7921_v4  ;;  %v7928_v11 = vld [vmem:[#allocation5 + $0x98] sm:$0xff]   ;;  %v7931_v14 = vld [vmem:[#allocation5 + $0xa0] sm:$0xff]   ;;  %v7933_v16 = vld [vmem:[#allocation5 + $0x68] sm:$0xff]   ;;  %p8564_p12 = scmp.ne.s32.totalorder %s6205_s27, %s8563_s3  ;;  %p8569_p0 = scmp.lt.s32.totalorder %s8563_s3, %s8563_s3 }
  0x60   :  { %v7929_v12 = vld [vmem:[#allocation5 + $0x18] sm:$0xff]   ;;  %v7932_v15 = vld [vmem:[#allocation5 + $0x20] sm:$0xff]   ;;  %v7934_v17 = vld [vmem:[#allocation5 + $0xa8] sm:$0xff]  }
  0x61   :  { %7431 = vmatpush3.bf16.msra.mxu1 %v7922_v5  ;;  %v7935_v18 = vld [vmem:[#allocation5 + $0x28] sm:$0xff]   ;;  %v7936_v19 = vld [vmem:[#allocation5 + $0x70] sm:$0xff]   ;;  %v7939_v23 = vld [vmem:[#allocation5 + $0x78] sm:$0xff]   ;;  %p8570_p1 = por %p8569_p0, %p8568_p13 }
  0x62   :  { %6753 = vmatpush3.bf16.msra.mxu0 %v7923_v6  ;;  %7432 = vmatprep.subr.bf16.mxu1 %v8600_v0  ;;  %v7937_v20 = vld [vmem:[#allocation5 + $0xb0] sm:$0xff]   ;;  %v7940_v25 = vld [vmem:[#allocation5 + $0xb8] sm:$0xff]   ;;  %v7945_v27 = vld [vmem:[#allocation5 + $0x100] sm:$0xff]  }
  0x63   :  { %6754 = vmatprep.subr.bf16.mxu0 %v7924_v7  ;;  %v7938_v21 = vld [vmem:[#allocation5 + $0x30] sm:$0xff]   ;;  %v7941_v26 = vld [vmem:[#allocation5 + $0x38] sm:$0xff]   ;;  %v7946_v30 = vld [vmem:[#allocation5 + $0x140] sm:$0xff]   ;;  %p8571_p2 = pnand %p8570_p1, %p8564_p12 }
  0x64   :  { %v84_v22 = vld [vmem:[#allocation2] sm:$0xff]  ;;  %v8706_v28 = vld [vmem:[#allocation2 + $0x8] ss:$0 sps:$4 sm:$0xff]   ;;  %v7947_v31 = vld [vmem:[#allocation5 + $0xc0] sm:$0xff]  }
  0x65   :  { %7433 = vmatpush3.bf16.msra.mxu1 %v7925_v8  ;;  %v8702_v24 = vcombine.high %v84_v22, %v84_v22  ;;  %v8708_v29 = vcombine.low %v84_v22, %v84_v22  ;;  %v7948_v32 = vld [vmem:[#allocation5 + $0x108] sm:$0xff]   ;;  %v7951_v35 = vld [vmem:[#allocation5 + $0x110] sm:$0xff]   ;;  %v7954_v38 = vld [vmem:[#allocation5 + $0x118] sm:$0xff]  }
  0x66   :  { %6755 = vmatpush3.bf16.msra.mxu0 %v7926_v9  ;;  %7434 = vmatprep.subr.bf16.mxu1 %v8600_v0  ;;  %v7949_v33 = vld [vmem:[#allocation5 + $0x148] sm:$0xff]   ;;  %v7952_v36 = vld [vmem:[#allocation5 + $0x150] sm:$0xff]   ;;  %v7955_v39 = vld [vmem:[#allocation5 + $0x158] sm:$0xff]  }
  0x67   :  { %6756 = vmatprep.subr.bf16.mxu0 %v7927_v10  ;;  %321 = vmatprep.mubr.bf16.mxu0 %v8702_v24  ;;  %v7950_v34 = vld [vmem:[#allocation5 + $0xc8] sm:$0xff]   ;;  %v7953_v37 = vld [vmem:[#allocation5 + $0xd0] sm:$0xff]   ;;  %v7956_v40 = vld [vmem:[#allocation5 + $0xd8] sm:$0xff]  }
  0x68   :  { %v7957_v41 = vld [vmem:[#allocation5 + $0x120] sm:$0xff]   ;;  %v7960_v44 = vld [vmem:[#allocation5 + $0x128] sm:$0xff]   ;;  %v7963_v47 = vld [vmem:[#allocation5 + $0x130] sm:$0xff]  }
  0x69   :  { %7435 = vmatpush3.bf16.msra.mxu1 %v7928_v11  ;;  %v7958_v42 = vld [vmem:[#allocation5 + $0x160] sm:$0xff]   ;;  %v7961_v45 = vld [vmem:[#allocation5 + $0x168] sm:$0xff]   ;;  %v7964_v48 = vld [vmem:[#allocation5 + $0x170] sm:$0xff]  }
  0x6a   :  { %6757 = vmatpush3.bf16.msra.mxu0 %v7929_v12  ;;  %7436 = vmatprep.subr.bf16.mxu1 %v8600_v0  ;;  %v7959_v43 = vld [vmem:[#allocation5 + $0xe0] sm:$0xff]   ;;  %v7962_v46 = vld [vmem:[#allocation5 + $0xe8] sm:$0xff]   ;;  %v7965_v49 = vld [vmem:[#allocation5 + $0xf0] sm:$0xff]  }
  0x6b   :  { %6758 = vmatprep.subr.bf16.mxu0 %v7930_v13  ;;  %v7966_v50 = vld [vmem:[#allocation5 + $0x138] sm:$0xff]   ;;  %v7969_v53 = vld [vmem:[#allocation5 + $0x1c0] sm:$0xff]   ;;  %v7972_v56 = vld [vmem:[#allocation5 + $0x1c8] sm:$0xff]  }
  0x6c   :  { %v7967_v51 = vld [vmem:[#allocation5 + $0x178] sm:$0xff]   ;;  %v7970_v54 = vld [vmem:[#allocation5 + $0x200] sm:$0xff]   ;;  %v7973_v57 = vld [vmem:[#allocation5 + $0x208] sm:$0xff]  }
  0x6d   :  { %7437 = vmatpush3.bf16.msra.mxu1 %v7931_v14  ;;  %v7968_v52 = vld [vmem:[#allocation5 + $0xf8] sm:$0xff]   ;;  %v7971_v55 = vld [vmem:[#allocation5 + $0x180] sm:$0xff]   ;;  %v7974_v58 = vld [vmem:[#allocation5 + $0x188] sm:$0xff]  }
  0x6e   :  { %6759 = vmatpush3.bf16.msra.mxu0 %v7932_v15  ;;  %7438 = vmatprep.subr.bf16.mxu1 %v8600_v0  ;;  %v7975_v59 = vld [vmem:[#allocation5 + $0x1d0] sm:$0xff]   ;;  %v7978_v62 = vld [vmem:[#allocation5 + $0x1d8] sm:$0xff]   ;;  %v7981_v2 = vld [vmem:[#allocation5 + $0x1e0] sm:$0xff]  }
  0x6f   :  { %6760 = vmatprep.subr.bf16.mxu0 %v7933_v16  ;;  %v7976_v60 = vld [vmem:[#allocation5 + $0x210] sm:$0xff]   ;;  %v7979_v63 = vld [vmem:[#allocation5 + $0x218] sm:$0xff]   ;;  %v7982_v3 = vld [vmem:[#allocation5 + $0x220] sm:$0xff]  }
  0x70   :  { %v7977_v61 = vld [vmem:[#allocation5 + $0x190] sm:$0xff]   ;;  %v7980_v1 = vld [vmem:[#allocation5 + $0x198] sm:$0xff]   ;;  %v7983_v4 = vld [vmem:[#allocation5 + $0x1a0] sm:$0xff]  }
  0x71   :  { %7439 = vmatpush3.bf16.msra.mxu1 %v7934_v17  ;;  %v7984_v5 = vld [vmem:[#allocation5 + $0x1e8] sm:$0xff]   ;;  %v7987_v8 = vld [vmem:[#allocation5 + $0x1f0] sm:$0xff]   ;;  %v7990_v11 = vld [vmem:[#allocation5 + $0x1f8] sm:$0xff]  }
  0x72   :  { %6761 = vmatpush3.bf16.msra.mxu0 %v7935_v18  ;;  %7440 = vmatprep.subr.bf16.mxu1 %v8600_v0  ;;  %v7985_v6 = vld [vmem:[#allocation5 + $0x228] sm:$0xff]   ;;  %v7988_v9 = vld [vmem:[#allocation5 + $0x230] sm:$0xff]   ;;  %v7991_v12 = vld [vmem:[#allocation5 + $0x238] sm:$0xff]  }
  0x73   :  { %6762 = vmatprep.subr.bf16.mxu0 %v7936_v19  ;;  %v7986_v7 = vld [vmem:[#allocation5 + $0x1a8] sm:$0xff]   ;;  %v7989_v10 = vld [vmem:[#allocation5 + $0x1b0] sm:$0xff]   ;;  %v7992_v13 = vld [vmem:[#allocation5 + $0x1b8] sm:$0xff]  }
  0x74   :  { %v7993_v14 = vld [vmem:[#allocation5 + $0x280] sm:$0xff]   ;;  %v7996_v17 = vld [vmem:[#allocation5 + $0x288] sm:$0xff]   ;;  %v8001_v22 = vld [vmem:[#allocation5 + $0x250] sm:$0xff]  }
  0x75   :  { %7441 = vmatpush3.bf16.msra.mxu1 %v7937_v20  ;;  %v7994_v15 = vld [vmem:[#allocation5 + $0x2c0] sm:$0xff]   ;;  %v7997_v18 = vld [vmem:[#allocation5 + $0x2c8] sm:$0xff]   ;;  %v7999_v20 = vld [vmem:[#allocation5 + $0x290] sm:$0xff]  }
  0x76   :  { %6763 = vmatpush3.bf16.msra.mxu0 %v7938_v21  ;;  %7442 = vmatprep.subr.bf16.mxu1 %v8600_v0  ;;  %v7995_v16 = vld [vmem:[#allocation5 + $0x240] sm:$0xff]   ;;  %v7998_v19 = vld [vmem:[#allocation5 + $0x248] sm:$0xff]   ;;  %v8000_v21 = vld [vmem:[#allocation5 + $0x2d0] sm:$0xff]  }
  0x77   :  { %6764 = vmatprep.subr.bf16.mxu0 %v7939_v23  ;;  %v8002_v23 = vld [vmem:[#allocation5 + $0x298] sm:$0xff]  }
  0x79   :  { %7443 = vmatpush3.bf16.msra.mxu1 %v7940_v25  ;;  %v8003_v25 = vld [vmem:[#allocation5 + $0x2d8] sm:$0xff]  }
  0x7a   :  { %6765 = vmatpush3.bf16.msra.mxu0 %v7941_v26  ;;  %7448 = vmatprep.subr.bf16.mxu1 %v8600_v0  ;;  %v8004_v26 = vld [vmem:[#allocation5 + $0x258] sm:$0xff]  }
  0x7b   :  { %6781 = vmatprep.subr.bf16.mxu0 %v7945_v27  ;;  %v8005_v27 = vld [vmem:[#allocation5 + $0x2a0] sm:$0xff]  }
  0x7c   :  { %7445 = vmatmul.mubr.bf16.vlgmr.msra.gmra.mrb[0].mxu1 %v8706_v28 }
  0x7d   :  { %322 = vmatmul.mubr.bf16.vlgmr.msra.gmra.mrb[0].mxu0 %v8708_v29  ;;  %7449 = vmatpush3.bf16.msra.mxu1 %v7946_v30  ;;  %v8006_v30 = vld [vmem:[#allocation5 + $0x2e0] sm:$0xff]  }
  0x7e   :  { %6782 = vmatpush3.bf16.msra.mxu0 %v7947_v31  ;;  %7450 = vmatprep.subr.bf16.mxu1 %v8600_v0  ;;  %v8007_v31 = vld [vmem:[#allocation5 + $0x260] sm:$0xff]  }
  0x7f   :  { %6783 = vmatprep.subr.bf16.mxu0 %v7948_v32  ;;  %594 = vmatprep.mubr.bf16.mxu0 %v8702_v24  ;;  %v8008_v32 = vld [vmem:[#allocation5 + $0x2a8] sm:$0xff]  }
  0x80   :  { %7464 = vmatprep.mubr.msk.bf16.mxu1 %vm8601_vm0, %v8600_v0 }
  0x81   :  { %7451 = vmatpush3.bf16.msra.mxu1 %v7949_v33  ;;  %v8009_v33 = vld [vmem:[#allocation5 + $0x2e8] sm:$0xff]  }
  0x82   :  { %6784 = vmatpush3.bf16.msra.mxu0 %v7950_v34  ;;  %7452 = vmatprep.subr.bf16.mxu1 %v8600_v0  ;;  %v8010_v34 = vld [vmem:[#allocation5 + $0x268] sm:$0xff]  }
  0x83   :  { %6785 = vmatprep.subr.bf16.mxu0 %v7951_v35  ;;  %v8011_v35 = vld [vmem:[#allocation5 + $0x2b0] sm:$0xff]  }
  0x85   :  { %7453 = vmatpush3.bf16.msra.mxu1 %v7952_v36  ;;  %v8012_v36 = vld [vmem:[#allocation5 + $0x2f0] sm:$0xff]  }
  0x86   :  { %6786 = vmatpush3.bf16.msra.mxu0 %v7953_v37  ;;  %7454 = vmatprep.subr.bf16.mxu1 %v8600_v0  ;;  %v8013_v37 = vld [vmem:[#allocation5 + $0x270] sm:$0xff]  }
  0x87   :  { %6787 = vmatprep.subr.bf16.mxu0 %v7954_v38  ;;  %v8014_v38 = vld [vmem:[#allocation5 + $0x2b8] sm:$0xff]  }
  0x89   :  { %7455 = vmatpush3.bf16.msra.mxu1 %v7955_v39  ;;  %v8015_v39 = vld [vmem:[#allocation5 + $0x2f8] sm:$0xff]  }
  0x8a   :  { %6788 = vmatpush3.bf16.msra.mxu0 %v7956_v40  ;;  %7456 = vmatprep.subr.bf16.mxu1 %v8600_v0  ;;  %v8016_v40 = vld [vmem:[#allocation5 + $0x278] sm:$0xff]  }
  0x8b   :  { %6789 = vmatprep.subr.bf16.mxu0 %v7957_v41  ;;  %v8017_v41 = vld [vmem:[#allocation5 + $0x340] sm:$0xff]  }
  0x8d   :  { %7457 = vmatpush3.bf16.msra.mxu1 %v7958_v42  ;;  %v8018_v42 = vld [vmem:[#allocation5 + $0x380] sm:$0xff]  }
  0x8e   :  { %6790 = vmatpush3.bf16.msra.mxu0 %v7959_v43  ;;  %7458 = vmatprep.subr.bf16.mxu1 %v8600_v0  ;;  %v8019_v43 = vld [vmem:[#allocation5 + $0x300] sm:$0xff]  }
  0x8f   :  { %6791 = vmatprep.subr.bf16.mxu0 %v7960_v44  ;;  %v8020_v44 = vld [vmem:[#allocation5 + $0x348] sm:$0xff]  }
  0x91   :  { %7459 = vmatpush3.bf16.msra.mxu1 %v7961_v45  ;;  %v8021_v45 = vld [vmem:[#allocation5 + $0x388] sm:$0xff]  }
  0x92   :  { %6792 = vmatpush3.bf16.msra.mxu0 %v7962_v46  ;;  %7460 = vmatprep.subr.bf16.mxu1 %v8600_v0  ;;  %v8022_v46 = vld [vmem:[#allocation5 + $0x308] sm:$0xff]  }
  0x93   :  { %6793 = vmatprep.subr.bf16.mxu0 %v7963_v47  ;;  %v8023_v47 = vld [vmem:[#allocation5 + $0x350] sm:$0xff]  }
  0x95   :  { %7461 = vmatpush3.bf16.msra.mxu1 %v7964_v48  ;;  %v8024_v48 = vld [vmem:[#allocation5 + $0x390] sm:$0xff]  }
  0x96   :  { %6794 = vmatpush3.bf16.msra.mxu0 %v7965_v49  ;;  %7462 = vmatprep.subr.bf16.mxu1 %v8600_v0  ;;  %v8026_v49 = vld [vmem:[#allocation5 + $0x358] sm:$0xff]  }
  0x97   :  { %6795 = vmatprep.subr.bf16.mxu0 %v7966_v50  ;;  %v8027_v50 = vld [vmem:[#allocation5 + $0x398] sm:$0xff]  }
  0x99   :  { %7463 = vmatpush3.bf16.msra.mxu1 %v7967_v51  ;;  %v8028_v51 = vld [vmem:[#allocation5 + $0x318] sm:$0xff]  }
  0x9a   :  { %6796 = vmatpush3.bf16.msra.mxu0 %v7968_v52  ;;  %7468 = vmatprep.subr.bf16.mxu1 %v8600_v0  ;;  %v8029_v52 = vld [vmem:[#allocation5 + $0x360] sm:$0xff]  }
  0x9b   :  { %6812 = vmatprep.subr.bf16.mxu0 %v7969_v53  ;;  %v8030_v53 = vld [vmem:[#allocation5 + $0x3a0] sm:$0xff]  }
  0x9c   :  { %7465 = vmatmul.mubr.bf16.vlgmr.msra.gmra.mrb[4].mxu1 %v8706_v28 }
  0x9d   :  { %595 = vmatmul.mubr.bf16.vlgmr.msra.gmra.mrb[4].mxu0 %v8708_v29  ;;  %7469 = vmatpush3.bf16.msra.mxu1 %v7970_v54  ;;  %v8031_v54 = vld [vmem:[#allocation5 + $0x320] sm:$0xff]  }
  0x9e   :  { %6813 = vmatpush3.bf16.msra.mxu0 %v7971_v55  ;;  %7470 = vmatprep.subr.bf16.mxu1 %v8600_v0  ;;  %v8032_v55 = vld [vmem:[#allocation5 + $0x368] sm:$0xff]  }
  0x9f   :  { %6814 = vmatprep.subr.bf16.mxu0 %v7972_v56  ;;  %868 = vmatprep.mubr.bf16.mxu0 %v8702_v24  ;;  %v8033_v56 = vld [vmem:[#allocation5 + $0x3a8] sm:$0xff]  }
  0xa0   :  { %7484 = vmatprep.mubr.msk.bf16.mxu1 %vm8601_vm0, %v8600_v0 }
  0xa1   :  { %7471 = vmatpush3.bf16.msra.mxu1 %v7973_v57  ;;  %v8034_v57 = vld [vmem:[#allocation5 + $0x328] sm:$0xff]  }
  0xa2   :  { %6815 = vmatpush3.bf16.msra.mxu0 %v7974_v58  ;;  %7472 = vmatprep.subr.bf16.mxu1 %v8600_v0  ;;  %v8035_v58 = vld [vmem:[#allocation5 + $0x370] sm:$0xff]  }
  0xa3   :  { %6816 = vmatprep.subr.bf16.mxu0 %v7975_v59  ;;  %v8036_v59 = vld [vmem:[#allocation5 + $0x3b0] sm:$0xff]  }
  0xa5   :  { %7473 = vmatpush3.bf16.msra.mxu1 %v7976_v60  ;;  %v8037_v60 = vld [vmem:[#allocation5 + $0x330] sm:$0xff]  }
  0xa6   :  { %6817 = vmatpush3.bf16.msra.mxu0 %v7977_v61  ;;  %7474 = vmatprep.subr.bf16.mxu1 %v8600_v0  ;;  %v8038_v61 = vld [vmem:[#allocation5 + $0x378] sm:$0xff]  }
  0xa7   :  { %6818 = vmatprep.subr.bf16.mxu0 %v7978_v62  ;;  %v8039_v62 = vld [vmem:[#allocation5 + $0x3b8] sm:$0xff]  }
  0xa9   :  { %7475 = vmatpush3.bf16.msra.mxu1 %v7979_v63  ;;  %v8040_v63 = vld [vmem:[#allocation5 + $0x338] sm:$0xff]  }
  0xaa   :  { %6819 = vmatpush3.bf16.msra.mxu0 %v7980_v1  ;;  %7476 = vmatprep.subr.bf16.mxu1 %v8600_v0  ;;  %v8041_v1 = vld [vmem:[#allocation5 + $0x400] sm:$0xff]  }
  0xab   :  { %6820 = vmatprep.subr.bf16.mxu0 %v7981_v2  ;;  %v8042_v2 = vld [vmem:[#allocation5 + $0x440] sm:$0xff]  }
  0xad   :  { %7477 = vmatpush3.bf16.msra.mxu1 %v7982_v3  ;;  %v8043_v3 = vld [vmem:[#allocation5 + $0x3c0] sm:$0xff]  }
  0xae   :  { %6821 = vmatpush3.bf16.msra.mxu0 %v7983_v4  ;;  %7478 = vmatprep.subr.bf16.mxu1 %v8600_v0  ;;  %v8044_v4 = vld [vmem:[#allocation5 + $0x408] sm:$0xff]  }
  0xaf   :  { %6822 = vmatprep.subr.bf16.mxu0 %v7984_v5  ;;  %v8763_v5 = vld [vmem:[#allocation2 + $0x8] ss:$0 sps:$4 sm:$0xff]  }
  0xb1   :  { %7479 = vmatpush3.bf16.msra.mxu1 %v7985_v6  ;;  %v8045_v6 = vld [vmem:[#allocation5 + $0x448] sm:$0xff]  }
  0xb2   :  { %6823 = vmatpush3.bf16.msra.mxu0 %v7986_v7  ;;  %7480 = vmatprep.subr.bf16.mxu1 %v8600_v0  ;;  %v8046_v7 = vld [vmem:[#allocation5 + $0x3c8] sm:$0xff]  }
  0xb3   :  { %6824 = vmatprep.subr.bf16.mxu0 %v7987_v8  ;;  %v8047_v8 = vld [vmem:[#allocation5 + $0x410] sm:$0xff]  }
  0xb5   :  { %7481 = vmatpush3.bf16.msra.mxu1 %v7988_v9  ;;  %v8048_v9 = vld [vmem:[#allocation5 + $0x450] sm:$0xff]  }
  0xb6   :  { %6825 = vmatpush3.bf16.msra.mxu0 %v7989_v10  ;;  %7482 = vmatprep.subr.bf16.mxu1 %v8600_v0  ;;  %v8049_v10 = vld [vmem:[#allocation5 + $0x3d0] sm:$0xff]  }
  0xb7   :  { %6826 = vmatprep.subr.bf16.mxu0 %v7990_v11  ;;  %v8050_v11 = vld [vmem:[#allocation5 + $0x418] sm:$0xff]  }
  0xb9   :  { %7483 = vmatpush3.bf16.msra.mxu1 %v7991_v12  ;;  %v8051_v12 = vld [vmem:[#allocation5 + $0x458] sm:$0xff]  }
  0xba   :  { %6827 = vmatpush3.bf16.msra.mxu0 %v7992_v13  ;;  %7488 = vmatprep.subr.bf16.mxu1 %v8600_v0  ;;  %v8052_v13 = vld [vmem:[#allocation5 + $0x3d8] sm:$0xff]  }
  0xbb   :  { %6843 = vmatprep.subr.bf16.mxu0 %v7993_v14  ;;  %v8053_v14 = vld [vmem:[#allocation5 + $0x420] sm:$0xff]  }
  0xbc   :  { %7485 = vmatmul.mubr.bf16.vlgmr.msra.gmra.mrb[8].mxu1 %v8706_v28 }
  0xbd   :  { %869 = vmatmul.mubr.bf16.vlgmr.msra.gmra.mrb[8].mxu0 %v8708_v29  ;;  %7489 = vmatpush3.bf16.msra.mxu1 %v7994_v15  ;;  %v8054_v15 = vld [vmem:[#allocation5 + $0x460] sm:$0xff]  }
  0xbe   :  { %6844 = vmatpush3.bf16.msra.mxu0 %v7995_v16  ;;  %7490 = vmatprep.subr.bf16.mxu1 %v8600_v0  ;;  %v8055_v16 = vld [vmem:[#allocation5 + $0x3e0] sm:$0xff]  }
  0xbf   :  { %6845 = vmatprep.subr.bf16.mxu0 %v7996_v17  ;;  %1142 = vmatprep.mubr.bf16.mxu0 %v8702_v24  ;;  %v8056_v17 = vld [vmem:[#allocation5 + $0x428] sm:$0xff]  }
  0xc0   :  { %7504 = vmatprep.mubr.msk.bf16.mxu1 %vm8601_vm0, %v8600_v0 }
  0xc1   :  { %7491 = vmatpush3.bf16.msra.mxu1 %v7997_v18  ;;  %v8057_v18 = vld [vmem:[#allocation5 + $0x468] sm:$0xff]  }
  0xc2   :  { %6846 = vmatpush3.bf16.msra.mxu0 %v7998_v19  ;;  %7492 = vmatprep.subr.bf16.mxu1 %v8600_v0  ;;  %v8058_v19 = vld [vmem:[#allocation5 + $0x3e8] sm:$0xff]  }
  0xc3   :  { %6847 = vmatprep.subr.bf16.mxu0 %v7999_v20  ;;  %v8059_v20 = vld [vmem:[#allocation5 + $0x430] sm:$0xff]  }
  0xc5   :  { %7493 = vmatpush3.bf16.msra.mxu1 %v8000_v21  ;;  %v8060_v21 = vld [vmem:[#allocation5 + $0x470] sm:$0xff]  }
  0xc6   :  { %6848 = vmatpush3.bf16.msra.mxu0 %v8001_v22  ;;  %7494 = vmatprep.subr.bf16.mxu1 %v8600_v0  ;;  %v8061_v22 = vld [vmem:[#allocation5 + $0x3f0] sm:$0xff]  }
  0xc7   :  { %6849 = vmatprep.subr.bf16.mxu0 %v8002_v23  ;;  %v8062_v23 = vld [vmem:[#allocation5 + $0x438] sm:$0xff]  }
  0xc9   :  { %7495 = vmatpush3.bf16.msra.mxu1 %v8003_v25  ;;  %v8063_v25 = vld [vmem:[#allocation5 + $0x478] sm:$0xff]  }
  0xca   :  { %6850 = vmatpush3.bf16.msra.mxu0 %v8004_v26  ;;  %7496 = vmatprep.subr.bf16.mxu1 %v8600_v0  ;;  %v8064_v26 = vld [vmem:[#allocation5 + $0x3f8] sm:$0xff]  }
  0xcb   :  { %6851 = vmatprep.subr.bf16.mxu0 %v8005_v27  ;;  %v8065_v27 = vld [vmem:[#allocation5 + $0x4c0] sm:$0xff]  }
  0xcd   :  { %7497 = vmatpush3.bf16.msra.mxu1 %v8006_v30  ;;  %v8066_v30 = vld [vmem:[#allocation5 + $0x500] sm:$0xff]  }
  0xce   :  { %6852 = vmatpush3.bf16.msra.mxu0 %v8007_v31  ;;  %7498 = vmatprep.subr.bf16.mxu1 %v8600_v0  ;;  %v8067_v31 = vld [vmem:[#allocation5 + $0x480] sm:$0xff]  }
  0xcf   :  { %6853 = vmatprep.subr.bf16.mxu0 %v8008_v32  ;;  %v8068_v32 = vld [vmem:[#allocation5 + $0x4c8] sm:$0xff]  }
  0xd1   :  { %7499 = vmatpush3.bf16.msra.mxu1 %v8009_v33  ;;  %v8069_v33 = vld [vmem:[#allocation5 + $0x508] sm:$0xff]  }
  0xd2   :  { %6854 = vmatpush3.bf16.msra.mxu0 %v8010_v34  ;;  %7500 = vmatprep.subr.bf16.mxu1 %v8600_v0  ;;  %v8070_v34 = vld [vmem:[#allocation5 + $0x488] sm:$0xff]  }
  0xd3   :  { %6855 = vmatprep.subr.bf16.mxu0 %v8011_v35  ;;  %v8071_v35 = vld [vmem:[#allocation5 + $0x4d0] sm:$0xff]  }
  0xd5   :  { %7501 = vmatpush3.bf16.msra.mxu1 %v8012_v36  ;;  %v8072_v36 = vld [vmem:[#allocation5 + $0x510] sm:$0xff]  }
  0xd6   :  { %6856 = vmatpush3.bf16.msra.mxu0 %v8013_v37  ;;  %7502 = vmatprep.subr.bf16.mxu1 %v8600_v0  ;;  %v8073_v37 = vld [vmem:[#allocation5 + $0x490] sm:$0xff]  }
  0xd7   :  { %6857 = vmatprep.subr.bf16.mxu0 %v8014_v38  ;;  %v8074_v38 = vld [vmem:[#allocation5 + $0x4d8] sm:$0xff]  }
  0xd9   :  { %7503 = vmatpush3.bf16.msra.mxu1 %v8015_v39  ;;  %v8075_v39 = vld [vmem:[#allocation5 + $0x518] sm:$0xff]  }
  0xda   :  { %6858 = vmatpush3.bf16.msra.mxu0 %v8016_v40  ;;  %7508 = vmatprep.subr.bf16.mxu1 %v8600_v0  ;;  %v8076_v40 = vld [vmem:[#allocation5 + $0x498] sm:$0xff]  }
  0xdb   :  { %6874 = vmatprep.subr.bf16.mxu0 %v8017_v41  ;;  %v8077_v41 = vld [vmem:[#allocation5 + $0x4e0] sm:$0xff]  }
  0xdc   :  { %7505 = vmatmul.mubr.bf16.vlgmr.msra.gmra.mrb[12].mxu1 %v8706_v28  ;;  %v8025_v28 = vld [vmem:[#allocation5 + $0x310] sm:$0xff]  }
  0xdd   :  { %1143 = vmatmul.mubr.bf16.vlgmr.msra.gmra.mrb[12].mxu0 %v8708_v29  ;;  %7509 = vmatpush3.bf16.msra.mxu1 %v8018_v42  ;;  %v8078_v42 = vld [vmem:[#allocation5 + $0x520] sm:$0xff]  }
  0xde   :  { %6875 = vmatpush3.bf16.msra.mxu0 %v8019_v43  ;;  %7510 = vmatprep.subr.bf16.mxu1 %v8600_v0  ;;  %v8079_v43 = vld [vmem:[#allocation5 + $0x4a0] sm:$0xff]  }
  0xdf   :  { %6876 = vmatprep.subr.bf16.mxu0 %v8020_v44  ;;  %1416 = vmatprep.mubr.bf16.mxu0 %v8702_v24  ;;  %v8080_v44 = vld [vmem:[#allocation5 + $0x4e8] sm:$0xff]  }
  0xe0   :  { %7524 = vmatprep.mubr.msk.bf16.mxu1 %vm8601_vm0, %v8600_v0 }
  0xe1   :  { %7511 = vmatpush3.bf16.msra.mxu1 %v8021_v45  ;;  %v8081_v45 = vld [vmem:[#allocation5 + $0x528] sm:$0xff]  }
  0xe2   :  { %6877 = vmatpush3.bf16.msra.mxu0 %v8022_v46  ;;  %7512 = vmatprep.subr.bf16.mxu1 %v8600_v0  ;;  %v8082_v46 = vld [vmem:[#allocation5 + $0x4a8] sm:$0xff]  }
  0xe3   :  { %6878 = vmatprep.subr.bf16.mxu0 %v8023_v47  ;;  %v8083_v47 = vld [vmem:[#allocation5 + $0x4f0] sm:$0xff]  }
  0xe5   :  { %7513 = vmatpush3.bf16.msra.mxu1 %v8024_v48  ;;  %v8084_v48 = vld [vmem:[#allocation5 + $0x530] sm:$0xff]  }
  0xe6   :  { %6879 = vmatpush3.bf16.msra.mxu0 %v8025_v28  ;;  %7514 = vmatprep.subr.bf16.mxu1 %v8600_v0  ;;  %v8085_v28 = vld [vmem:[#allocation5 + $0x4b0] sm:$0xff]  }
  0xe7   :  { %6880 = vmatprep.subr.bf16.mxu0 %v8026_v49  ;;  %v8086_v49 = vld [vmem:[#allocation5 + $0x4f8] sm:$0xff]  }
  0xe9   :  { %7515 = vmatpush3.bf16.msra.mxu1 %v8027_v50  ;;  %v8087_v50 = vld [vmem:[#allocation5 + $0x538] sm:$0xff]  }
  0xea   :  { %6881 = vmatpush3.bf16.msra.mxu0 %v8028_v51  ;;  %7516 = vmatprep.subr.bf16.mxu1 %v8600_v0  ;;  %v8088_v51 = vld [vmem:[#allocation5 + $0x4b8] sm:$0xff]  }
  0xeb   :  { %6882 = vmatprep.subr.bf16.mxu0 %v8029_v52  ;;  %v8089_v52 = vld [vmem:[#allocation5 + $0x580] sm:$0xff]  }
  0xed   :  { %7517 = vmatpush3.bf16.msra.mxu1 %v8030_v53  ;;  %v8090_v53 = vld [vmem:[#allocation5 + $0x5c0] sm:$0xff]  }
  0xee   :  { %6883 = vmatpush3.bf16.msra.mxu0 %v8031_v54  ;;  %7518 = vmatprep.subr.bf16.mxu1 %v8600_v0  ;;  %v8091_v54 = vld [vmem:[#allocation5 + $0x540] sm:$0xff]  }
  0xef   :  { %6884 = vmatprep.subr.bf16.mxu0 %v8032_v55  ;;  %v8092_v55 = vld [vmem:[#allocation5 + $0x588] sm:$0xff]  }
  0xf1   :  { %7519 = vmatpush3.bf16.msra.mxu1 %v8033_v56  ;;  %v8093_v56 = vld [vmem:[#allocation5 + $0x5c8] sm:$0xff]  }
  0xf2   :  { %6885 = vmatpush3.bf16.msra.mxu0 %v8034_v57  ;;  %7520 = vmatprep.subr.bf16.mxu1 %v8600_v0  ;;  %v8094_v57 = vld [vmem:[#allocation5 + $0x548] sm:$0xff]  }
  0xf3   :  { %6886 = vmatprep.subr.bf16.mxu0 %v8035_v58  ;;  %v8095_v58 = vld [vmem:[#allocation5 + $0x590] sm:$0xff]  }
  0xf5   :  { %7521 = vmatpush3.bf16.msra.mxu1 %v8036_v59  ;;  %v8096_v59 = vld [vmem:[#allocation5 + $0x5d0] sm:$0xff]  }
  0xf6   :  { %6887 = vmatpush3.bf16.msra.mxu0 %v8037_v60  ;;  %7522 = vmatprep.subr.bf16.mxu1 %v8600_v0  ;;  %v8097_v60 = vld [vmem:[#allocation5 + $0x550] sm:$0xff]  }
  0xf7   :  { %6888 = vmatprep.subr.bf16.mxu0 %v8038_v61  ;;  %v8098_v61 = vld [vmem:[#allocation5 + $0x598] sm:$0xff]  }
  0xf9   :  { %7523 = vmatpush3.bf16.msra.mxu1 %v8039_v62  ;;  %v8099_v62 = vld [vmem:[#allocation5 + $0x5d8] sm:$0xff]  }
  0xfa   :  { %6889 = vmatpush3.bf16.msra.mxu0 %v8040_v63  ;;  %7528 = vmatprep.subr.bf16.mxu1 %v8600_v0  ;;  %v8100_v63 = vld [vmem:[#allocation5 + $0x558] sm:$0xff]  }
  0xfb   :  { %6905 = vmatprep.subr.bf16.mxu0 %v8041_v1  ;;  %v8101_v1 = vld [vmem:[#allocation5 + $0x5a0] sm:$0xff]  }
  0xfc   :  { %7525 = vmatmul.mubr.bf16.vlgmr.msra.gmra.mrb[16].mxu1 %v8763_v5 }
  0xfd   :  { %1417 = vmatmul.mubr.bf16.vlgmr.msra.gmra.mrb[16].mxu0 %v8708_v29  ;;  %7529 = vmatpush3.bf16.msra.mxu1 %v8042_v2  ;;  %v8102_v2 = vld [vmem:[#allocation5 + $0x5e0] sm:$0xff]  }
  0xfe   :  { %6906 = vmatpush3.bf16.msra.mxu0 %v8043_v3  ;;  %7530 = vmatprep.subr.bf16.mxu1 %v8600_v0  ;;  %v8103_v3 = vld [vmem:[#allocation5 + $0x560] sm:$0xff]  }
  0xff   :  { %6907 = vmatprep.subr.bf16.mxu0 %v8044_v4  ;;  %1690 = vmatprep.mubr.bf16.mxu0 %v8702_v24  ;;  %v8104_v4 = vld [vmem:[#allocation5 + $0x5a8] sm:$0xff]  }
 0x100   :  { %7544 = vmatprep.mubr.msk.bf16.mxu1 %vm8601_vm0, %v8600_v0 }
 0x101   :  { %7531 = vmatpush3.bf16.msra.mxu1 %v8045_v6  ;;  %v8105_v6 = vld [vmem:[#allocation5 + $0x5e8] sm:$0xff]  }
 0x102   :  { %6908 = vmatpush3.bf16.msra.mxu0 %v8046_v7  ;;  %7532 = vmatprep.subr.bf16.mxu1 %v8600_v0  ;;  %v8106_v7 = vld [vmem:[#allocation5 + $0x568] sm:$0xff]  }
 0x103   :  { %6909 = vmatprep.subr.bf16.mxu0 %v8047_v8 }
 0x105   :  { %7533 = vmatpush3.bf16.msra.mxu1 %v8048_v9  ;;  %v8107_v9 = vld [vmem:[#allocation5 + $0x5b0] sm:$0xff]  }
 0x106   :  { %6910 = vmatpush3.bf16.msra.mxu0 %v8049_v10  ;;  %7534 = vmatprep.subr.bf16.mxu1 %v8600_v0 }
 0x107   :  { %6911 = vmatprep.subr.bf16.mxu0 %v8050_v11 }
 0x109   :  { %7535 = vmatpush3.bf16.msra.mxu1 %v8051_v12 }
 0x10a   :  { %6912 = vmatpush3.bf16.msra.mxu0 %v8052_v13  ;;  %7536 = vmatprep.subr.bf16.mxu1 %v8600_v0 }
 0x10b   :  { %6913 = vmatprep.subr.bf16.mxu0 %v8053_v14  ;;  %v8108_v14 = vld [vmem:[#allocation5 + $0x5f0] sm:$0xff]  }
 0x10d   :  { %7537 = vmatpush3.bf16.msra.mxu1 %v8054_v15  ;;  %v8109_v15 = vld [vmem:[#allocation5 + $0x570] sm:$0xff]  }
 0x10e   :  { %6914 = vmatpush3.bf16.msra.mxu0 %v8055_v16  ;;  %7538 = vmatprep.subr.bf16.mxu1 %v8600_v0 }
 0x10f   :  { %6915 = vmatprep.subr.bf16.mxu0 %v8056_v17 }
 0x111   :  { %7539 = vmatpush3.bf16.msra.mxu1 %v8057_v18 }
 0x112   :  { %6916 = vmatpush3.bf16.msra.mxu0 %v8058_v19  ;;  %7540 = vmatprep.subr.bf16.mxu1 %v8600_v0 }
 0x113   :  { %6917 = vmatprep.subr.bf16.mxu0 %v8059_v20  ;;  %v8110_v20 = vld [vmem:[#allocation5 + $0x5b8] sm:$0xff]  }
 0x115   :  { %7541 = vmatpush3.bf16.msra.mxu1 %v8060_v21 }
 0x116   :  { %6918 = vmatpush3.bf16.msra.mxu0 %v8061_v22  ;;  %7542 = vmatprep.subr.bf16.mxu1 %v8600_v0  ;;  %v8111_v22 = vld [vmem:[#allocation5 + $0x5f8] sm:$0xff]  }
 0x117   :  { %6919 = vmatprep.subr.bf16.mxu0 %v8062_v23  ;;  %v8112_v23 = vld [vmem:[#allocation5 + $0x578] sm:$0xff]  }
 0x119   :  { %7543 = vmatpush3.bf16.msra.mxu1 %v8063_v25  ;;  %v8113_v25 = vld [vmem:[#allocation5 + $0x640] sm:$0xff]  }
 0x11a   :  { %6920 = vmatpush3.bf16.msra.mxu0 %v8064_v26  ;;  %7548 = vmatprep.subr.bf16.mxu1 %v8600_v0  ;;  %v8114_v26 = vld [vmem:[#allocation5 + $0x680] sm:$0xff]  }
 0x11b   :  { %6936 = vmatprep.subr.bf16.mxu0 %v8065_v27  ;;  %v8115_v27 = vld [vmem:[#allocation5 + $0x600] sm:$0xff]  }
 0x11c   :  { %7545 = vmatmul.mubr.bf16.vlgmr.msra.gmra.mrb[20].mxu1 %v8763_v5 }
 0x11d   :  { %1691 = vmatmul.mubr.bf16.vlgmr.msra.gmra.mrb[20].mxu0 %v8708_v29  ;;  %7549 = vmatpush3.bf16.msra.mxu1 %v8066_v30  ;;  %v8116_v30 = vld [vmem:[#allocation5 + $0x648] sm:$0xff]  }
 0x11e   :  { %6937 = vmatpush3.bf16.msra.mxu0 %v8067_v31  ;;  %7550 = vmatprep.subr.bf16.mxu1 %v8600_v0  ;;  %v8117_v31 = vld [vmem:[#allocation5 + $0x688] sm:$0xff]  }
 0x11f   :  { %6938 = vmatprep.subr.bf16.mxu0 %v8068_v32  ;;  %1964 = vmatprep.mubr.bf16.mxu0 %v8702_v24  ;;  %v8118_v32 = vld [vmem:[#allocation5 + $0x608] sm:$0xff]  }
 0x120   :  { %7564 = vmatprep.mubr.msk.bf16.mxu1 %vm8601_vm0, %v8600_v0 }
 0x121   :  { %7551 = vmatpush3.bf16.msra.mxu1 %v8069_v33  ;;  %v8119_v33 = vld [vmem:[#allocation5 + $0x650] sm:$0xff]  }
 0x122   :  { %6939 = vmatpush3.bf16.msra.mxu0 %v8070_v34  ;;  %7552 = vmatprep.subr.bf16.mxu1 %v8600_v0  ;;  %v8120_v34 = vld [vmem:[#allocation5 + $0x690] sm:$0xff]  }
 0x123   :  { %6940 = vmatprep.subr.bf16.mxu0 %v8071_v35  ;;  %v8122_v35 = vld [vmem:[#allocation5 + $0x658] sm:$0xff]  }
 0x125   :  { %7553 = vmatpush3.bf16.msra.mxu1 %v8072_v36  ;;  %v8123_v36 = vld [vmem:[#allocation5 + $0x698] sm:$0xff]  }
 0x126   :  { %6941 = vmatpush3.bf16.msra.mxu0 %v8073_v37  ;;  %7554 = vmatprep.subr.bf16.mxu1 %v8600_v0  ;;  %v8124_v37 = vld [vmem:[#allocation5 + $0x618] sm:$0xff]  }
 0x127   :  { %6942 = vmatprep.subr.bf16.mxu0 %v8074_v38  ;;  %v8125_v38 = vld [vmem:[#allocation5 + $0x660] sm:$0xff]  }
 0x129   :  { %7555 = vmatpush3.bf16.msra.mxu1 %v8075_v39  ;;  %v8126_v39 = vld [vmem:[#allocation5 + $0x6a0] sm:$0xff]  }
 0x12a   :  { %6943 = vmatpush3.bf16.msra.mxu0 %v8076_v40  ;;  %7556 = vmatprep.subr.bf16.mxu1 %v8600_v0  ;;  %v8127_v40 = vld [vmem:[#allocation5 + $0x620] sm:$0xff]  }
 0x12b   :  { %6944 = vmatprep.subr.bf16.mxu0 %v8077_v41  ;;  %v8128_v41 = vld [vmem:[#allocation5 + $0x668] sm:$0xff]  }
 0x12d   :  { %7557 = vmatpush3.bf16.msra.mxu1 %v8078_v42  ;;  %v8129_v42 = vld [vmem:[#allocation5 + $0x6a8] sm:$0xff]  }
 0x12e   :  { %6945 = vmatpush3.bf16.msra.mxu0 %v8079_v43  ;;  %7558 = vmatprep.subr.bf16.mxu1 %v8600_v0  ;;  %v8130_v43 = vld [vmem:[#allocation5 + $0x628] sm:$0xff]  }
 0x12f   :  { %6946 = vmatprep.subr.bf16.mxu0 %v8080_v44 }
 0x131   :  { %7559 = vmatpush3.bf16.msra.mxu1 %v8081_v45  ;;  %v8131_v45 = vld [vmem:[#allocation5 + $0x670] sm:$0xff]  }
 0x132   :  { %6947 = vmatpush3.bf16.msra.mxu0 %v8082_v46  ;;  %7560 = vmatprep.subr.bf16.mxu1 %v8600_v0 }
 0x133   :  { %6948 = vmatprep.subr.bf16.mxu0 %v8083_v47 }
 0x135   :  { %7561 = vmatpush3.bf16.msra.mxu1 %v8084_v48  ;;  %v8132_v48 = vld [vmem:[#allocation5 + $0x6b0] sm:$0xff]  }
 0x136   :  { %6949 = vmatpush3.bf16.msra.mxu0 %v8085_v28  ;;  %7562 = vmatprep.subr.bf16.mxu1 %v8600_v0  ;;  %v8133_v28 = vld [vmem:[#allocation5 + $0x630] sm:$0xff]  }
 0x137   :  { %6950 = vmatprep.subr.bf16.mxu0 %v8086_v49 }
 0x139   :  { %7563 = vmatpush3.bf16.msra.mxu1 %v8087_v50 }
 0x13a   :  { %6951 = vmatpush3.bf16.msra.mxu0 %v8088_v51  ;;  %7568 = vmatprep.subr.bf16.mxu1 %v8600_v0 }
 0x13b   :  { %6967 = vmatprep.subr.bf16.mxu0 %v8089_v52 }
 0x13c   :  { %7565 = vmatmul.mubr.bf16.vlgmr.msra.gmra.mrb[24].mxu1 %v8763_v5 }
 0x13d   :  { %1965 = vmatmul.mubr.bf16.vlgmr.msra.gmra.mrb[24].mxu0 %v8708_v29  ;;  %7569 = vmatpush3.bf16.msra.mxu1 %v8090_v53 }
 0x13e   :  { %6968 = vmatpush3.bf16.msra.mxu0 %v8091_v54  ;;  %7570 = vmatprep.subr.bf16.mxu1 %v8600_v0 }
 0x13f   :  { %6969 = vmatprep.subr.bf16.mxu0 %v8092_v55  ;;  %2238 = vmatprep.mubr.bf16.mxu0 %v8702_v24  ;;  %v8134_v55 = vld [vmem:[#allocation5 + $0x678] sm:$0xff]  }
 0x140   :  { %7584 = vmatprep.mubr.msk.bf16.mxu1 %vm8601_vm0, %v8600_v0 }
 0x141   :  { %7571 = vmatpush3.bf16.msra.mxu1 %v8093_v56 }
 0x142   :  { %6970 = vmatpush3.bf16.msra.mxu0 %v8094_v57  ;;  %7572 = vmatprep.subr.bf16.mxu1 %v8600_v0  ;;  %v8135_v57 = vld [vmem:[#allocation5 + $0x6b8] sm:$0xff]  }
 0x143   :  { %6971 = vmatprep.subr.bf16.mxu0 %v8095_v58 }
 0x145   :  { %7573 = vmatpush3.bf16.msra.mxu1 %v8096_v59  ;;  %v8136_v59 = vld [vmem:[#allocation5 + $0x638] sm:$0xff]  }
 0x146   :  { %6972 = vmatpush3.bf16.msra.mxu0 %v8097_v60  ;;  %7574 = vmatprep.subr.bf16.mxu1 %v8600_v0  ;;  %v8137_v60 = vld [vmem:[#allocation5 + $0x700] sm:$0xff]  }
 0x147   :  { %6973 = vmatprep.subr.bf16.mxu0 %v8098_v61  ;;  %v8138_v61 = vld [vmem:[#allocation5 + $0x740] sm:$0xff]  }
 0x149   :  { %7575 = vmatpush3.bf16.msra.mxu1 %v8099_v62  ;;  %v8139_v62 = vld [vmem:[#allocation5 + $0x6c0] sm:$0xff]  }
 0x14a   :  { %6974 = vmatpush3.bf16.msra.mxu0 %v8100_v63  ;;  %7576 = vmatprep.subr.bf16.mxu1 %v8600_v0  ;;  %v8140_v63 = vld [vmem:[#allocation5 + $0x708] sm:$0xff]  }
 0x14b   :  { %6975 = vmatprep.subr.bf16.mxu0 %v8101_v1  ;;  %v8823_v1 = vld [vmem:[#allocation2 + $0x8] ss:$0 sps:$4 sm:$0xff]  }
 0x14d   :  { %7577 = vmatpush3.bf16.msra.mxu1 %v8102_v2  ;;  %v8141_v2 = vld [vmem:[#allocation5 + $0x748] sm:$0xff]  }
 0x14e   :  { %6976 = vmatpush3.bf16.msra.mxu0 %v8103_v3  ;;  %7578 = vmatprep.subr.bf16.mxu1 %v8600_v0  ;;  %v8142_v3 = vld [vmem:[#allocation5 + $0x6c8] sm:$0xff]  }
 0x14f   :  { %v363_v8 = vpop.f32.mrb[0].mxu1  ;;  %6977 = vmatprep.subr.bf16.mxu0 %v8104_v4  ;;  %v8143_v4 = vld [vmem:[#allocation5 + $0x710] sm:$0xff]  }
 0x150   :  { %v6766_v10 = vpop.f32.mrb[0].mxu0  ;;  %v7446_v11 = vpop.f32.mrb[1].mxu1 }
 0x151   :  { %v6767_v12 = vpop.f32.mrb[1].mxu0  ;;  %7579 = vmatpush3.bf16.msra.mxu1 %v8105_v6  ;;  %v366_v13 = vpop.f32.mrb[2].mxu1  ;;  %v8144_v6 = vld [vmem:[#allocation5 + $0x750] sm:$0xff]   ;;  %v8149_v11 = vld [vmem:[#allocation5 + $0x720] sm:$0xff]  }
 0x152   :  { %v6768_v16 = vadd.f32 %v6767_v12, %v6766_v10  ;;  %v6769_v17 = vpop.f32.mrb[2].mxu0  ;;  %6978 = vmatpush3.bf16.msra.mxu0 %v8106_v7  ;;  %v7447_v18 = vpop.f32.mrb[3].mxu1  ;;  %7580 = vmatprep.subr.bf16.mxu1 %v8600_v0  ;;  %v8145_v7 = vld [vmem:[#allocation5 + $0x6d0] sm:$0xff]   ;;  %v8148_v10 = vld [vmem:[#allocation5 + $0x6d8] sm:$0xff]   ;;  %v8150_v12 = vld [vmem:[#allocation5 + $0x760] sm:$0xff]  }
 0x153   :  { %v6770_v19 = vpop.f32.mrb[3].mxu0  ;;  %6979 = vmatprep.subr.bf16.mxu0 %v8107_v9  ;;  %v8147_v9 = vld [vmem:[#allocation5 + $0x758] sm:$0xff]   ;;  %v8151_v13 = vld [vmem:[#allocation5 + $0x6e0] sm:$0xff]   ;;  %v8155_v18 = vld [vmem:[#allocation5 + $0x730] sm:$0xff]  }
 0x154   :  { %v8802_v21 = vadd.f32 %v6768_v16, %v363_v8  ;;  %v8146_v8 = vld [vmem:[#allocation5 + $0x718] sm:$0xff]   ;;  %v8154_v16 = vld [vmem:[#allocation5 + $0x6e8] sm:$0xff]  }
 0x155   :  { %7581 = vmatpush3.bf16.msra.mxu1 %v8108_v14  ;;  %v8152_v14 = vld [vmem:[#allocation5 + $0x728] sm:$0xff]  }
 0x156   :  { %6980 = vmatpush3.bf16.msra.mxu0 %v8109_v15  ;;  %7582 = vmatprep.subr.bf16.mxu1 %v8600_v0  ;;  %v8153_v15 = vld [vmem:[#allocation5 + $0x768] sm:$0xff]  }
 0x157   :  { %6981 = vmatprep.subr.bf16.mxu0 %v8110_v20 }
 0x159   :  { %7583 = vmatpush3.bf16.msra.mxu1 %v8111_v22  ;;  %v8156_v22 = vld [vmem:[#allocation5 + $0x770] sm:$0xff]  }
 0x15a   :  { %6982 = vmatpush3.bf16.msra.mxu0 %v8112_v23  ;;  %7588 = vmatprep.subr.bf16.mxu1 %v8600_v0 }
 0x15b   :  { %6998 = vmatprep.subr.bf16.mxu0 %v8113_v25 }
 0x15c   :  { %7585 = vmatmul.mubr.bf16.vlgmr.msra.gmra.mrb[28].mxu1 %v8763_v5  ;;  %v8121_v5 = vld [vmem:[#allocation5 + $0x610] sm:$0xff]  }
 0x15d   :  { %2239 = vmatmul.mubr.bf16.vlgmr.msra.gmra.mrb[28].mxu0 %v8708_v29  ;;  %7589 = vmatpush3.bf16.msra.mxu1 %v8114_v26 }
 0x15e   :  { %6999 = vmatpush3.bf16.msra.mxu0 %v8115_v27  ;;  %7590 = vmatprep.subr.bf16.mxu1 %v8600_v0 }
 0x15f   :  { %7000 = vmatprep.subr.bf16.mxu0 %v8116_v30  ;;  %2537 = vmatprep.mubr.bf16.mxu0 %v8702_v24 }
 0x160   :  { %7604 = vmatprep.mubr.msk.bf16.mxu1 %vm8601_vm0, %v8600_v0 }
 0x161   :  { %7591 = vmatpush3.bf16.msra.mxu1 %v8117_v31  ;;  %v8157_v31 = vld [vmem:[#allocation5 + $0x6f0] sm:$0xff]  }
 0x162   :  { %7001 = vmatpush3.bf16.msra.mxu0 %v8118_v32  ;;  %7592 = vmatprep.subr.bf16.mxu1 %v8600_v0 }
 0x163   :  { %7002 = vmatprep.subr.bf16.mxu0 %v8119_v33  ;;  %v8158_v33 = vld [vmem:[#allocation5 + $0x738] sm:$0xff]  }
 0x165   :  { %7593 = vmatpush3.bf16.msra.mxu1 %v8120_v34 }
 0x166   :  { %7003 = vmatpush3.bf16.msra.mxu0 %v8121_v5  ;;  %7594 = vmatprep.subr.bf16.mxu1 %v8600_v0  ;;  %v8159_v5 = vld [vmem:[#allocation5 + $0x778] sm:$0xff]  }
 0x167   :  { %7004 = vmatprep.subr.bf16.mxu0 %v8122_v35 }
 0x169   :  { %7595 = vmatpush3.bf16.msra.mxu1 %v8123_v36  ;;  %v8160_v36 = vld [vmem:[#allocation5 + $0x6f8] sm:$0xff]  }
 0x16a   :  { %7005 = vmatpush3.bf16.msra.mxu0 %v8124_v37  ;;  %7596 = vmatprep.subr.bf16.mxu1 %v8600_v0  ;;  %v8161_v37 = vld [vmem:[#allocation5 + $0x7c0] sm:$0xff]  }
 0x16b   :  { %7006 = vmatprep.subr.bf16.mxu0 %v8125_v38  ;;  %v8162_v38 = vld [vmem:[#allocation5 + $0x800] sm:$0xff]  }
 0x16d   :  { %7597 = vmatpush3.bf16.msra.mxu1 %v8126_v39  ;;  %v8163_v39 = vld [vmem:[#allocation5 + $0x780] sm:$0xff]  }
 0x16e   :  { %7007 = vmatpush3.bf16.msra.mxu0 %v8127_v40  ;;  %7598 = vmatprep.subr.bf16.mxu1 %v8600_v0  ;;  %v8164_v40 = vld [vmem:[#allocation5 + $0x7c8] sm:$0xff]  }
 0x16f   :  { %v636_v44 = vpop.f32.mrb[4].mxu1  ;;  %7008 = vmatprep.subr.bf16.mxu0 %v8128_v41  ;;  %v8166_v41 = vld [vmem:[#allocation5 + $0x788] sm:$0xff]  }
 0x170   :  { %v6797_v46 = vpop.f32.mrb[4].mxu0  ;;  %v7466_v47 = vpop.f32.mrb[5].mxu1 }
 0x171   :  { %v6798_v49 = vpop.f32.mrb[5].mxu0  ;;  %7599 = vmatpush3.bf16.msra.mxu1 %v8129_v42  ;;  %v639_v50 = vpop.f32.mrb[6].mxu1  ;;  %v8167_v42 = vld [vmem:[#allocation5 + $0x7d0] sm:$0xff]   ;;  %v8172_v47 = vld [vmem:[#allocation5 + $0x798] sm:$0xff]  }
 0x172   :  { %v6799_v51 = vadd.f32 %v6798_v49, %v6797_v46  ;;  %v6800_v52 = vpop.f32.mrb[6].mxu0  ;;  %7009 = vmatpush3.bf16.msra.mxu0 %v8130_v43  ;;  %v7467_v53 = vpop.f32.mrb[7].mxu1  ;;  %7600 = vmatprep.subr.bf16.mxu1 %v8600_v0  ;;  %v8168_v43 = vld [vmem:[#allocation5 + $0x810] sm:$0xff]   ;;  %v8171_v46 = vld [vmem:[#allocation5 + $0x818] sm:$0xff]   ;;  %v8175_v49 = vld [vmem:[#allocation5 + $0x7a0] sm:$0xff]  }
 0x173   :  { %v6801_v54 = vpop.f32.mrb[7].mxu0  ;;  %7010 = vmatprep.subr.bf16.mxu0 %v8131_v45  ;;  %v8170_v45 = vld [vmem:[#allocation5 + $0x7d8] sm:$0xff]   ;;  %v8176_v50 = vld [vmem:[#allocation5 + $0x7e8] sm:$0xff]  }
 0x174   :  { %v8817_v56 = vadd.f32 %v6799_v51, %v636_v44  ;;  %v8169_v44 = vld [vmem:[#allocation5 + $0x790] sm:$0xff]   ;;  %v8177_v51 = vld [vmem:[#allocation5 + $0x828] sm:$0xff]  }
 0x175   :  { %7601 = vmatpush3.bf16.msra.mxu1 %v8132_v48  ;;  %v8173_v48 = vld [vmem:[#allocation5 + $0x7e0] sm:$0xff]   ;;  %v8178_v52 = vld [vmem:[#allocation5 + $0x7a8] sm:$0xff]   ;;  %v8179_v54 = vld [vmem:[#allocation5 + $0x7f0] sm:$0xff]  }
 0x176   :  { %v642_v58 = vmax.f32 %v8802_v21, %v8817_v56  ;;  %7011 = vmatpush3.bf16.msra.mxu0 %v8133_v28  ;;  %7602 = vmatprep.subr.bf16.mxu1 %v8600_v0  ;;  %v8165_v21 = vld [vmem:[#allocation5 + $0x808] sm:$0xff]   ;;  %v8174_v28 = vld [vmem:[#allocation5 + $0x820] sm:$0xff]  }
 0x177   :  { %7012 = vmatprep.subr.bf16.mxu0 %v8134_v55 }
 0x179   :  { %7603 = vmatpush3.bf16.msra.mxu1 %v8135_v57  ;;  %v8180_v57 = vld [vmem:[#allocation5 + $0x830] sm:$0xff]  }
 0x17a   :  { %7013 = vmatpush3.bf16.msra.mxu0 %v8136_v59  ;;  %7608 = vmatprep.subr.bf16.mxu1 %v8600_v0 }
 0x17b   :  { %7029 = vmatprep.subr.bf16.mxu0 %v8137_v60 }
 0x17c   :  { %7605 = vmatmul.mubr.bf16.vlgmr.msra.gmra.mrb[32].mxu1 %v8823_v1 }
 0x17d   :  { %2538 = vmatmul.mubr.bf16.vlgmr.msra.gmra.mrb[32].mxu0 %v8708_v29  ;;  %7609 = vmatpush3.bf16.msra.mxu1 %v8138_v61 }
 0x17e   :  { %7030 = vmatpush3.bf16.msra.mxu0 %v8139_v62  ;;  %7610 = vmatprep.subr.bf16.mxu1 %v8600_v0 }
 0x17f   :  { %7031 = vmatprep.subr.bf16.mxu0 %v8140_v63  ;;  %2810 = vmatprep.mubr.bf16.mxu0 %v8702_v24 }
 0x180   :  { %7624 = vmatprep.mubr.msk.bf16.mxu1 %vm8601_vm0, %v8600_v0 }
 0x181   :  { %7611 = vmatpush3.bf16.msra.mxu1 %v8141_v2 }
 0x182   :  { %7032 = vmatpush3.bf16.msra.mxu0 %v8142_v3  ;;  %7612 = vmatprep.subr.bf16.mxu1 %v8600_v0  ;;  %v8182_v3 = vld [vmem:[#allocation5 + $0x7f8] sm:$0xff]  }
 0x183   :  { %7033 = vmatprep.subr.bf16.mxu0 %v8143_v4 }
 0x185   :  { %7613 = vmatpush3.bf16.msra.mxu1 %v8144_v6  ;;  %v8183_v6 = vld [vmem:[#allocation5 + $0x838] sm:$0xff]  }
 0x186   :  { %7034 = vmatpush3.bf16.msra.mxu0 %v8145_v7  ;;  %7614 = vmatprep.subr.bf16.mxu1 %v8600_v0 }
 0x187   :  { %7035 = vmatprep.subr.bf16.mxu0 %v8146_v8  ;;  %v8184_v8 = vld [vmem:[#allocation5 + $0x7b8] sm:$0xff]  }
 0x189   :  { %7615 = vmatpush3.bf16.msra.mxu1 %v8147_v9  ;;  %v8185_v9 = vld [vmem:[#allocation5 + $0x880] sm:$0xff]  }
 0x18a   :  { %7036 = vmatpush3.bf16.msra.mxu0 %v8148_v10  ;;  %7616 = vmatprep.subr.bf16.mxu1 %v8600_v0  ;;  %v8186_v10 = vld [vmem:[#allocation5 + $0x8c0] sm:$0xff]  }
 0x18b   :  { %7037 = vmatprep.subr.bf16.mxu0 %v8149_v11  ;;  %v8187_v11 = vld [vmem:[#allocation5 + $0x840] sm:$0xff]  }
 0x18d   :  { %7617 = vmatpush3.bf16.msra.mxu1 %v8150_v12  ;;  %v8188_v12 = vld [vmem:[#allocation5 + $0x888] sm:$0xff]  }
 0x18e   :  { %7038 = vmatpush3.bf16.msra.mxu0 %v8151_v13  ;;  %7618 = vmatprep.subr.bf16.mxu1 %v8600_v0  ;;  %v8189_v13 = vld [vmem:[#allocation5 + $0x8c8] sm:$0xff]  }
 0x18f   :  { %v910_v17 = vpop.f32.mrb[8].mxu1  ;;  %7039 = vmatprep.subr.bf16.mxu0 %v8152_v14  ;;  %v8190_v14 = vld [vmem:[#allocation5 + $0x848] sm:$0xff]  }
 0x190   :  { %v6828_v19 = vpop.f32.mrb[8].mxu0  ;;  %v7486_v20 = vpop.f32.mrb[9].mxu1 }
 0x191   :  { %v6829_v23 = vpop.f32.mrb[9].mxu0  ;;  %7619 = vmatpush3.bf16.msra.mxu1 %v8153_v15  ;;  %v913_v25 = vpop.f32.mrb[10].mxu1  ;;  %v8191_v15 = vld [vmem:[#allocation5 + $0x890] sm:$0xff]   ;;  %v8196_v20 = vld [vmem:[#allocation5 + $0x858] sm:$0xff]  }
 0x192   :  { %v6830_v26 = vadd.f32 %v6829_v23, %v6828_v19  ;;  %v6831_v27 = vpop.f32.mrb[10].mxu0  ;;  %7040 = vmatpush3.bf16.msra.mxu0 %v8154_v16  ;;  %v7487_v30 = vpop.f32.mrb[11].mxu1  ;;  %7620 = vmatprep.subr.bf16.mxu1 %v8600_v0  ;;  %v8192_v16 = vld [vmem:[#allocation5 + $0x8d0] sm:$0xff]   ;;  %v8195_v19 = vld [vmem:[#allocation5 + $0x8d8] sm:$0xff]   ;;  %v8198_v23 = vld [vmem:[#allocation5 + $0x8e0] sm:$0xff]  }
 0x193   :  { %v6832_v32 = vpop.f32.mrb[11].mxu0  ;;  %7041 = vmatprep.subr.bf16.mxu0 %v8155_v18  ;;  %v8194_v18 = vld [vmem:[#allocation5 + $0x898] sm:$0xff]   ;;  %v8199_v25 = vld [vmem:[#allocation5 + $0x860] sm:$0xff]   ;;  %v8201_v27 = vld [vmem:[#allocation5 + $0x8e8] sm:$0xff]  }
 0x194   :  { %v911_v34 = vadd.f32 %v6830_v26, %v910_v17  ;;  %v8193_v17 = vld [vmem:[#allocation5 + $0x850] sm:$0xff]   ;;  %v8200_v26 = vld [vmem:[#allocation5 + $0x8a8] sm:$0xff]  }
 0x195   :  { %7621 = vmatpush3.bf16.msra.mxu1 %v8156_v22  ;;  %v8197_v22 = vld [vmem:[#allocation5 + $0x8a0] sm:$0xff]   ;;  %v8202_v30 = vld [vmem:[#allocation5 + $0x868] sm:$0xff]  }
 0x196   :  { %v8839_v35 = vmax.f32 %v642_v58, %v911_v34  ;;  %7042 = vmatpush3.bf16.msra.mxu0 %v8157_v31  ;;  %7622 = vmatprep.subr.bf16.mxu1 %v8600_v0  ;;  %v8181_v58 = vld [vmem:[#allocation5 + $0x7b0] sm:$0xff]  }
 0x197   :  { %7043 = vmatprep.subr.bf16.mxu0 %v8158_v33  ;;  %v8203_v31 = vld [vmem:[#allocation5 + $0x8b0] sm:$0xff]  }
 0x198   :  { %v8204_v33 = vld [vmem:[#allocation5 + $0x8f0] sm:$0xff]  }
 0x199   :  { %7623 = vmatpush3.bf16.msra.mxu1 %v8159_v5 }
 0x19a   :  { %7044 = vmatpush3.bf16.msra.mxu0 %v8160_v36  ;;  %7628 = vmatprep.subr.bf16.mxu1 %v8600_v0  ;;  %v8205_v36 = vld [vmem:[#allocation5 + $0x870] sm:$0xff]  }
 0x19b   :  { %7060 = vmatprep.subr.bf16.mxu0 %v8161_v37 }
 0x19c   :  { %7625 = vmatmul.mubr.bf16.vlgmr.msra.gmra.mrb[36].mxu1 %v8823_v1 }
 0x19d   :  { %2811 = vmatmul.mubr.bf16.vlgmr.msra.gmra.mrb[36].mxu0 %v8708_v29  ;;  %7629 = vmatpush3.bf16.msra.mxu1 %v8162_v38 }
 0x19e   :  { %7061 = vmatpush3.bf16.msra.mxu0 %v8163_v39  ;;  %7630 = vmatprep.subr.bf16.mxu1 %v8600_v0  ;;  %v8206_v39 = vld [vmem:[#allocation5 + $0x8b8] sm:$0xff]  }
 0x19f   :  { %7062 = vmatprep.subr.bf16.mxu0 %v8164_v40  ;;  %3084 = vmatprep.mubr.bf16.mxu0 %v8702_v24 }
 0x1a0   :  { %7644 = vmatprep.mubr.msk.bf16.mxu1 %vm8601_vm0, %v8600_v0 }
 0x1a1   :  { %7631 = vmatpush3.bf16.msra.mxu1 %v8165_v21 }
 0x1a2   :  { %7063 = vmatpush3.bf16.msra.mxu0 %v8166_v41  ;;  %7632 = vmatprep.subr.bf16.mxu1 %v8600_v0 }
 0x1a3   :  { %7064 = vmatprep.subr.bf16.mxu0 %v8167_v42 }
 0x1a5   :  { %7633 = vmatpush3.bf16.msra.mxu1 %v8168_v43  ;;  %v8207_v43 = vld [vmem:[#allocation5 + $0x8f8] sm:$0xff]  }
 0x1a6   :  { %7065 = vmatpush3.bf16.msra.mxu0 %v8169_v44  ;;  %7634 = vmatprep.subr.bf16.mxu1 %v8600_v0 }
 0x1a7   :  { %7066 = vmatprep.subr.bf16.mxu0 %v8170_v45  ;;  %v8208_v45 = vld [vmem:[#allocation5 + $0x878] sm:$0xff]  }
 0x1a9   :  { %7635 = vmatpush3.bf16.msra.mxu1 %v8171_v46 }
 0x1aa   :  { %7067 = vmatpush3.bf16.msra.mxu0 %v8172_v47  ;;  %7636 = vmatprep.subr.bf16.mxu1 %v8600_v0  ;;  %v8209_v47 = vld [vmem:[#allocation5 + $0x940] sm:$0xff]  }
 0x1ab   :  { %7068 = vmatprep.subr.bf16.mxu0 %v8173_v48  ;;  %v8210_v48 = vld [vmem:[#allocation5 + $0x980] sm:$0xff]  }
 0x1ad   :  { %7637 = vmatpush3.bf16.msra.mxu1 %v8174_v28  ;;  %v8211_v28 = vld [vmem:[#allocation5 + $0x900] sm:$0xff]  }
 0x1ae   :  { %7069 = vmatpush3.bf16.msra.mxu0 %v8175_v49  ;;  %7638 = vmatprep.subr.bf16.mxu1 %v8600_v0  ;;  %v8212_v49 = vld [vmem:[#allocation5 + $0x948] sm:$0xff]  }
 0x1af   :  { %v1184_v53 = vpop.f32.mrb[12].mxu1  ;;  %7070 = vmatprep.subr.bf16.mxu0 %v8176_v50  ;;  %v8213_v50 = vld [vmem:[#allocation5 + $0x988] sm:$0xff]  }
 0x1b0   :  { %v6859_v55 = vpop.f32.mrb[12].mxu0  ;;  %v7506_v56 = vpop.f32.mrb[13].mxu1 }
 0x1b1   :  { %v6860_v59 = vpop.f32.mrb[13].mxu0  ;;  %7639 = vmatpush3.bf16.msra.mxu1 %v8177_v51  ;;  %v1187_v60 = vpop.f32.mrb[14].mxu1  ;;  %v8214_v51 = vld [vmem:[#allocation5 + $0x908] sm:$0xff]   ;;  %v8221_v56 = vld [vmem:[#allocation5 + $0x960] sm:$0xff]  }
 0x1b2   :  { %v6861_v61 = vadd.f32 %v6860_v59, %v6859_v55  ;;  %v6862_v62 = vpop.f32.mrb[14].mxu0  ;;  %7071 = vmatpush3.bf16.msra.mxu0 %v8178_v52  ;;  %v7507_v63 = vpop.f32.mrb[15].mxu1  ;;  %7640 = vmatprep.subr.bf16.mxu1 %v8600_v0  ;;  %v8216_v52 = vld [vmem:[#allocation5 + $0x990] sm:$0xff]   ;;  %v8220_v55 = vld [vmem:[#allocation5 + $0x918] sm:$0xff]   ;;  %v8224_v59 = vld [vmem:[#allocation5 + $0x968] sm:$0xff]  }
 0x1b3   :  { %v6863_v2 = vpop.f32.mrb[15].mxu0  ;;  %7072 = vmatprep.subr.bf16.mxu0 %v8179_v54  ;;  %v8218_v54 = vld [vmem:[#allocation5 + $0x958] sm:$0xff]   ;;  %v8225_v60 = vld [vmem:[#allocation5 + $0x9a8] sm:$0xff]   ;;  %v8227_v62 = vld [vmem:[#allocation5 + $0x970] sm:$0xff]  }
 0x1b4   :  { %v8854_v4 = vadd.f32 %v6861_v61, %v1184_v53  ;;  %v8217_v53 = vld [vmem:[#allocation5 + $0x910] sm:$0xff]   ;;  %v8226_v61 = vld [vmem:[#allocation5 + $0x928] sm:$0xff]  }
 0x1b5   :  { %7641 = vmatpush3.bf16.msra.mxu1 %v8180_v57  ;;  %v8222_v57 = vld [vmem:[#allocation5 + $0x9a0] sm:$0xff]   ;;  %v8228_v2 = vld [vmem:[#allocation5 + $0x9b0] sm:$0xff]  }
 0x1b6   :  { %v1190_v7 = vmax.f32 %v8839_v35, %v8854_v4  ;;  %7073 = vmatpush3.bf16.msra.mxu0 %v8181_v58  ;;  %7642 = vmatprep.subr.bf16.mxu1 %v8600_v0  ;;  %v8215_v35 = vld [vmem:[#allocation5 + $0x950] sm:$0xff]   ;;  %v8223_v58 = vld [vmem:[#allocation5 + $0x920] sm:$0xff]  }
 0x1b7   :  { %7074 = vmatprep.subr.bf16.mxu0 %v8182_v3 }
 0x1b9   :  { %7643 = vmatpush3.bf16.msra.mxu1 %v8183_v6  ;;  %v8229_v6 = vld [vmem:[#allocation5 + $0x930] sm:$0xff]  }
 0x1ba   :  { %7075 = vmatpush3.bf16.msra.mxu0 %v8184_v8  ;;  %7648 = vmatprep.subr.bf16.mxu1 %v8600_v0 }
 0x1bb   :  { %7091 = vmatprep.subr.bf16.mxu0 %v8185_v9  ;;  %v8230_v9 = vld [vmem:[#allocation5 + $0x978] sm:$0xff]  }
 0x1bc   :  { %7645 = vmatmul.mubr.bf16.vlgmr.msra.gmra.mrb[40].mxu1 %v8823_v1 }
 0x1bd   :  { %3085 = vmatmul.mubr.bf16.vlgmr.msra.gmra.mrb[40].mxu0 %v8708_v29  ;;  %7649 = vmatpush3.bf16.msra.mxu1 %v8186_v10 }
 0x1be   :  { %7092 = vmatpush3.bf16.msra.mxu0 %v8187_v11  ;;  %7650 = vmatprep.subr.bf16.mxu1 %v8600_v0 }
 0x1bf   :  { %7093 = vmatprep.subr.bf16.mxu0 %v8188_v12  ;;  %3358 = vmatprep.mubr.bf16.mxu0 %v8702_v24 }
 0x1c0   :  { %7664 = vmatprep.mubr.msk.bf16.mxu1 %vm8601_vm0, %v8600_v0 }
 0x1c1   :  { %7651 = vmatpush3.bf16.msra.mxu1 %v8189_v13 }
 0x1c2   :  { %7094 = vmatpush3.bf16.msra.mxu0 %v8190_v14  ;;  %7652 = vmatprep.subr.bf16.mxu1 %v8600_v0  ;;  %v8231_v14 = vld [vmem:[#allocation5 + $0x9b8] sm:$0xff]  }
 0x1c3   :  { %7095 = vmatprep.subr.bf16.mxu0 %v8191_v15 }
 0x1c5   :  { %7653 = vmatpush3.bf16.msra.mxu1 %v8192_v16  ;;  %v8232_v16 = vld [vmem:[#allocation5 + $0x938] sm:$0xff]  }
 0x1c6   :  { %7096 = vmatpush3.bf16.msra.mxu0 %v8193_v17  ;;  %7654 = vmatprep.subr.bf16.mxu1 %v8600_v0  ;;  %v8233_v17 = vld [vmem:[#allocation5 + $0xa00] sm:$0xff]  }
 0x1c7   :  { %7097 = vmatprep.subr.bf16.mxu0 %v8194_v18 }
 0x1c9   :  { %7655 = vmatpush3.bf16.msra.mxu1 %v8195_v19  ;;  %v8234_v19 = vld [vmem:[#allocation5 + $0xa40] sm:$0xff]  }
 0x1ca   :  { %7098 = vmatpush3.bf16.msra.mxu0 %v8196_v20  ;;  %7656 = vmatprep.subr.bf16.mxu1 %v8600_v0  ;;  %v8235_v20 = vld [vmem:[#allocation5 + $0x9c0] sm:$0xff]  }
 0x1cb   :  { %7099 = vmatprep.subr.bf16.mxu0 %v8197_v22  ;;  %v8236_v22 = vld [vmem:[#allocation5 + $0xa08] sm:$0xff]  }
 0x1cd   :  { %7657 = vmatpush3.bf16.msra.mxu1 %v8198_v23  ;;  %v8237_v23 = vld [vmem:[#allocation5 + $0xa48] sm:$0xff]  }
 0x1ce   :  { %7100 = vmatpush3.bf16.msra.mxu0 %v8199_v25  ;;  %7658 = vmatprep.subr.bf16.mxu1 %v8600_v0  ;;  %v8895_v25 = vld [vmem:[#allocation2 + $0x8] ss:$0 sps:$4 sm:$0xff]  }
 0x1cf   :  { %v1458_v32 = vpop.f32.mrb[16].mxu1  ;;  %7101 = vmatprep.subr.bf16.mxu0 %v8200_v26  ;;  %v8238_v26 = vld [vmem:[#allocation5 + $0x9c8] sm:$0xff]  }
 0x1d0   :  { %v6890_v34 = vpop.f32.mrb[16].mxu0  ;;  %v7526_v5 = vpop.f32.mrb[17].mxu1 }
 0x1d1   :  { %v6891_v37 = vpop.f32.mrb[17].mxu0  ;;  %7659 = vmatpush3.bf16.msra.mxu1 %v8201_v27  ;;  %v1461_v38 = vpop.f32.mrb[18].mxu1  ;;  %v8239_v27 = vld [vmem:[#allocation5 + $0xa10] sm:$0xff]   ;;  %v8245_v5 = vld [vmem:[#allocation5 + $0xa20] sm:$0xff]  }
 0x1d2   :  { %v6892_v40 = vadd.f32 %v6891_v37, %v6890_v34  ;;  %v6893_v21 = vpop.f32.mrb[18].mxu0  ;;  %7102 = vmatpush3.bf16.msra.mxu0 %v8202_v30  ;;  %v7527_v41 = vpop.f32.mrb[19].mxu1  ;;  %7660 = vmatprep.subr.bf16.mxu1 %v8600_v0  ;;  %v8240_v30 = vld [vmem:[#allocation5 + $0xa50] sm:$0xff]   ;;  %v8244_v34 = vld [vmem:[#allocation5 + $0x9d8] sm:$0xff]   ;;  %v8247_v37 = vld [vmem:[#allocation5 + $0x9e0] sm:$0xff]  }
 0x1d3   :  { %v6894_v42 = vpop.f32.mrb[19].mxu0  ;;  %7103 = vmatprep.subr.bf16.mxu0 %v8203_v31  ;;  %v8241_v31 = vld [vmem:[#allocation5 + $0x9d0] sm:$0xff]   ;;  %v8248_v38 = vld [vmem:[#allocation5 + $0xa28] sm:$0xff]  }
 0x1d4   :  { %v1459_v44 = vadd.f32 %v6892_v40, %v1458_v32  ;;  %v8242_v32 = vld [vmem:[#allocation5 + $0xa18] sm:$0xff]   ;;  %v8250_v40 = vld [vmem:[#allocation5 + $0x9e8] sm:$0xff]   ;;  %v8251_v21 = vld [vmem:[#allocation5 + $0xa30] sm:$0xff]  }
 0x1d5   :  { %7661 = vmatpush3.bf16.msra.mxu1 %v8204_v33  ;;  %v8243_v33 = vld [vmem:[#allocation5 + $0xa58] sm:$0xff]   ;;  %v8252_v42 = vld [vmem:[#allocation5 + $0xa70] sm:$0xff]  }
 0x1d6   :  { %v8874_v46 = vmax.f32 %v1190_v7, %v1459_v44  ;;  %7104 = vmatpush3.bf16.msra.mxu0 %v8205_v36  ;;  %7662 = vmatprep.subr.bf16.mxu1 %v8600_v0  ;;  %v8246_v36 = vld [vmem:[#allocation5 + $0xa60] sm:$0xff]  }
 0x1d7   :  { %7105 = vmatprep.subr.bf16.mxu0 %v8206_v39  ;;  %v8249_v39 = vld [vmem:[#allocation5 + $0xa68] sm:$0xff]  }
 0x1d9   :  { %7663 = vmatpush3.bf16.msra.mxu1 %v8207_v43 }
 0x1da   :  { %7106 = vmatpush3.bf16.msra.mxu0 %v8208_v45  ;;  %7668 = vmatprep.subr.bf16.mxu1 %v8600_v0  ;;  %v8253_v45 = vld [vmem:[#allocation5 + $0x9f0] sm:$0xff]  }
 0x1db   :  { %7122 = vmatprep.subr.bf16.mxu0 %v8209_v47 }
 0x1dc   :  { %7665 = vmatmul.mubr.bf16.vlgmr.msra.gmra.mrb[44].mxu1 %v8823_v1  ;;  %v8219_v1 = vld [vmem:[#allocation5 + $0x998] sm:$0xff]  }
 0x1dd   :  { %3359 = vmatmul.mubr.bf16.vlgmr.msra.gmra.mrb[44].mxu0 %v8708_v29  ;;  %7669 = vmatpush3.bf16.msra.mxu1 %v8210_v48 }
 0x1de   :  { %7123 = vmatpush3.bf16.msra.mxu0 %v8211_v28  ;;  %7670 = vmatprep.subr.bf16.mxu1 %v8600_v0  ;;  %v8254_v28 = vld [vmem:[#allocation5 + $0xa38] sm:$0xff]  }
 0x1df   :  { %7124 = vmatprep.subr.bf16.mxu0 %v8212_v49  ;;  %3632 = vmatprep.mubr.bf16.mxu0 %v8702_v24 }
 0x1e0   :  { %7684 = vmatprep.mubr.msk.bf16.mxu1 %vm8601_vm0, %v8600_v0 }
 0x1e1   :  { %7671 = vmatpush3.bf16.msra.mxu1 %v8213_v50 }
 0x1e2   :  { %7125 = vmatpush3.bf16.msra.mxu0 %v8214_v51  ;;  %7672 = vmatprep.subr.bf16.mxu1 %v8600_v0 }
 0x1e3   :  { %7126 = vmatprep.subr.bf16.mxu0 %v8215_v35 }
 0x1e5   :  { %7673 = vmatpush3.bf16.msra.mxu1 %v8216_v52  ;;  %v8255_v52 = vld [vmem:[#allocation5 + $0xa78] sm:$0xff]  }
 0x1e6   :  { %7127 = vmatpush3.bf16.msra.mxu0 %v8217_v53  ;;  %7674 = vmatprep.subr.bf16.mxu1 %v8600_v0 }
 0x1e7   :  { %7128 = vmatprep.subr.bf16.mxu0 %v8218_v54  ;;  %v8256_v54 = vld [vmem:[#allocation5 + $0x9f8] sm:$0xff]  }
 0x1e9   :  { %7675 = vmatpush3.bf16.msra.mxu1 %v8219_v1  ;;  %v8257_v1 = vld [vmem:[#allocation5 + $0xac0] sm:$0xff]  }
 0x1ea   :  { %7129 = vmatpush3.bf16.msra.mxu0 %v8220_v55  ;;  %7676 = vmatprep.subr.bf16.mxu1 %v8600_v0 }
 0x1eb   :  { %7130 = vmatprep.subr.bf16.mxu0 %v8221_v56  ;;  %v8258_v56 = vld [vmem:[#allocation5 + $0xb00] sm:$0xff]  }
 0x1ed   :  { %7677 = vmatpush3.bf16.msra.mxu1 %v8222_v57  ;;  %v8259_v57 = vld [vmem:[#allocation5 + $0xa80] sm:$0xff]  }
 0x1ee   :  { %7131 = vmatpush3.bf16.msra.mxu0 %v8223_v58  ;;  %7678 = vmatprep.subr.bf16.mxu1 %v8600_v0  ;;  %v8260_v58 = vld [vmem:[#allocation5 + $0xac8] sm:$0xff]  }
 0x1ef   :  { %v1732_v63 = vpop.f32.mrb[20].mxu1  ;;  %7132 = vmatprep.subr.bf16.mxu0 %v8224_v59  ;;  %v8261_v59 = vld [vmem:[#allocation5 + $0xb08] sm:$0xff]  }
 0x1f0   :  { %v6921_v3 = vpop.f32.mrb[20].mxu0  ;;  %v7546_v4 = vpop.f32.mrb[21].mxu1 }
 0x1f1   :  { %v6922_v7 = vpop.f32.mrb[21].mxu0  ;;  %7679 = vmatpush3.bf16.msra.mxu1 %v8225_v60  ;;  %v1735_v8 = vpop.f32.mrb[22].mxu1  ;;  %v8262_v60 = vld [vmem:[#allocation5 + $0xa88] sm:$0xff]   ;;  %v8269_v4 = vld [vmem:[#allocation5 + $0xae0] sm:$0xff]  }
 0x1f2   :  { %v6923_v10 = vadd.f32 %v6922_v7, %v6921_v3  ;;  %v6924_v11 = vpop.f32.mrb[22].mxu0  ;;  %7133 = vmatpush3.bf16.msra.mxu0 %v8226_v61  ;;  %v7547_v12 = vpop.f32.mrb[23].mxu1  ;;  %7680 = vmatprep.subr.bf16.mxu1 %v8600_v0  ;;  %v8264_v61 = vld [vmem:[#allocation5 + $0xb10] sm:$0xff]   ;;  %v8268_v3 = vld [vmem:[#allocation5 + $0xa98] sm:$0xff]   ;;  %v8271_v7 = vld [vmem:[#allocation5 + $0xaa0] sm:$0xff]  }
 0x1f3   :  { %v6925_v13 = vpop.f32.mrb[23].mxu0  ;;  %7134 = vmatprep.subr.bf16.mxu0 %v8227_v62  ;;  %v8265_v62 = vld [vmem:[#allocation5 + $0xa90] sm:$0xff]   ;;  %v8272_v8 = vld [vmem:[#allocation5 + $0xae8] sm:$0xff]  }
 0x1f4   :  { %v8889_v15 = vadd.f32 %v6923_v10, %v1732_v63  ;;  %v8266_v63 = vld [vmem:[#allocation5 + $0xad8] sm:$0xff]   ;;  %v8274_v10 = vld [vmem:[#allocation5 + $0xaa8] sm:$0xff]   ;;  %v8275_v11 = vld [vmem:[#allocation5 + $0xaf0] sm:$0xff]  }
 0x1f5   :  { %7681 = vmatpush3.bf16.msra.mxu1 %v8228_v2  ;;  %v8267_v2 = vld [vmem:[#allocation5 + $0xb18] sm:$0xff]   ;;  %v8276_v13 = vld [vmem:[#allocation5 + $0xb30] sm:$0xff]  }
 0x1f6   :  { %v1738_v18 = vmax.f32 %v8874_v46, %v8889_v15  ;;  %7135 = vmatpush3.bf16.msra.mxu0 %v8229_v6  ;;  %7682 = vmatprep.subr.bf16.mxu1 %v8600_v0  ;;  %v8263_v46 = vld [vmem:[#allocation5 + $0xad0] sm:$0xff]   ;;  %v8270_v6 = vld [vmem:[#allocation5 + $0xb20] sm:$0xff]  }
 0x1f7   :  { %7136 = vmatprep.subr.bf16.mxu0 %v8230_v9  ;;  %v8273_v9 = vld [vmem:[#allocation5 + $0xb28] sm:$0xff]  }
 0x1f9   :  { %7683 = vmatpush3.bf16.msra.mxu1 %v8231_v14 }
 0x1fa   :  { %7137 = vmatpush3.bf16.msra.mxu0 %v8232_v16  ;;  %7688 = vmatprep.subr.bf16.mxu1 %v8600_v0  ;;  %v8277_v16 = vld [vmem:[#allocation5 + $0xab0] sm:$0xff]  }
 0x1fb   :  { %7153 = vmatprep.subr.bf16.mxu0 %v8233_v17 }
 0x1fc   :  { %7685 = vmatmul.mubr.bf16.vlgmr.msra.gmra.mrb[48].mxu1 %v8895_v25 }
 0x1fd   :  { %3633 = vmatmul.mubr.bf16.vlgmr.msra.gmra.mrb[48].mxu0 %v8708_v29  ;;  %7689 = vmatpush3.bf16.msra.mxu1 %v8234_v19  ;;  %v8278_v19 = vld [vmem:[#allocation5 + $0xaf8] sm:$0xff]  }
 0x1fe   :  { %7154 = vmatpush3.bf16.msra.mxu0 %v8235_v20  ;;  %7690 = vmatprep.subr.bf16.mxu1 %v8600_v0 }
 0x1ff   :  { %7155 = vmatprep.subr.bf16.mxu0 %v8236_v22  ;;  %3906 = vmatprep.mubr.bf16.mxu0 %v8702_v24 }
 0x200   :  { %7704 = vmatprep.mubr.msk.bf16.mxu1 %vm8601_vm0, %v8600_v0 }
 0x201   :  { %7691 = vmatpush3.bf16.msra.mxu1 %v8237_v23 }
 0x202   :  { %7156 = vmatpush3.bf16.msra.mxu0 %v8238_v26  ;;  %7692 = vmatprep.subr.bf16.mxu1 %v8600_v0 }
 0x203   :  { %7157 = vmatprep.subr.bf16.mxu0 %v8239_v27  ;;  %v8279_v27 = vld [vmem:[#allocation5 + $0xb38] sm:$0xff]  }
 0x205   :  { %7693 = vmatpush3.bf16.msra.mxu1 %v8240_v30 }
 0x206   :  { %7158 = vmatpush3.bf16.msra.mxu0 %v8241_v31  ;;  %7694 = vmatprep.subr.bf16.mxu1 %v8600_v0  ;;  %v8280_v31 = vld [vmem:[#allocation5 + $0xab8] sm:$0xff]  }
 0x207   :  { %7159 = vmatprep.subr.bf16.mxu0 %v8242_v32 }
 0x209   :  { %7695 = vmatpush3.bf16.msra.mxu1 %v8243_v33  ;;  %v8281_v33 = vld [vmem:[#allocation8] sm:$0xff]  }
 0x20a   :  { %7160 = vmatpush3.bf16.msra.mxu0 %v8244_v34  ;;  %7696 = vmatprep.subr.bf16.mxu1 %v8600_v0  ;;  %v8282_v34 = vld [vmem:[#allocation8 + $0x8] sm:$0xff]  }
 0x20b   :  { %7161 = vmatprep.subr.bf16.mxu0 %v8245_v5  ;;  %v8283_v5 = vld [vmem:[#allocation8 + $0x10] sm:$0xff]  }
 0x20d   :  { %7697 = vmatpush3.bf16.msra.mxu1 %v8246_v36  ;;  %v8284_v36 = vld [vmem:[#allocation8 + $0x18] sm:$0xff]  }
 0x20e   :  { %7162 = vmatpush3.bf16.msra.mxu0 %v8247_v37  ;;  %7698 = vmatprep.subr.bf16.mxu1 %v8600_v0  ;;  %v8285_v37 = vld [vmem:[#allocation8 + $0x20] sm:$0xff]  }
 0x20f   :  { %v2006_v41 = vpop.f32.mrb[24].mxu1  ;;  %7163 = vmatprep.subr.bf16.mxu0 %v8248_v38  ;;  %v8286_v38 = vld [vmem:[#allocation8 + $0x28] sm:$0xff]  }
 0x210   :  { %v6952_v43 = vpop.f32.mrb[24].mxu0  ;;  %v7566_v44 = vpop.f32.mrb[25].mxu1 }
 0x211   :  { %v6953_v47 = vpop.f32.mrb[25].mxu0  ;;  %7699 = vmatpush3.bf16.msra.mxu1 %v8249_v39  ;;  %v2009_v48 = vpop.f32.mrb[26].mxu1 }
 0x212   :  { %v6954_v49 = vadd.f32 %v6953_v47, %v6952_v43  ;;  %v6955_v50 = vpop.f32.mrb[26].mxu0  ;;  %7164 = vmatpush3.bf16.msra.mxu0 %v8250_v40  ;;  %v7567_v51 = vpop.f32.mrb[27].mxu1  ;;  %7700 = vmatprep.subr.bf16.mxu1 %v8600_v0  ;;  %v8287_v43 = vld [vmem:[#allocation8 + $0x30] sm:$0xff]   ;;  %v6410_v48 = vld [vmem:[#allocation7] ss:$0 sm:$0xff] }
 0x213   :  { %v6956_v35 = vpop.f32.mrb[27].mxu0  ;;  %7165 = vmatprep.subr.bf16.mxu0 %v8251_v21  ;;  %v8288_v50 = vld [vmem:[#allocation8 + $0x38] sm:$0xff]  }
 0x214   :  { %v2007_v53 = vadd.f32 %v6954_v49, %v2006_v41 }
 0x215   :  { %7701 = vmatpush3.bf16.msra.mxu1 %v8252_v42 }
 0x216   :  { %v8911_v55 = vmax.f32 %v1738_v18, %v2007_v53  ;;  %7166 = vmatpush3.bf16.msra.mxu0 %v8253_v45  ;;  %7702 = vmatprep.subr.bf16.mxu1 %v8600_v0 }
 0x217   :  { %7167 = vmatprep.subr.bf16.mxu0 %v8254_v28 }
 0x219   :  { %7703 = vmatpush3.bf16.msra.mxu1 %v8255_v52 }
 0x21a   :  { %7168 = vmatpush3.bf16.msra.mxu0 %v8256_v54  ;;  %7708 = vmatprep.subr.bf16.mxu1 %v8600_v0 }
 0x21b   :  { %7184 = vmatprep.subr.bf16.mxu0 %v8257_v1 }
 0x21c   :  { %7705 = vmatmul.mubr.bf16.vlgmr.msra.gmra.mrb[52].mxu1 %v8895_v25 }
 0x21d   :  { %3907 = vmatmul.mubr.bf16.vlgmr.msra.gmra.mrb[52].mxu0 %v8708_v29  ;;  %7709 = vmatpush3.bf16.msra.mxu1 %v8258_v56 }
 0x21e   :  { %7185 = vmatpush3.bf16.msra.mxu0 %v8259_v57  ;;  %7710 = vmatprep.subr.bf16.mxu1 %v8600_v0 }
 0x21f   :  { %7186 = vmatprep.subr.bf16.mxu0 %v8260_v58  ;;  %4180 = vmatprep.mubr.bf16.mxu0 %v8702_v24 }
 0x220   :  { %7724 = vmatprep.mubr.msk.bf16.mxu1 %vm8601_vm0, %v8600_v0 }
 0x221   :  { %7711 = vmatpush3.bf16.msra.mxu1 %v8261_v59 }
 0x222   :  { %7187 = vmatpush3.bf16.msra.mxu0 %v8262_v60  ;;  %7712 = vmatprep.subr.bf16.mxu1 %v8600_v0 }
 0x223   :  { %7188 = vmatprep.subr.bf16.mxu0 %v8263_v46 }
 0x225   :  { %7713 = vmatpush3.bf16.msra.mxu1 %v8264_v61  ;;  %v8289_v61 = vld [vmem:[#allocation8 + $0x40] sm:$0xff]  }
 0x226   :  { %7189 = vmatpush3.bf16.msra.mxu0 %v8265_v62  ;;  %7714 = vmatprep.subr.bf16.mxu1 %v8600_v0  ;;  %v8290_v62 = vld [vmem:[#allocation8 + $0x48] sm:$0xff]  }
 0x227   :  { %7190 = vmatprep.subr.bf16.mxu0 %v8266_v63  ;;  %v8291_v63 = vld [vmem:[#allocation8 + $0x50] sm:$0xff]  }
 0x229   :  { %7715 = vmatpush3.bf16.msra.mxu1 %v8267_v2  ;;  %v8292_v2 = vld [vmem:[#allocation8 + $0x58] sm:$0xff]  }
 0x22a   :  { %7191 = vmatpush3.bf16.msra.mxu0 %v8268_v3  ;;  %7716 = vmatprep.subr.bf16.mxu1 %v8600_v0  ;;  %v8293_v3 = vld [vmem:[#allocation8 + $0x60] sm:$0xff]  }
 0x22b   :  { %7192 = vmatprep.subr.bf16.mxu0 %v8269_v4  ;;  %v8294_v4 = vld [vmem:[#allocation8 + $0x68] sm:$0xff]  }
 0x22d   :  { %7717 = vmatpush3.bf16.msra.mxu1 %v8270_v6 }
 0x22e   :  { %7193 = vmatpush3.bf16.msra.mxu0 %v8271_v7  ;;  %7718 = vmatprep.subr.bf16.mxu1 %v8600_v0 }
 0x22f   :  { %v2280_v12 = vpop.f32.mrb[28].mxu1  ;;  %7194 = vmatprep.subr.bf16.mxu0 %v8272_v8 }
 0x230   :  { %v6983_v14 = vpop.f32.mrb[28].mxu0  ;;  %v7586_v15 = vpop.f32.mrb[29].mxu1 }
 0x231   :  { %v6984_v17 = vpop.f32.mrb[29].mxu0  ;;  %7719 = vmatpush3.bf16.msra.mxu1 %v8273_v9  ;;  %v2283_v18 = vpop.f32.mrb[30].mxu1 }
 0x232   :  { %v6985_v20 = vadd.f32 %v6984_v17, %v6983_v14  ;;  %v6986_v22 = vpop.f32.mrb[30].mxu0  ;;  %7195 = vmatpush3.bf16.msra.mxu0 %v8274_v10  ;;  %v7587_v23 = vpop.f32.mrb[31].mxu1  ;;  %7720 = vmatprep.subr.bf16.mxu1 %v8600_v0  ;;  %v8295_v14 = vld [vmem:[#allocation8 + $0x70] sm:$0xff]   ;;  %v8296_v18 = vld [vmem:[#allocation8 + $0x78] sm:$0xff]  }
 0x233   :  { %v6987_v26 = vpop.f32.mrb[31].mxu0  ;;  %7196 = vmatprep.subr.bf16.mxu0 %v8275_v11  ;;  %v8302_v22 = vld [vmem:[#allocation5 + $0xbc8] sm:$0xff]   ;;  %v8305_v23 = vld [vmem:[#allocation5 + $0xbd0] sm:$0xff]  }
 0x234   :  { %v2281_v30 = vadd.f32 %v6985_v20, %v2280_v12  ;;  %v8299_v20 = vld [vmem:[#allocation5 + $0xbc0] sm:$0xff]   ;;  %v8308_v26 = vld [vmem:[#allocation5 + $0xbd8] sm:$0xff]  }
 0x235   :  { %7721 = vmatpush3.bf16.msra.mxu1 %v8276_v13 }
 0x236   :  { %v2286_v32 = vmax.f32 %v8911_v55, %v2281_v30  ;;  %7197 = vmatpush3.bf16.msra.mxu0 %v8277_v16  ;;  %7722 = vmatprep.subr.bf16.mxu1 %v8600_v0 }
 0x237   :  { %7198 = vmatprep.subr.bf16.mxu0 %v8278_v19  ;;  %v8297_v19 = vld [vmem:[#allocation5 + $0xb80] sm:$0xff]  }
 0x238   :  { %v2294_v51 = vadd.f32 %v6410_v48, %v2286_v32  ;;  %v8335_v48 = vld [vmem:[#allocation5 + $0xca0] sm:$0xff]  }
 0x239   :  { %7723 = vmatpush3.bf16.msra.mxu1 %v8279_v27  ;;  %v8311_v27 = vld [vmem:[#allocation5 + $0xbe0] sm:$0xff]  }
 0x23a   :  { %7199 = vmatpush3.bf16.msra.mxu0 %v8280_v31  ;;  %7748 = vmatprep.subr.bf16.mxu1 %v8600_v0  ;;  %v2295_v35 = vpack.c.bf16 %v2294_v51, %v2294_v51  ;;  %v8314_v31 = vld [vmem:[#allocation5 + $0xbe8] sm:$0xff]  }
 0x23b   :  { %7728 = vmatprep.subr.bf16.mxu0 %v8600_v0 }
 0x23c   :  { %7725 = vmatmul.mubr.bf16.vlgmr.msra.gmra.mrb[56].mxu1 %v8895_v25 }
 0x23d   :  { %4181 = vmatmul.mubr.bf16.vlgmr.msra.gmra.mrb[56].mxu0 %v8708_v29  ;;  %7749 = vmatpush3.bf16.msra.mxu1 %v8281_v33 }
 0x23e   :  { %7750 = vmatprep.subr.bf16.mxu1 %v8600_v0  ;;  %7764 = vmatprep.mubr.msk.bf16.mxu1 %vm8601_vm0, %v8600_v0 }
 0x23f   :  { %7744 = vmatprep.mubr.msk.bf16.mxu0 %vm8601_vm0, %v8600_v0  ;;  %7729 = vmatpush3.bf16.msra.mxu0 %v8289_v61  ;;  %v8353_v61 = vld [vmem:[#allocation5 + $0xd50] sm:$0xff]  }
 0x240   :  { %7730 = vmatprep.subr.bf16.mxu0 %v8600_v0 }
 0x241   :  { %7751 = vmatpush3.bf16.msra.mxu1 %v8282_v34 }
 0x242   :  { %7752 = vmatprep.subr.bf16.mxu1 %v8600_v0 }
 0x243   :  { %7731 = vmatpush3.bf16.msra.mxu0 %v8290_v62  ;;  %v8356_v62 = vld [vmem:[#allocation5 + $0xd58] sm:$0xff]  }
 0x244   :  { %7732 = vmatprep.subr.bf16.mxu0 %v8600_v0 }
 0x245   :  { %7753 = vmatpush3.bf16.msra.mxu1 %v8283_v5 }
 0x246   :  { %7754 = vmatprep.subr.bf16.mxu1 %v8600_v0 }
 0x247   :  { %7733 = vmatpush3.bf16.msra.mxu0 %v8291_v63  ;;  %v8359_v63 = vld [vmem:[#allocation5 + $0xd60] sm:$0xff]  }
 0x248   :  { %7734 = vmatprep.subr.bf16.mxu0 %v8600_v0 }
 0x249   :  { %7755 = vmatpush3.bf16.msra.mxu1 %v8284_v36 }
 0x24a   :  { %7756 = vmatprep.subr.bf16.mxu1 %v8600_v0 }
 0x24b   :  { %7735 = vmatpush3.bf16.msra.mxu0 %v8292_v2  ;;  %v8362_v2 = vld [vmem:[#allocation5 + $0xd68] sm:$0xff]  }
 0x24c   :  { %7736 = vmatprep.subr.bf16.mxu0 %v8600_v0 }
 0x24d   :  { %7757 = vmatpush3.bf16.msra.mxu1 %v8285_v37 }
 0x24e   :  { %7758 = vmatprep.subr.bf16.mxu1 %v8600_v0 }
 0x24f   :  { %v2579_v39 = vpop.f32.mrb[32].mxu1  ;;  %7737 = vmatpush3.bf16.msra.mxu0 %v8293_v3 }
 0x250   :  { %v7014_v40 = vpop.f32.mrb[32].mxu0  ;;  %v7606_v21 = vpop.f32.mrb[33].mxu1  ;;  %7738 = vmatprep.subr.bf16.mxu0 %v8600_v0 }
 0x251   :  { %v7015_v41 = vpop.f32.mrb[33].mxu0  ;;  %7759 = vmatpush3.bf16.msra.mxu1 %v8286_v38  ;;  %v2582_v42 = vpop.f32.mrb[34].mxu1 }
 0x252   :  { %v7016_v44 = vadd.f32 %v7015_v41, %v7014_v40  ;;  %v7017_v45 = vpop.f32.mrb[34].mxu0  ;;  %v7607_v47 = vpop.f32.mrb[35].mxu1  ;;  %7760 = vmatprep.subr.bf16.mxu1 %v8600_v0  ;;  %v8317_v40 = vld [vmem:[#allocation5 + $0xbf0] sm:$0xff]   ;;  %v8320_v42 = vld [vmem:[#allocation5 + $0xbf8] sm:$0xff]  }
 0x253   :  { %v7018_v28 = vpop.f32.mrb[35].mxu0  ;;  %7739 = vmatpush3.bf16.msra.mxu0 %v8294_v4  ;;  %v8329_v45 = vld [vmem:[#allocation5 + $0xc90] sm:$0xff]   ;;  %v8332_v47 = vld [vmem:[#allocation5 + $0xc98] sm:$0xff]  }
 0x254   :  { %v2580_v49 = vadd.f32 %v7016_v44, %v2579_v39  ;;  %7740 = vmatprep.subr.bf16.mxu0 %v8600_v0  ;;  %v8326_v44 = vld [vmem:[#allocation5 + $0xc88] sm:$0xff]  }
 0x255   :  { %7761 = vmatpush3.bf16.msra.mxu1 %v8287_v43  ;;  %v8323_v43 = vld [vmem:[#allocation5 + $0xc80] sm:$0xff]  }
 0x256   :  { %7762 = vmatprep.subr.bf16.mxu1 %v8600_v0 }
 0x257   :  { %7741 = vmatpush3.bf16.msra.mxu0 %v8295_v14 }
 0x258   :  { %7742 = vmatprep.subr.bf16.mxu0 %v8600_v0 }
 0x259   :  { %7763 = vmatpush3.bf16.msra.mxu1 %v8288_v50 }
 0x25a   :  { %7768 = vmatprep.subr.bf16.mxu1 %v8600_v0 }
 0x25b   :  { %7743 = vmatpush3.bf16.msra.mxu0 %v8296_v18  ;;  %v8374_v18 = vld [vmem:[#allocation5 + $0xe08] sm:$0xff]  }
 0x25c   :  { %7765 = vmatmul.mubr.bf16.vlgmr.msra.gmra.mrb[60].mxu1 %v2295_v35  ;;  %7233 = vmatprep.subr.bf16.mxu0 %v8297_v19  ;;  %v8377_v19 = vld [vmem:[#allocation5 + $0xe10] sm:$0xff]  }
 0x25d   :  { %7784 = vmatprep.mubr.msk.bf16.mxu1 %vm8601_vm0, %v8600_v0  ;;  %7769 = vmatpush3.bf16.msra.mxu1 %v8299_v20  ;;  %v8380_v20 = vld [vmem:[#allocation5 + $0xe18] sm:$0xff]  }
 0x25e   :  { %7770 = vmatprep.subr.bf16.mxu1 %v8600_v0 }
 0x261   :  { %7771 = vmatpush3.bf16.msra.mxu1 %v8302_v22  ;;  %v8383_v22 = vld [vmem:[#allocation5 + $0xe20] sm:$0xff]  }
 0x262   :  { %7772 = vmatprep.subr.bf16.mxu1 %v8600_v0 }
 0x265   :  { %7773 = vmatpush3.bf16.msra.mxu1 %v8305_v23 }
 0x266   :  { %7774 = vmatprep.subr.bf16.mxu1 %v8600_v0 }
 0x269   :  { %7775 = vmatpush3.bf16.msra.mxu1 %v8308_v26  ;;  %v8386_v26 = vld [vmem:[#allocation5 + $0xe28] sm:$0xff]  }
 0x26a   :  { %7776 = vmatprep.subr.bf16.mxu1 %v8600_v0 }
 0x26d   :  { %7777 = vmatpush3.bf16.msra.mxu1 %v8311_v27 }
 0x26e   :  { %7778 = vmatprep.subr.bf16.mxu1 %v8600_v0 }
 0x26f   :  { %v2852_v52 = vpop.f32.mrb[36].mxu1 }
 0x270   :  { %v7045_v53 = vpop.f32.mrb[36].mxu0  ;;  %v7626_v54 = vpop.f32.mrb[37].mxu1 }
 0x271   :  { %v7046_v1 = vpop.f32.mrb[37].mxu0  ;;  %v2855_v55 = vpop.f32.mrb[38].mxu1  ;;  %7779 = vmatpush3.bf16.msra.mxu1 %v8314_v31 }
 0x272   :  { %v7047_v56 = vadd.f32 %v7046_v1, %v7045_v53  ;;  %v7048_v57 = vpop.f32.mrb[38].mxu0  ;;  %v7627_v58 = vpop.f32.mrb[39].mxu1  ;;  %7780 = vmatprep.subr.bf16.mxu1 %v8600_v0 }
 0x273   :  { %v7049_v59 = vpop.f32.mrb[39].mxu0 }
 0x274   :  { %v2853_v60 = vadd.f32 %v7047_v56, %v2852_v52  ;;  %v8341_v56 = vld [vmem:[#allocation5 + $0xcb0] sm:$0xff]   ;;  %v8344_v59 = vld [vmem:[#allocation5 + $0xcb8] sm:$0xff]  }
 0x275   :  { %7781 = vmatpush3.bf16.msra.mxu1 %v8317_v40 }
 0x276   :  { %v2858_v46 = vmax.f32 %v2580_v49, %v2853_v60  ;;  %7782 = vmatprep.subr.bf16.mxu1 %v8600_v0  ;;  %v8338_v49 = vld [vmem:[#allocation5 + $0xca8] sm:$0xff]   ;;  %v8347_v60 = vld [vmem:[#allocation5 + $0xd40] sm:$0xff]  }
 0x279   :  { %7783 = vmatpush3.bf16.msra.mxu1 %v8320_v42  ;;  %v8298_v42 = vld [vmem:[#allocation5 + $0xb40] sm:$0xff]  }
 0x27a   :  { %7788 = vmatprep.subr.bf16.mxu1 %v8600_v0 }
 0x27c   :  { %7785 = vmatmul.mubr.bf16.vlgmr.msra.gmra.mrb[64].mxu1 %v8895_v25 }
 0x27d   :  { %7789 = vmatpush3.bf16.msra.mxu1 %v8323_v43  ;;  %7804 = vmatprep.mubr.msk.bf16.mxu1 %vm8601_vm0, %v8600_v0 }
 0x27e   :  { %7790 = vmatprep.subr.bf16.mxu1 %v8600_v0 }
 0x281   :  { %7791 = vmatpush3.bf16.msra.mxu1 %v8326_v44  ;;  %v8300_v44 = vld [vmem:[#allocation5 + $0xb88] sm:$0xff]  }
 0x282   :  { %7792 = vmatprep.subr.bf16.mxu1 %v8600_v0 }
 0x285   :  { %7793 = vmatpush3.bf16.msra.mxu1 %v8329_v45  ;;  %v8395_v45 = vld [vmem:[#allocation5 + $0xec0] sm:$0xff]  }
 0x286   :  { %7794 = vmatprep.subr.bf16.mxu1 %v8600_v0 }
 0x289   :  { %7795 = vmatpush3.bf16.msra.mxu1 %v8332_v47  ;;  %v8301_v47 = vld [vmem:[#allocation5 + $0xb48] sm:$0xff]  }
 0x28a   :  { %7796 = vmatprep.subr.bf16.mxu1 %v8600_v0 }
 0x28d   :  { %7797 = vmatpush3.bf16.msra.mxu1 %v8335_v48  ;;  %v8303_v48 = vld [vmem:[#allocation5 + $0xb90] sm:$0xff]  }
 0x28e   :  { %7798 = vmatprep.subr.bf16.mxu1 %v8600_v0 }
 0x28f   :  { %v3126_v6 = vpop.f32.mrb[40].mxu1 }
 0x290   :  { %v7076_v7 = vpop.f32.mrb[40].mxu0  ;;  %v7646_v8 = vpop.f32.mrb[41].mxu1 }
 0x291   :  { %v7077_v9 = vpop.f32.mrb[41].mxu0  ;;  %v3129_v10 = vpop.f32.mrb[42].mxu1  ;;  %7799 = vmatpush3.bf16.msra.mxu1 %v8338_v49  ;;  %v8304_v49 = vld [vmem:[#allocation5 + $0xb50] sm:$0xff]  }
 0x292   :  { %v7078_v11 = vadd.f32 %v7077_v9, %v7076_v7  ;;  %v7079_v12 = vpop.f32.mrb[42].mxu0  ;;  %v7647_v13 = vpop.f32.mrb[43].mxu1  ;;  %7800 = vmatprep.subr.bf16.mxu1 %v8600_v0 }
 0x293   :  { %v7080_v15 = vpop.f32.mrb[43].mxu0  ;;  %v8365_v12 = vld [vmem:[#allocation5 + $0xd70] sm:$0xff]  }
 0x294   :  { %v3127_v16 = vadd.f32 %v7078_v11, %v3126_v6  ;;  %v8368_v15 = vld [vmem:[#allocation5 + $0xd78] sm:$0xff]  }
 0x295   :  { %7801 = vmatpush3.bf16.msra.mxu1 %v8341_v56  ;;  %v8313_v56 = vld [vmem:[#allocation5 + $0xb68] sm:$0xff]  }
 0x296   :  { %v8953_v17 = vmax.f32 %v2858_v46, %v3127_v16  ;;  %7802 = vmatprep.subr.bf16.mxu1 %v8600_v0  ;;  %v8350_v46 = vld [vmem:[#allocation5 + $0xd48] sm:$0xff]   ;;  %v8371_v16 = vld [vmem:[#allocation5 + $0xe00] sm:$0xff]  }
 0x299   :  { %7803 = vmatpush3.bf16.msra.mxu1 %v8344_v59  ;;  %v8410_v59 = vld [vmem:[#allocation5 + $0xee8] sm:$0xff]  }
 0x29a   :  { %7808 = vmatprep.subr.bf16.mxu1 %v8600_v0 }
 0x29c   :  { %7805 = vmatmul.mubr.bf16.vlgmr.msra.gmra.mrb[68].mxu1 %v8895_v25 }
 0x29d   :  { %7809 = vmatpush3.bf16.msra.mxu1 %v8347_v60  ;;  %7824 = vmatprep.mubr.msk.bf16.mxu1 %vm8601_vm0, %v8600_v0 }
 0x29e   :  { %7810 = vmatprep.subr.bf16.mxu1 %v8600_v0 }
 0x2a1   :  { %7811 = vmatpush3.bf16.msra.mxu1 %v8350_v46 }
 0x2a2   :  { %7812 = vmatprep.subr.bf16.mxu1 %v8600_v0 }
 0x2a5   :  { %7813 = vmatpush3.bf16.msra.mxu1 %v8353_v61  ;;  %v8316_v61 = vld [vmem:[#allocation5 + $0xb70] sm:$0xff]  }
 0x2a6   :  { %7814 = vmatprep.subr.bf16.mxu1 %v8600_v0 }
 0x2a9   :  { %7815 = vmatpush3.bf16.msra.mxu1 %v8356_v62 }
 0x2aa   :  { %7816 = vmatprep.subr.bf16.mxu1 %v8600_v0 }
 0x2ad   :  { %7817 = vmatpush3.bf16.msra.mxu1 %v8359_v63  ;;  %v8318_v63 = vld [vmem:[#allocation5 + $0xbb8] sm:$0xff]  }
 0x2ae   :  { %7818 = vmatprep.subr.bf16.mxu1 %v8600_v0 }
 0x2af   :  { %v3400_v30 = vpop.f32.mrb[44].mxu1 }
 0x2b0   :  { %v7107_v32 = vpop.f32.mrb[44].mxu0  ;;  %v7666_v33 = vpop.f32.mrb[45].mxu1 }
 0x2b1   :  { %v7108_v34 = vpop.f32.mrb[45].mxu0  ;;  %v3403_v5 = vpop.f32.mrb[46].mxu1  ;;  %7819 = vmatpush3.bf16.msra.mxu1 %v8362_v2  ;;  %v8319_v2 = vld [vmem:[#allocation5 + $0xb78] sm:$0xff]  }
 0x2b2   :  { %v7109_v36 = vadd.f32 %v7108_v34, %v7107_v32  ;;  %v7110_v37 = vpop.f32.mrb[46].mxu0  ;;  %v7667_v38 = vpop.f32.mrb[47].mxu1  ;;  %7820 = vmatprep.subr.bf16.mxu1 %v8600_v0 }
 0x2b3   :  { %v7111_v39 = vpop.f32.mrb[47].mxu0  ;;  %v8389_v37 = vld [vmem:[#allocation5 + $0xe30] sm:$0xff]  }
 0x2b4   :  { %v3401_v21 = vadd.f32 %v7109_v36, %v3400_v30  ;;  %v6579_v39 = vld [vmem:[#allocation7 + $0x1] ss:$0 sm:$0xff] }
 0x2b5   :  { %7821 = vmatpush3.bf16.msra.mxu1 %v8365_v12  ;;  %v8328_v12 = vld [vmem:[#allocation5 + $0xc10] sm:$0xff]  }
 0x2b6   :  { %v3406_v41 = vmax.f32 %v8953_v17, %v3401_v21  ;;  %7822 = vmatprep.subr.bf16.mxu1 %v8600_v0  ;;  %v8989_v17 = vld [vmem:[#allocation2 + $0x8] ss:$0 sps:$4 sm:$0xff]  }
 0x2b7   :  { %v8392_v21 = vld [vmem:[#allocation5 + $0xe38] sm:$0xff]  }
 0x2b9   :  { %7823 = vmatpush3.bf16.msra.mxu1 %v8368_v15  ;;  %v8331_v15 = vld [vmem:[#allocation5 + $0xc18] sm:$0xff]  }
 0x2ba   :  { %7828 = vmatprep.subr.bf16.mxu1 %v8600_v0 }
 0x2bc   :  { %7825 = vmatmul.mubr.bf16.vlgmr.msra.gmra.mrb[72].mxu1 %v8989_v17 }
 0x2bd   :  { %7829 = vmatpush3.bf16.msra.mxu1 %v8371_v16  ;;  %7844 = vmatprep.mubr.msk.bf16.mxu1 %vm8601_vm0, %v8600_v0  ;;  %v8333_v16 = vld [vmem:[#allocation5 + $0xc60] sm:$0xff]  }
 0x2be   :  { %7830 = vmatprep.subr.bf16.mxu1 %v8600_v0 }
 0x2c1   :  { %7831 = vmatpush3.bf16.msra.mxu1 %v8374_v18  ;;  %v8428_v18 = vld [vmem:[#allocation5 + $0xf98] sm:$0xff]  }
 0x2c2   :  { %7832 = vmatprep.subr.bf16.mxu1 %v8600_v0 }
 0x2c5   :  { %7833 = vmatpush3.bf16.msra.mxu1 %v8377_v19  ;;  %v8334_v19 = vld [vmem:[#allocation5 + $0xc20] sm:$0xff]  }
 0x2c6   :  { %7834 = vmatprep.subr.bf16.mxu1 %v8600_v0 }
 0x2c9   :  { %7835 = vmatpush3.bf16.msra.mxu1 %v8380_v20  ;;  %v8336_v20 = vld [vmem:[#allocation5 + $0xc68] sm:$0xff]  }
 0x2ca   :  { %7836 = vmatprep.subr.bf16.mxu1 %v8600_v0 }
 0x2cd   :  { %7837 = vmatpush3.bf16.msra.mxu1 %v8383_v22  ;;  %v8431_v22 = vld [vmem:[#allocation5 + $0xfa0] sm:$0xff]  }
 0x2ce   :  { %7838 = vmatprep.subr.bf16.mxu1 %v8600_v0 }
 0x2cf   :  { %v3674_v28 = vpop.f32.mrb[48].mxu1 }
 0x2d0   :  { %v7138_v50 = vpop.f32.mrb[48].mxu0  ;;  %v7686_v51 = vpop.f32.mrb[49].mxu1 }
 0x2d1   :  { %v7139_v35 = vpop.f32.mrb[49].mxu0  ;;  %v3677_v52 = vpop.f32.mrb[50].mxu1  ;;  %7839 = vmatpush3.bf16.msra.mxu1 %v8386_v26  ;;  %v8401_v51 = vld [vmem:[#allocation5 + $0xed0] sm:$0xff]  }
 0x2d2   :  { %v7140_v53 = vadd.f32 %v7139_v35, %v7138_v50  ;;  %v7141_v54 = vpop.f32.mrb[50].mxu0  ;;  %v7687_v1 = vpop.f32.mrb[51].mxu1  ;;  %7840 = vmatprep.subr.bf16.mxu1 %v8600_v0  ;;  %v8306_v50 = vld [vmem:[#allocation5 + $0xb98] sm:$0xff]   ;;  %v8309_v52 = vld [vmem:[#allocation5 + $0xba0] sm:$0xff]   ;;  %v8339_v26 = vld [vmem:[#allocation5 + $0xc70] sm:$0xff]  }
 0x2d3   :  { %v7142_v55 = vpop.f32.mrb[51].mxu0  ;;  %v8307_v35 = vld [vmem:[#allocation5 + $0xb58] sm:$0xff]   ;;  %v8310_v54 = vld [vmem:[#allocation5 + $0xb60] sm:$0xff]   ;;  %v8312_v1 = vld [vmem:[#allocation5 + $0xba8] sm:$0xff]  }
 0x2d4   :  { %v3675_v57 = vadd.f32 %v7140_v53, %v3674_v28  ;;  %v8398_v28 = vld [vmem:[#allocation5 + $0xec8] sm:$0xff]   ;;  %v8404_v53 = vld [vmem:[#allocation5 + $0xed8] sm:$0xff]   ;;  %v8407_v55 = vld [vmem:[#allocation5 + $0xee0] sm:$0xff]  }
 0x2d5   :  { %7841 = vmatpush3.bf16.msra.mxu1 %v8389_v37  ;;  %v8348_v37 = vld [vmem:[#allocation5 + $0xd08] sm:$0xff]  }
 0x2d6   :  { %v8973_v58 = vmax.f32 %v3406_v41, %v3675_v57  ;;  %7842 = vmatprep.subr.bf16.mxu1 %v8600_v0  ;;  %v8315_v57 = vld [vmem:[#allocation5 + $0xbb0] sm:$0xff]  }
 0x2d9   :  { %7843 = vmatpush3.bf16.msra.mxu1 %v8392_v21  ;;  %v8354_v21 = vld [vmem:[#allocation5 + $0xd18] sm:$0xff]  }
 0x2da   :  { %7848 = vmatprep.subr.bf16.mxu1 %v8600_v0 }
 0x2dc   :  { %7845 = vmatmul.mubr.bf16.vlgmr.msra.gmra.mrb[76].mxu1 %v8989_v17 }
 0x2dd   :  { %7849 = vmatpush3.bf16.msra.mxu1 %v8395_v45  ;;  %7864 = vmatprep.mubr.msk.bf16.mxu1 %vm8601_vm0, %v8600_v0  ;;  %v8361_v45 = vld [vmem:[#allocation5 + $0xce8] sm:$0xff]  }
 0x2de   :  { %7850 = vmatprep.subr.bf16.mxu1 %v8600_v0 }
 0x2e1   :  { %7851 = vmatpush3.bf16.msra.mxu1 %v8398_v28  ;;  %v8367_v28 = vld [vmem:[#allocation5 + $0xcf8] sm:$0xff]  }
 0x2e2   :  { %7852 = vmatprep.subr.bf16.mxu1 %v8600_v0 }
 0x2e5   :  { %7853 = vmatpush3.bf16.msra.mxu1 %v8401_v51  ;;  %v8372_v51 = vld [vmem:[#allocation5 + $0xdc8] sm:$0xff]  }
 0x2e6   :  { %7854 = vmatprep.subr.bf16.mxu1 %v8600_v0 }
 0x2e9   :  { %7855 = vmatpush3.bf16.msra.mxu1 %v8404_v53  ;;  %v8376_v53 = vld [vmem:[#allocation5 + $0xd90] sm:$0xff]  }
 0x2ea   :  { %7856 = vmatprep.subr.bf16.mxu1 %v8600_v0 }
 0x2ed   :  { %7857 = vmatpush3.bf16.msra.mxu1 %v8407_v55  ;;  %v8381_v55 = vld [vmem:[#allocation5 + $0xde0] sm:$0xff]  }
 0x2ee   :  { %7858 = vmatprep.subr.bf16.mxu1 %v8600_v0 }
 0x2ef   :  { %v3948_v25 = vpop.f32.mrb[52].mxu1 }
 0x2f0   :  { %v7169_v3 = vpop.f32.mrb[52].mxu0  ;;  %v7706_v4 = vpop.f32.mrb[53].mxu1 }
 0x2f1   :  { %v7170_v6 = vpop.f32.mrb[53].mxu0  ;;  %v3951_v7 = vpop.f32.mrb[54].mxu1  ;;  %7859 = vmatpush3.bf16.msra.mxu1 %v8410_v59  ;;  %v8416_v4 = vld [vmem:[#allocation5 + $0xef8] sm:$0xff]   ;;  %v8385_v59 = vld [vmem:[#allocation5 + $0xda8] sm:$0xff]  }
 0x2f2   :  { %v7171_v8 = vadd.f32 %v7170_v6, %v7169_v3  ;;  %v7172_v9 = vpop.f32.mrb[54].mxu0  ;;  %v7707_v10 = vpop.f32.mrb[55].mxu1  ;;  %7860 = vmatprep.subr.bf16.mxu1 %v8600_v0  ;;  %v8321_v3 = vld [vmem:[#allocation5 + $0xc40] sm:$0xff]   ;;  %v8324_v7 = vld [vmem:[#allocation5 + $0xc48] sm:$0xff]  }
 0x2f3   :  { %v7173_v11 = vpop.f32.mrb[55].mxu0  ;;  %v8322_v6 = vld [vmem:[#allocation5 + $0xc00] sm:$0xff]   ;;  %v8325_v9 = vld [vmem:[#allocation5 + $0xc08] sm:$0xff]   ;;  %v8327_v10 = vld [vmem:[#allocation5 + $0xc50] sm:$0xff]  }
 0x2f4   :  { %v3949_v13 = vadd.f32 %v7171_v8, %v3948_v25  ;;  %v8413_v25 = vld [vmem:[#allocation5 + $0xef0] sm:$0xff]   ;;  %v8419_v8 = vld [vmem:[#allocation5 + $0xf80] sm:$0xff]   ;;  %v8422_v11 = vld [vmem:[#allocation5 + $0xf88] sm:$0xff]  }
 0x2f5   :  { %7861 = vmatpush3.bf16.msra.mxu1 %v8413_v25 }
 0x2f6   :  { %v3954_v14 = vmax.f32 %v8973_v58, %v3949_v13  ;;  %7862 = vmatprep.subr.bf16.mxu1 %v8600_v0  ;;  %v8330_v13 = vld [vmem:[#allocation5 + $0xc58] sm:$0xff]  }
 0x2f9   :  { %7863 = vmatpush3.bf16.msra.mxu1 %v8416_v4  ;;  %v8393_v4 = vld [vmem:[#allocation5 + $0xe80] sm:$0xff]  }
 0x2fa   :  { %7868 = vmatprep.subr.bf16.mxu1 %v8600_v0 }
 0x2fc   :  { %7865 = vmatmul.mubr.bf16.vlgmr.msra.gmra.mrb[80].mxu1 %v8989_v17 }
 0x2fd   :  { %7869 = vmatpush3.bf16.msra.mxu1 %v8419_v8  ;;  %7884 = vmatprep.mubr.msk.bf16.mxu1 %vm8601_vm0, %v8600_v0  ;;  %v8397_v8 = vld [vmem:[#allocation5 + $0xe48] sm:$0xff]  }
 0x2fe   :  { %7870 = vmatprep.subr.bf16.mxu1 %v8600_v0 }
 0x301   :  { %7871 = vmatpush3.bf16.msra.mxu1 %v8422_v11  ;;  %v8402_v11 = vld [vmem:[#allocation5 + $0xe98] sm:$0xff]  }
 0x302   :  { %7872 = vmatprep.subr.bf16.mxu1 %v8600_v0 }
 0x30f   :  { %v4222_v23 = vpop.f32.mrb[56].mxu1 }
 0x310   :  { %v7200_v27 = vpop.f32.mrb[56].mxu0  ;;  %v7726_v30 = vpop.f32.mrb[57].mxu1 }
 0x311   :  { %v7201_v31 = vpop.f32.mrb[57].mxu0  ;;  %v4225_v32 = vpop.f32.mrb[58].mxu1  ;;  %v8340_v30 = vld [vmem:[#allocation5 + $0xc30] sm:$0xff]  }
 0x312   :  { %v7202_v33 = vadd.f32 %v7201_v31, %v7200_v27  ;;  %v7203_v34 = vpop.f32.mrb[58].mxu0  ;;  %v7727_v5 = vpop.f32.mrb[59].mxu1  ;;  %v8434_v27 = vld [vmem:[#allocation5 + $0xfa8] sm:$0xff]   ;;  %v8342_v31 = vld [vmem:[#allocation5 + $0xc78] sm:$0xff]   ;;  %v8437_v32 = vld [vmem:[#allocation5 + $0xfb0] sm:$0xff]  }
 0x313   :  { %v7204_v36 = vpop.f32.mrb[59].mxu0  ;;  %v8345_v34 = vld [vmem:[#allocation5 + $0xd00] sm:$0xff]   ;;  %v8440_v5 = vld [vmem:[#allocation5 + $0xfb8] sm:$0xff]  }
 0x314   :  { %v4223_v38 = vadd.f32 %v7202_v33, %v4222_v23  ;;  %v8337_v23 = vld [vmem:[#allocation5 + $0xc28] sm:$0xff]   ;;  %v8343_v33 = vld [vmem:[#allocation5 + $0xc38] sm:$0xff]   ;;  %v8346_v36 = vld [vmem:[#allocation5 + $0xcc0] sm:$0xff]  }
 0x316   :  { %v4228_v40 = vmax.f32 %v3954_v14, %v4223_v38  ;;  %v8425_v14 = vld [vmem:[#allocation5 + $0xf90] sm:$0xff]   ;;  %v8349_v38 = vld [vmem:[#allocation5 + $0xcc8] sm:$0xff]  }
 0x317   :  { %7873 = vmatpush3.bf16.msra.mxu1 %v8425_v14  ;;  %v8406_v14 = vld [vmem:[#allocation5 + $0xe60] sm:$0xff]  }
 0x318   :  { %v4236_v41 = vadd.f32 %v6579_v39, %v4228_v40  ;;  %7874 = vmatprep.subr.bf16.mxu1 %v8600_v0  ;;  %v8351_v39 = vld [vmem:[#allocation5 + $0xd10] sm:$0xff]  }
 0x319   :  { %v8352_v40 = vld [vmem:[#allocation5 + $0xcd0] sm:$0xff]  }
 0x31a   :  { %v4237_v43 = vpack.c.bf16 %v4236_v41, %v4236_v41  ;;  %v8355_v41 = vld [vmem:[#allocation5 + $0xcd8] sm:$0xff]  }
 0x31b   :  { %7875 = vmatpush3.bf16.msra.mxu1 %v8428_v18  ;;  %v8411_v18 = vld [vmem:[#allocation5 + $0xeb0] sm:$0xff]  }
 0x31c   :  { %7745 = vmatmul.mubr.bf16.vlgmr.msra.gmra.mrb[60].mxu0 %v4237_v43  ;;  %7876 = vmatprep.subr.bf16.mxu1 %v8600_v0  ;;  %v8358_v43 = vld [vmem:[#allocation5 + $0xce0] sm:$0xff]  }
 0x31d   :  { %7234 = vmatpush3.bf16.msra.mxu0 %v8298_v42  ;;  %4656 = vmatprep.mubr.bf16.mxu0 %v8702_v24  ;;  %v8357_v42 = vld [vmem:[#allocation5 + $0xd20] sm:$0xff]  }
 0x31e   :  { %7235 = vmatprep.subr.bf16.mxu0 %v8300_v44  ;;  %v8360_v44 = vld [vmem:[#allocation5 + $0xd28] sm:$0xff]  }
 0x31f   :  { %7877 = vmatpush3.bf16.msra.mxu1 %v8431_v22 }
 0x320   :  { %7878 = vmatprep.subr.bf16.mxu1 %v8600_v0 }
 0x321   :  { %7236 = vmatpush3.bf16.msra.mxu0 %v8301_v47  ;;  %v8363_v47 = vld [vmem:[#allocation5 + $0xd30] sm:$0xff]  }
 0x322   :  { %7237 = vmatprep.subr.bf16.mxu0 %v8303_v48  ;;  %v8364_v48 = vld [vmem:[#allocation5 + $0xcf0] sm:$0xff]  }
 0x323   :  { %7879 = vmatpush3.bf16.msra.mxu1 %v8434_v27 }
 0x324   :  { %7880 = vmatprep.subr.bf16.mxu1 %v8600_v0 }
 0x325   :  { %7238 = vmatpush3.bf16.msra.mxu0 %v8304_v49  ;;  %v8369_v49 = vld [vmem:[#allocation5 + $0xdc0] sm:$0xff]  }
 0x326   :  { %7239 = vmatprep.subr.bf16.mxu0 %v8306_v50  ;;  %v8370_v50 = vld [vmem:[#allocation5 + $0xd80] sm:$0xff]  }
 0x327   :  { %7881 = vmatpush3.bf16.msra.mxu1 %v8437_v32  ;;  %v8418_v32 = vld [vmem:[#allocation5 + $0xf00] sm:$0xff]  }
 0x328   :  { %7882 = vmatprep.subr.bf16.mxu1 %v8600_v0 }
 0x329   :  { %7240 = vmatpush3.bf16.msra.mxu0 %v8307_v35  ;;  %v8373_v35 = vld [vmem:[#allocation5 + $0xd88] sm:$0xff]  }
 0x32a   :  { %7241 = vmatprep.subr.bf16.mxu0 %v8309_v52  ;;  %v8375_v52 = vld [vmem:[#allocation5 + $0xdd0] sm:$0xff]  }
 0x32b   :  { %7883 = vmatpush3.bf16.msra.mxu1 %v8440_v5  ;;  %v8423_v5 = vld [vmem:[#allocation5 + $0xf50] sm:$0xff]  }
 0x32d   :  { %7242 = vmatpush3.bf16.msra.mxu0 %v8310_v54  ;;  %v8378_v54 = vld [vmem:[#allocation5 + $0xdd8] sm:$0xff]  }
 0x32e   :  { %7243 = vmatprep.subr.bf16.mxu0 %v8312_v1  ;;  %7885 = vmatmul.mubr.bf16.vlgmr.msra.gmra.mrb[84].mxu1 %v8989_v17  ;;  %v8366_v17 = vld [vmem:[#allocation5 + $0xd38] sm:$0xff]  }
 0x32f   :  { %v9010_v58 = vpop.f32.mrb[60].mxu1  ;;  %v8379_v1 = vld [vmem:[#allocation5 + $0xd98] sm:$0xff]  }
 0x330   :  { %v7766_v60 = vpop.f32.mrb[61].mxu1 }
 0x331   :  { %7244 = vmatpush3.bf16.msra.mxu0 %v8313_v56  ;;  %v4428_v46 = vpop.f32.mrb[62].mxu1  ;;  %v8382_v56 = vld [vmem:[#allocation5 + $0xda0] sm:$0xff]   ;;  %v8387_v60 = vld [vmem:[#allocation5 + $0xdf0] sm:$0xff]  }
 0x332   :  { %v7767_v62 = vpop.f32.mrb[63].mxu1  ;;  %7245 = vmatprep.subr.bf16.mxu0 %v8315_v57  ;;  %v8384_v57 = vld [vmem:[#allocation5 + $0xde8] sm:$0xff]  }
 0x335   :  { %7246 = vmatpush3.bf16.msra.mxu0 %v8316_v61  ;;  %v8388_v61 = vld [vmem:[#allocation5 + $0xdb0] sm:$0xff]  }
 0x336   :  { %7247 = vmatprep.subr.bf16.mxu0 %v8318_v63  ;;  %v8390_v63 = vld [vmem:[#allocation5 + $0xdf8] sm:$0xff]  }
 0x339   :  { %7248 = vmatpush3.bf16.msra.mxu0 %v8319_v2 }
 0x33a   :  { %7264 = vmatprep.subr.bf16.mxu0 %v8321_v3  ;;  %v8391_v3 = vld [vmem:[#allocation5 + $0xdb8] sm:$0xff]  }
 0x33c   :  { %4657 = vmatmul.mubr.bf16.vlgmr.msra.gmra.mrb[64].mxu0 %v8708_v29 }
 0x33d   :  { %7265 = vmatpush3.bf16.msra.mxu0 %v8322_v6  ;;  %4929 = vmatprep.mubr.bf16.mxu0 %v8702_v24  ;;  %v8394_v6 = vld [vmem:[#allocation5 + $0xe40] sm:$0xff]  }
 0x33e   :  { %7266 = vmatprep.subr.bf16.mxu0 %v8324_v7  ;;  %v8396_v7 = vld [vmem:[#allocation5 + $0xe88] sm:$0xff]  }
 0x341   :  { %7267 = vmatpush3.bf16.msra.mxu0 %v8325_v9  ;;  %v8399_v9 = vld [vmem:[#allocation5 + $0xe90] sm:$0xff]  }
 0x342   :  { %7268 = vmatprep.subr.bf16.mxu0 %v8327_v10  ;;  %v8400_v10 = vld [vmem:[#allocation5 + $0xe50] sm:$0xff]  }
 0x345   :  { %7269 = vmatpush3.bf16.msra.mxu0 %v8328_v12  ;;  %v8403_v12 = vld [vmem:[#allocation5 + $0xe58] sm:$0xff]  }
 0x346   :  { %7270 = vmatprep.subr.bf16.mxu0 %v8330_v13  ;;  %v8405_v13 = vld [vmem:[#allocation5 + $0xea0] sm:$0xff]  }
 0x349   :  { %7271 = vmatpush3.bf16.msra.mxu0 %v8331_v15  ;;  %v8408_v15 = vld [vmem:[#allocation5 + $0xea8] sm:$0xff]  }
 0x34a   :  { %7272 = vmatprep.subr.bf16.mxu0 %v8333_v16  ;;  %v8409_v16 = vld [vmem:[#allocation5 + $0xe68] sm:$0xff]  }
 0x34d   :  { %7273 = vmatpush3.bf16.msra.mxu0 %v8334_v19 }
 0x34e   :  { %7274 = vmatprep.subr.bf16.mxu0 %v8336_v20  ;;  %v8412_v20 = vld [vmem:[#allocation5 + $0xe70] sm:$0xff]  }
 0x34f   :  { %v9033_v46 = vpop.f32.mrb[64].mxu1 }
 0x350   :  { %v7786_v62 = vpop.f32.mrb[65].mxu1 }
 0x351   :  { %7275 = vmatpush3.bf16.msra.mxu0 %v8337_v23  ;;  %v4701_v25 = vpop.f32.mrb[66].mxu1  ;;  %v8414_v23 = vld [vmem:[#allocation5 + $0xeb8] sm:$0xff]  }
 0x352   :  { %7276 = vmatprep.subr.bf16.mxu0 %v8339_v26  ;;  %v7787_v2 = vpop.f32.mrb[67].mxu1 }
 0x353   :  { %v8442_v2 = vld [vmem:[#allocation8 + $0x88] sm:$0xff]  }
 0x355   :  { %7277 = vmatpush3.bf16.msra.mxu0 %v8340_v30  ;;  %v8415_v30 = vld [vmem:[#allocation5 + $0xe78] sm:$0xff]  }
 0x356   :  { %7278 = vmatprep.subr.bf16.mxu0 %v8342_v31  ;;  %v8417_v31 = vld [vmem:[#allocation5 + $0xf40] sm:$0xff]  }
 0x359   :  { %7279 = vmatpush3.bf16.msra.mxu0 %v8343_v33  ;;  %v8420_v33 = vld [vmem:[#allocation5 + $0xf48] sm:$0xff]  }
 0x35a   :  { %7295 = vmatprep.subr.bf16.mxu0 %v8345_v34  ;;  %v8421_v34 = vld [vmem:[#allocation5 + $0xf08] sm:$0xff]  }
 0x35c   :  { %4930 = vmatmul.mubr.bf16.vlgmr.msra.gmra.mrb[68].mxu0 %v8708_v29 }
 0x35d   :  { %7296 = vmatpush3.bf16.msra.mxu0 %v8346_v36  ;;  %5203 = vmatprep.mubr.bf16.mxu0 %v8702_v24  ;;  %v8424_v36 = vld [vmem:[#allocation5 + $0xf10] sm:$0xff]  }
 0x35e   :  { %7297 = vmatprep.subr.bf16.mxu0 %v8348_v37  ;;  %v8426_v37 = vld [vmem:[#allocation5 + $0xf58] sm:$0xff]  }
 0x361   :  { %7298 = vmatpush3.bf16.msra.mxu0 %v8349_v38  ;;  %v8427_v38 = vld [vmem:[#allocation5 + $0xf18] sm:$0xff]  }
 0x362   :  { %7299 = vmatprep.subr.bf16.mxu0 %v8351_v39  ;;  %v8429_v39 = vld [vmem:[#allocation5 + $0xf60] sm:$0xff]  }
 0x365   :  { %7300 = vmatpush3.bf16.msra.mxu0 %v8352_v40  ;;  %v8430_v40 = vld [vmem:[#allocation5 + $0xf20] sm:$0xff]  }
 0x366   :  { %7301 = vmatprep.subr.bf16.mxu0 %v8354_v21  ;;  %v8432_v21 = vld [vmem:[#allocation5 + $0xf68] sm:$0xff]  }
 0x369   :  { %7302 = vmatpush3.bf16.msra.mxu0 %v8355_v41  ;;  %v8433_v41 = vld [vmem:[#allocation5 + $0xf28] sm:$0xff]  }
 0x36a   :  { %7303 = vmatprep.subr.bf16.mxu0 %v8357_v42  ;;  %v8435_v42 = vld [vmem:[#allocation5 + $0xf70] sm:$0xff]  }
 0x36d   :  { %7304 = vmatpush3.bf16.msra.mxu0 %v8358_v43 }
 0x36e   :  { %7305 = vmatprep.subr.bf16.mxu0 %v8360_v44 }
 0x36f   :  { %v9037_v19 = vpop.f32.mrb[68].mxu1 }
 0x370   :  { %v7806_v22 = vpop.f32.mrb[69].mxu1 }
 0x371   :  { %7306 = vmatpush3.bf16.msra.mxu0 %v8361_v45  ;;  %v4974_v26 = vpop.f32.mrb[70].mxu1  ;;  %v8438_v45 = vld [vmem:[#allocation5 + $0xf78] sm:$0xff]  }
 0x372   :  { %7307 = vmatprep.subr.bf16.mxu0 %v8363_v47  ;;  %v7807_v27 = vpop.f32.mrb[71].mxu1  ;;  %v8448_v22 = vld [vmem:[#allocation8 + $0xb8] sm:$0xff]  }
 0x375   :  { %7308 = vmatpush3.bf16.msra.mxu0 %v8364_v48 }
 0x376   :  { %7309 = vmatprep.subr.bf16.mxu0 %v8366_v17  ;;  %v8439_v17 = vld [vmem:[#allocation5 + $0xf38] sm:$0xff]  }
 0x379   :  { %7310 = vmatpush3.bf16.msra.mxu0 %v8367_v28 }
 0x37a   :  { %7326 = vmatprep.subr.bf16.mxu0 %v8369_v49 }
 0x37c   :  { %5204 = vmatmul.mubr.bf16.vlgmr.msra.gmra.mrb[72].mxu0 %v8708_v29 }
 0x37d   :  { %7327 = vmatpush3.bf16.msra.mxu0 %v8370_v50  ;;  %5477 = vmatprep.mubr.bf16.mxu0 %v8702_v24 }
 0x37e   :  { %7328 = vmatprep.subr.bf16.mxu0 %v8372_v51 }
 0x381   :  { %7329 = vmatpush3.bf16.msra.mxu0 %v8373_v35 }
 0x382   :  { %7330 = vmatprep.subr.bf16.mxu0 %v8375_v52 }
 0x385   :  { %7331 = vmatpush3.bf16.msra.mxu0 %v8376_v53 }
 0x386   :  { %7332 = vmatprep.subr.bf16.mxu0 %v8378_v54 }
 0x389   :  { %7333 = vmatpush3.bf16.msra.mxu0 %v8379_v1 }
 0x38a   :  { %7334 = vmatprep.subr.bf16.mxu0 %v8381_v55 }
 0x38d   :  { %7335 = vmatpush3.bf16.msra.mxu0 %v8382_v56 }
 0x38e   :  { %7336 = vmatprep.subr.bf16.mxu0 %v8384_v57 }
 0x38f   :  { %v9041_v43 = vpop.f32.mrb[72].mxu1 }
 0x390   :  { %v7826_v44 = vpop.f32.mrb[73].mxu1 }
 0x391   :  { %7337 = vmatpush3.bf16.msra.mxu0 %v8385_v59  ;;  %v5248_v47 = vpop.f32.mrb[74].mxu1 }
 0x392   :  { %7338 = vmatprep.subr.bf16.mxu0 %v8387_v60  ;;  %v7827_v48 = vpop.f32.mrb[75].mxu1 }
 0x395   :  { %7339 = vmatpush3.bf16.msra.mxu0 %v8388_v61 }
 0x396   :  { %7340 = vmatprep.subr.bf16.mxu0 %v8390_v63 }
 0x399   :  { %7341 = vmatpush3.bf16.msra.mxu0 %v8391_v3  ;;  %v8443_v3 = vld [vmem:[#allocation8 + $0x90] sm:$0xff]  }
 0x39a   :  { %7357 = vmatprep.subr.bf16.mxu0 %v8393_v4  ;;  %v8444_v4 = vld [vmem:[#allocation8 + $0x98] sm:$0xff]  }
 0x39c   :  { %5478 = vmatmul.mubr.bf16.vlgmr.msra.gmra.mrb[76].mxu0 %v8708_v29 }
 0x39d   :  { %7358 = vmatpush3.bf16.msra.mxu0 %v8394_v6  ;;  %5751 = vmatprep.mubr.bf16.mxu0 %v8702_v24  ;;  %v8445_v6 = vld [vmem:[#allocation8 + $0xa0] sm:$0xff]  }
 0x39e   :  { %7359 = vmatprep.subr.bf16.mxu0 %v8396_v7 }
 0x3a1   :  { %7360 = vmatpush3.bf16.msra.mxu0 %v8397_v8 }
 0x3a2   :  { %7361 = vmatprep.subr.bf16.mxu0 %v8399_v9 }
 0x3a5   :  { %7362 = vmatpush3.bf16.msra.mxu0 %v8400_v10 }
 0x3a6   :  { %7363 = vmatprep.subr.bf16.mxu0 %v8402_v11 }
 0x3a9   :  { %7364 = vmatpush3.bf16.msra.mxu0 %v8403_v12 }
 0x3aa   :  { %7365 = vmatprep.subr.bf16.mxu0 %v8405_v13 }
 0x3ad   :  { %7366 = vmatpush3.bf16.msra.mxu0 %v8406_v14  ;;  %v8447_v14 = vld [vmem:[#allocation8 + $0xb0] sm:$0xff]  }
 0x3ae   :  { %7367 = vmatprep.subr.bf16.mxu0 %v8408_v15 }
 0x3af   :  { %v5519_v51 = vpop.f32.mrb[76].mxu1 }
 0x3b0   :  { %v7846_v52 = vpop.f32.mrb[77].mxu1 }
 0x3b1   :  { %7368 = vmatpush3.bf16.msra.mxu0 %v8409_v16  ;;  %v5522_v54 = vpop.f32.mrb[78].mxu1 }
 0x3b2   :  { %7369 = vmatprep.subr.bf16.mxu0 %v8411_v18  ;;  %v7847_v1 = vpop.f32.mrb[79].mxu1  ;;  %v6749_v54 = vld [vmem:[#allocation10] ss:$0 sm:$0xff] }
 0x3b5   :  { %7370 = vmatpush3.bf16.msra.mxu0 %v8412_v20 }
 0x3b6   :  { %7371 = vmatprep.subr.bf16.mxu0 %v8414_v23 }
 0x3b9   :  { %7372 = vmatpush3.bf16.msra.mxu0 %v8415_v30 }
 0x3ba   :  { %7388 = vmatprep.subr.bf16.mxu0 %v8417_v31 }
 0x3bc   :  { %5752 = vmatmul.mubr.bf16.vlgmr.msra.gmra.mrb[80].mxu0 %v8708_v29 }
 0x3bd   :  { %7389 = vmatpush3.bf16.msra.mxu0 %v8418_v32  ;;  %6025 = vmatprep.mubr.bf16.mxu0 %v8702_v24  ;;  %v8436_v24 = vld [vmem:[#allocation5 + $0xf30] sm:$0xff]  }
 0x3be   :  { %7390 = vmatprep.subr.bf16.mxu0 %v8420_v33 }
 0x3c1   :  { %7391 = vmatpush3.bf16.msra.mxu0 %v8421_v34 }
 0x3c2   :  { %7392 = vmatprep.subr.bf16.mxu0 %v8423_v5 }
 0x3c5   :  { %7393 = vmatpush3.bf16.msra.mxu0 %v8424_v36 }
 0x3c6   :  { %7394 = vmatprep.subr.bf16.mxu0 %v8426_v37 }
 0x3c9   :  { %7395 = vmatpush3.bf16.msra.mxu0 %v8427_v38 }
 0x3ca   :  { %7396 = vmatprep.subr.bf16.mxu0 %v8429_v39 }
 0x3cd   :  { %7397 = vmatpush3.bf16.msra.mxu0 %v8430_v40 }
 0x3ce   :  { %7398 = vmatprep.subr.bf16.mxu0 %v8432_v21 }
 0x3cf   :  { %v5793_v60 = vpop.f32.mrb[80].mxu1 }
 0x3d0   :  { %v7866_v61 = vpop.f32.mrb[81].mxu1 }
 0x3d1   :  { %7399 = vmatpush3.bf16.msra.mxu0 %v8433_v41  ;;  %v5796_v63 = vpop.f32.mrb[82].mxu1 }
 0x3d2   :  { %7400 = vmatprep.subr.bf16.mxu0 %v8435_v42  ;;  %v7867_v25 = vpop.f32.mrb[83].mxu1 }
 0x3d5   :  { %7401 = vmatpush3.bf16.msra.mxu0 %v8436_v24 }
 0x3d6   :  { %7402 = vmatprep.subr.bf16.mxu0 %v8438_v45 }
 0x3d9   :  { %7403 = vmatpush3.bf16.msra.mxu0 %v8439_v17 }
 0x3da   :  { %7888 = vmatprep.subr.bf16.mxu0 %v8600_v0 }
 0x3dc   :  { %6026 = vmatmul.mubr.bf16.vlgmr.msra.gmra.mrb[84].mxu0 %v8708_v29 }
 0x3dd   :  { %7904 = vmatprep.mubr.msk.bf16.mxu0 %vm8601_vm0, %v8600_v0 }
 0x3ef   :  { %v4337_v28 = vpop.f32.mrb[60].mxu0 }
 0x3f0   :  { %v9048_v49 = vadd.f32 %v9010_v58, %v4337_v28  ;;  %v7746_v50 = vpop.f32.mrb[61].mxu0  ;;  %v8441_v58 = vld [vmem:[#allocation8 + $0x80] sm:$0xff]  }
 0x3f1   :  { %v4340_v35 = vpop.f32.mrb[62].mxu0  ;;  %7889 = vmatpush3.bf16.msra.mxu0 %v8441_v58  ;;  %v6740_v50 = vld [vmem:[#allocation7 + $0x2] ss:$0 sm:$0xff] }
 0x3f2   :  { %v7747_v53 = vpop.f32.mrb[63].mxu0  ;;  %7890 = vmatprep.subr.bf16.mxu0 %v8600_v0 }
 0x3f5   :  { %7891 = vmatpush3.bf16.msra.mxu0 %v8442_v2 }
 0x3f6   :  { %7892 = vmatprep.subr.bf16.mxu0 %v8600_v0 }
 0x3f9   :  { %7893 = vmatpush3.bf16.msra.mxu0 %v8443_v3 }
 0x3fa   :  { %7894 = vmatprep.subr.bf16.mxu0 %v8600_v0 }
 0x3fd   :  { %7895 = vmatpush3.bf16.msra.mxu0 %v8444_v4 }
 0x3fe   :  { %7896 = vmatprep.subr.bf16.mxu0 %v8600_v0 }
 0x401   :  { %7897 = vmatpush3.bf16.msra.mxu0 %v8445_v6  ;;  %v6067_v11 = vpop.f32.mrb[84].mxu1 }
 0x402   :  { %7898 = vmatprep.subr.bf16.mxu0 %v8600_v0  ;;  %v7886_v13 = vpop.f32.mrb[85].mxu1 }
 0x403   :  { %v6070_v16 = vpop.f32.mrb[86].mxu1 }
 0x404   :  { %v7887_v18 = vpop.f32.mrb[87].mxu1 }
 0x40f   :  { %v7249_v55 = vpop.f32.mrb[64].mxu0 }
 0x410   :  { %v7250_v56 = vpop.f32.mrb[65].mxu0 }
 0x411   :  { %v7251_v57 = vadd.f32 %v7250_v56, %v7249_v55  ;;  %v7252_v59 = vpop.f32.mrb[66].mxu0 }
 0x412   :  { %v7253_v29 = vpop.f32.mrb[67].mxu0 }
 0x413   :  { %v4699_v62 = vadd.f32 %v7251_v57, %v9033_v46  ;;  %v8446_v46 = vld [vmem:[#allocation8 + $0xa8] sm:$0xff]  }
 0x414   :  { %7899 = vmatpush3.bf16.msra.mxu0 %v8446_v46 }
 0x415   :  { %7900 = vmatprep.subr.bf16.mxu0 %v8600_v0 }
 0x418   :  { %7901 = vmatpush3.bf16.msra.mxu0 %v8447_v14 }
 0x419   :  { %7902 = vmatprep.subr.bf16.mxu0 %v8600_v0 }
 0x41c   :  { %7903 = vmatpush3.bf16.msra.mxu0 %v8448_v22 }
 0x42f   :  { %v7280_v7 = vpop.f32.mrb[68].mxu0 }
 0x430   :  { %v7281_v8 = vpop.f32.mrb[69].mxu0 }
 0x431   :  { %v7282_v9 = vadd.f32 %v7281_v8, %v7280_v7  ;;  %v7283_v10 = vpop.f32.mrb[70].mxu0 }
 0x432   :  { %v7284_v12 = vpop.f32.mrb[71].mxu0 }
 0x433   :  { %v4972_v15 = vadd.f32 %v7282_v9, %v9037_v19 }
 0x435   :  { %v4977_v20 = vmax.f32 %v4699_v62, %v4972_v15 }
 0x44f   :  { %v7311_v23 = vpop.f32.mrb[72].mxu0 }
 0x450   :  { %v7312_v26 = vpop.f32.mrb[73].mxu0 }
 0x451   :  { %v7313_v27 = vadd.f32 %v7312_v26, %v7311_v23  ;;  %v7314_v30 = vpop.f32.mrb[74].mxu0 }
 0x452   :  { %v7315_v31 = vpop.f32.mrb[75].mxu0 }
 0x453   :  { %v5246_v32 = vadd.f32 %v7313_v27, %v9041_v43 }
 0x455   :  { %v5251_v33 = vmax.f32 %v4977_v20, %v5246_v32 }
 0x46f   :  { %v7342_v34 = vpop.f32.mrb[76].mxu0 }
 0x470   :  { %v7343_v5 = vpop.f32.mrb[77].mxu0 }
 0x471   :  { %v7344_v36 = vadd.f32 %v7343_v5, %v7342_v34  ;;  %v7345_v19 = vpop.f32.mrb[78].mxu0 }
 0x472   :  { %v7346_v37 = vpop.f32.mrb[79].mxu0 }
 0x473   :  { %v5520_v38 = vadd.f32 %v7344_v36, %v5519_v51 }
 0x475   :  { %v5525_v39 = vmax.f32 %v5251_v33, %v5520_v38 }
 0x48f   :  { %v7373_v40 = vpop.f32.mrb[80].mxu0 }
 0x490   :  { %v7374_v21 = vpop.f32.mrb[81].mxu0 }
 0x491   :  { %v7375_v0 = vadd.f32 %v7374_v21, %v7373_v40  ;;  %v7376_v41 = vpop.f32.mrb[82].mxu0 }
 0x492   :  { %v7377_v42 = vpop.f32.mrb[83].mxu0 }
 0x493   :  { %v5794_v24 = vadd.f32 %v7375_v0, %v5793_v60 }
 0x495   :  { %v5799_v44 = vmax.f32 %v5525_v39, %v5794_v24 }
 0x4af   :  { %v7404_v45 = vpop.f32.mrb[84].mxu0 }
 0x4b0   :  { %v7405_v47 = vpop.f32.mrb[85].mxu0 }
 0x4b1   :  { %v7406_v48 = vadd.f32 %v7405_v47, %v7404_v45  ;;  %v7407_v17 = vpop.f32.mrb[86].mxu0 }
 0x4b2   :  { %v7408_v43 = vpop.f32.mrb[87].mxu0 }
 0x4b3   :  { %v6068_v28 = vadd.f32 %v7406_v48, %v6067_v11 }
 0x4b5   :  { %v6073_v35 = vmax.f32 %v5799_v44, %v6068_v28 }
 0x4b7   :  { %v6081_v52 = vadd.f32 %v6740_v50, %v6073_v35 }
 0x4b9   :  { %v6082_v53 = vpack.c.bf16 %v6081_v52, %v6081_v52 }
 0x4bb   :  { %7905 = vmatmul.mubr.bf16.vlgmr.msra.gmra.mrb[88].mxu0 %v6082_v53 }
 0x58e   :  { %v6182_v51 = vpop.f32.mrb[88].mxu0 }
 0x58f   :  { %v6188_v1 = vadd.f32 %v6182_v51, %v9048_v49  ;;  %v7906_v55 = vpop.f32.mrb[89].mxu0 }
 0x590   :  { %v6185_v56 = vpop.f32.mrb[90].mxu0 }
 0x591   :  { %v6196_v57 = vadd.f32 %v6749_v54, %v6188_v1  ;;  %v7907_v59 = vpop.f32.mrb[91].mxu0 }
 0x593   :  { %6197 = vst [vmem:[#allocation11] sm:$0xff] %v6196_v57 }
 0x594   :  { %8574 = shalt.err (!%p8571_p2)
}
 0x595   :  { %s8575_s30 = scalar_lea.hbm %s9078_s5, 128 }
 0x596   :  { %p8576_p3 = scmp.ne.s32.totalorder %s9078_s5, %s8575_s30  ;;  %p8579_p4 = scmp.lt.u32.totalorder %s8575_s30, %s9078_s5 }
 0x598   :  { %p8581_p5 = pnand %p8579_p4, %p8576_p3 }
 0x59a   :  { %8584 = shalt.err (!%p8581_p5)
}
 0x59b   :  { %6207 = dma.vmem_to_hbm [thread:$0]  %s6205_s27, 128, %s9078_s5, [#allocation4]  }
 0x59c   :  { %8591 = dma.done.wait [#allocation4], 128  }
 0x59d   :  { %8592 = vsyncadd [#allocation4], 4294967168 }
 0x59e   :  { %6211 = vsyncpa [#allocation3], 1 }
 0x59f   :  { %6212 = vsyncpa [#allocation6], 1 }
 0x5a0   :  { %6213 = vsyncpa [#allocation9], 1 }
 0x5a1   :  { %6214 = vsyncpa [#allocation4], 1 }

</bundles_post_ra>
